<compile_context>
chip_gen: v5e
topology: v5e:2x2
jax: 0.10.0
libtpu: 0.0.40
codegen_flags: <defaults>
</compile_context>

<pallas_src>
import functools

import jax
import jax.numpy as jnp
from jax.experimental import pallas as pl
from jax.experimental.pallas import tpu as pltpu


_VMEM_LIMIT = 48 * 1024 * 1024   # scoped-VMEM cap; comfortably < v7x's 64 MiB physical.


def _round_up(x, m):
    return (x + m - 1) // m * m


# ----------------------------------------------------------------------------
# Feature probe: single-buffering of constant-index blocks (pl.Buffered(1)).
# Probed once (compile + run + value check); falls back to default double
# buffering if unsupported, so it can never break the build.
# ----------------------------------------------------------------------------
@functools.lru_cache(maxsize=1)
def _single_buffer_ok():
    try:
        def k(a_ref, o_ref):
            o_ref[...] = a_ref[...] + pl.program_id(0).astype(jnp.float32)

        fn = pl.pallas_call(
            k,
            out_shape=jax.ShapeDtypeStruct((4 * 8, 128), jnp.float32),
            grid=(4,),
            in_specs=[pl.BlockSpec((8, 128), lambda i: (0, 0),
                                   pipeline_mode=pl.Buffered(1))],
            out_specs=pl.BlockSpec((8, 128), lambda i: (i, 0)),
        )
        x = jnp.arange(8 * 128, dtype=jnp.float32).reshape(8, 128)
        y = jax.jit(fn)(x)
        expect = jnp.concatenate([x + i for i in range(4)], axis=0)
        return bool(jnp.allclose(y, expect))
    except Exception:
        return False


def _const_spec(block_shape, index_map):
    """BlockSpec for a block revisited with a constant index (weights / biases)."""
    if _single_buffer_ok():
        return pl.BlockSpec(block_shape, index_map, pipeline_mode=pl.Buffered(1))
    return pl.BlockSpec(block_shape, index_map)


def _default_batch_splits():
    """2 on dual-TensorCore chips (v7x) so both cores run the sequential phase."""
    try:
        kind = jax.devices()[0].device_kind.lower()
    except Exception:
        return 1
    return 2 if ("v7" in kind or "tpu7" in kind) else 1


# ----------------------------------------------------------------------------
# Kernel 1: hoisted input projection  G = X @ Wi_cat + b_cat  (parallel GEMM).
# ----------------------------------------------------------------------------
def input_proj_kernel(x_ref, wi_ref, b_ref, g_ref):
    acc = jnp.dot(x_ref[...], wi_ref[...], preferred_element_type=jnp.float32)
    g_ref[...] = (acc + b_ref[...]).astype(g_ref.dtype)


def _proj_time_chunk(t_pad, bp, din, g3):
    """Largest divisor of t_pad whose bf16 in+out blocks fit a VMEM budget."""
    budget = 16 * 1024 * 1024
    bytes_per_t = bp * (din + g3) * 2 * 2      # bf16 in + out, double buffered
    cap = max(1, budget // max(1, bytes_per_t))
    gp = 1
    for d in range(1, t_pad + 1):
        if t_pad % d == 0 and d <= cap:
            gp = d
    # Keep >= 2 grid steps when the halves are still big (lets "parallel" use 2 cores).
    if gp == t_pad and t_pad % 2 == 0 and (t_pad // 2) * bp >= 256:
        gp = t_pad // 2
    return gp


def input_projection(seq, wi_cat, b_cat, gp):
    """seq (Tp,Bp,Din) bf16; wi_cat (Din,3Hp) bf16; b_cat (1,3Hp) f32 -> (Tp,Bp,3Hp) bf16."""
    t_pad, bp, din = seq.shape
    g3 = wi_cat.shape[1]
    rows = gp * bp
    x2 = seq.reshape(t_pad * bp, din)
    g2 = pl.pallas_call(
        input_proj_kernel,
        out_shape=jax.ShapeDtypeStruct((t_pad * bp, g3), jnp.bfloat16),
        grid_spec=pltpu.PrefetchScalarGridSpec(
            num_scalar_prefetch=0,
            grid=(t_pad // gp,),
            in_specs=[pl.BlockSpec((rows, din), lambda c: (c, 0)),
                      _const_spec((din, g3), lambda c: (0, 0)),
                      _const_spec((1, g3), lambda c: (0, 0))],
            out_specs=pl.BlockSpec((rows, g3), lambda c: (c, 0))),
        compiler_params=pltpu.CompilerParams(
            dimension_semantics=("parallel",),
            vmem_limit_bytes=_VMEM_LIMIT),
    )(x2, wi_cat, b_cat)
    return g2.reshape(t_pad, bp, g3)


# ----------------------------------------------------------------------------
# Kernel 2: sequential recurrence.  One fused bf16 (Bpe,Hp)@(Hp,3Hp) matmul per
# timestep, `chunk` timesteps unrolled per grid step, h carried in VMEM scratch.
# Grid = (batch_splits, time_chunks); batch splits map to separate TensorCores
# on v7x ("parallel" axis).
# ----------------------------------------------------------------------------
def _gru_chunk_body(gates_ref, wh_ref, bhn_ref, h_scr, chunk, chunk_idx, valid_t,
                    y_ref=None):
    hp = wh_ref.shape[0]
    wh = wh_ref[...]          # (Hp, 3Hp) bf16, hoisted out of the unrolled loop
    bhn = bhn_ref[...]        # (1, Hp)   f32, hoisted

    def step(i, carry):
        h = h_scr[...]                                        # (Bpe, Hp) f32
        g = gates_ref[i].astype(jnp.float32)                  # x-proj + folded input biases
        hh = jnp.dot(h.astype(jnp.bfloat16), wh,
                     preferred_element_type=jnp.float32)      # (Bpe, 3Hp) f32
        r = jax.nn.sigmoid(g[:, :hp] + hh[:, :hp])
        z = jax.nn.sigmoid(g[:, hp:2 * hp] + hh[:, hp:2 * hp])
        # b_hn must stay inside r * (...)  (PyTorch GRU semantics)
        n = jnp.tanh(g[:, 2 * hp:] + r * (hh[:, 2 * hp:] + bhn))
        h_new = n + z * (h - n)
        if valid_t is not None:                               # mask padded timesteps
            h_new = jnp.where(chunk_idx * chunk + i < valid_t, h_new, h)
        h_scr[...] = h_new
        if y_ref is not None:
            y_ref[i] = h_new.astype(y_ref.dtype)
        return carry

    jax.lax.fori_loop(0, chunk, step, 0, unroll=True)


def gru_seq_kernel(gates_ref, wh_ref, bhn_ref, y_ref, h_scr, *, chunk, valid_t):
    c = pl.program_id(1)

    @pl.when(c == 0)
    def _():
        h_scr[...] = jnp.zeros_like(h_scr)        # h0 = zeros (like the PyTorch module)

    _gru_chunk_body(gates_ref, wh_ref, bhn_ref, h_scr, chunk, c, valid_t, y_ref=y_ref)


def gru_last_fc_kernel(gates_ref, wh_ref, bhn_ref, fcw_ref, fcb_ref, out_ref, h_scr,
                       *, chunk, valid_t):
    c = pl.program_id(1)

    @pl.when(c == 0)
    def _():
        h_scr[...] = jnp.zeros_like(h_scr)

    _gru_chunk_body(gates_ref, wh_ref, bhn_ref, h_scr, chunk, c, valid_t, y_ref=None)

    @pl.when(c == pl.num_programs(1) - 1)
    def _():
        out_ref[...] = (jnp.dot(h_scr[...].astype(jnp.bfloat16), fcw_ref[...],
                                preferred_element_type=jnp.float32)
                        + fcb_ref[...]).astype(out_ref.dtype)


def gru_recurrent_seq(gates, wh_cat, bhn_p, tc, valid_t, nsplit):
    t_pad, bp, g3 = gates.shape
    hp = g3 // 3
    bpe = bp // nsplit
    return pl.pallas_call(
        functools.partial(gru_seq_kernel, chunk=tc, valid_t=valid_t),
        out_shape=jax.ShapeDtypeStruct((t_pad, bp, hp), jnp.bfloat16),
        grid_spec=pltpu.PrefetchScalarGridSpec(
            num_scalar_prefetch=0,
            grid=(nsplit, t_pad // tc),
            in_specs=[pl.BlockSpec((tc, bpe, g3), lambda p, c: (c, p, 0)),
                      _const_spec((hp, g3), lambda p, c: (0, 0)),
                      _const_spec((1, hp), lambda p, c: (0, 0))],
            out_specs=pl.BlockSpec((tc, bpe, hp), lambda p, c: (c, p, 0)),
            scratch_shapes=[pltpu.VMEM((bpe, hp), jnp.float32)]),
        compiler_params=pltpu.CompilerParams(
            dimension_semantics=("parallel", "arbitrary"),
            vmem_limit_bytes=_VMEM_LIMIT),
    )(gates, wh_cat, bhn_p)


def gru_recurrent_last_fc(gates, wh_cat, bhn_p, fcw_p, fcb_p, tc, valid_t, nsplit):
    t_pad, bp, g3 = gates.shape
    hp = g3 // 3
    op = fcw_p.shape[1]
    bpe = bp // nsplit
    return pl.pallas_call(
        functools.partial(gru_last_fc_kernel, chunk=tc, valid_t=valid_t),
        out_shape=jax.ShapeDtypeStruct((bp, op), jnp.float32),
        grid_spec=pltpu.PrefetchScalarGridSpec(
            num_scalar_prefetch=0,
            grid=(nsplit, t_pad // tc),
            in_specs=[pl.BlockSpec((tc, bpe, g3), lambda p, c: (c, p, 0)),
                      _const_spec((hp, g3), lambda p, c: (0, 0)),
                      _const_spec((1, hp), lambda p, c: (0, 0)),
                      _const_spec((hp, op), lambda p, c: (0, 0)),
                      _const_spec((1, op), lambda p, c: (0, 0))],
            out_specs=pl.BlockSpec((bpe, op), lambda p, c: (p, 0)),
            scratch_shapes=[pltpu.VMEM((bpe, hp), jnp.float32)]),
        compiler_params=pltpu.CompilerParams(
            dimension_semantics=("parallel", "arbitrary"),
            vmem_limit_bytes=_VMEM_LIMIT),
    )(gates, wh_cat, bhn_p, fcw_p, fcb_p)


# ----------------------------------------------------------------------------
# One-time weight preparation (PyTorch stacked gate order is [r, z, n]).
# ----------------------------------------------------------------------------
def _prep_layer(w_ih, w_hh, b_ih, b_hh, din_pad, hp):
    h = w_hh.shape[1]

    def split3(a):
        return [a[i * h:(i + 1) * h] for i in range(3)]

    wir, wiz, win = split3(w_ih)       # each (H, Din)
    whr, whz, whn = split3(w_hh)       # each (H, H)
    bir, biz, bin_ = split3(b_ih)
    bhr, bhz, bhn = split3(b_hh)

    def pad_cols(wt):                  # (din, H) -> (din, Hp), zero padding
        return jnp.pad(wt, ((0, 0), (0, hp - h)))

    def pad_vec(v):
        return jnp.pad(v, (0, hp - h))

    wi_cat = jnp.concatenate([pad_cols(wir.T), pad_cols(wiz.T), pad_cols(win.T)], axis=1)
    wi_cat = jnp.pad(wi_cat, ((0, din_pad - wi_cat.shape[0]), (0, 0)))   # (Din_pad, 3Hp)
    wh_cat = jnp.concatenate([pad_cols(whr.T), pad_cols(whz.T), pad_cols(whn.T)], axis=1)
    wh_cat = jnp.pad(wh_cat, ((0, hp - h), (0, 0)))                      # (Hp, 3Hp)

    # Fold b_hr / b_hz into the precomputed input gates; b_hn must stay separate.
    b_cat = jnp.concatenate([pad_vec(bir + bhr), pad_vec(biz + bhz),
                             pad_vec(bin_)]).reshape(1, 3 * hp)
    bhn_p = pad_vec(bhn).reshape(1, hp)
    return (wi_cat.astype(jnp.bfloat16), wh_cat.astype(jnp.bfloat16),
            b_cat.astype(jnp.float32), bhn_p.astype(jnp.float32))


def prepare_params(params):
    """Pack / pad / transpose weights into kernel layout once (off the critical path)."""
    layers_raw = params["gru"]
    hid = layers_raw[0][1].shape[1]
    hp = _round_up(hid, 128)
    o = params["fc_w"].shape[0]
    op = _round_up(o, 128)

    layers = []
    for li, (w_ih, w_hh, b_ih, b_hh) in enumerate(layers_raw):
        din_pad = w_ih.shape[1] if li == 0 else hp
        layers.append(_prep_layer(w_ih, w_hh, b_ih, b_hh, din_pad, hp))

    fcw_p = jnp.pad(params["fc_w"].T, ((0, hp - hid), (0, op - o))).astype(jnp.bfloat16)
    fcb_p = jnp.pad(params["fc_b"], (0, op - o)).reshape(1, op).astype(jnp.float32)

    _single_buffer_ok()   # warm the feature probe outside the jitted forward
    return {"layers": layers, "fc_w": fcw_p, "fc_b": fcb_p}


# ----------------------------------------------------------------------------
# Full model forward (matches the PyTorch module's forward).
# ----------------------------------------------------------------------------
def gru_model_forward(x, prep, out_dim, time_chunk=16, num_batch_splits=None):
    """x: (B, T, D) f32; prep from prepare_params; returns (B, out_dim) f32."""
    b = x.shape[0]
    bp = _round_up(b, 8)
    if num_batch_splits is None:
        num_batch_splits = _default_batch_splits()
    if num_batch_splits < 1 or bp % (8 * num_batch_splits) != 0:
        num_batch_splits = 1
    return _forward_impl(x, prep, int(out_dim), int(time_chunk), int(num_batch_splits))


@functools.partial(jax.jit, static_argnums=(2, 3, 4))
def _forward_impl(x, prep, out_dim, time_chunk, nsplit):
    b, t, _ = x.shape
    bp = _round_up(b, 8)                       # f32/bf16 sublane alignment

    # Recurrent time chunk: pad T up to a multiple of tc and mask the remainder,
    # so awkward/prime T never collapses to tc=1.
    n_chunks = max(1, -(-t // max(1, time_chunk)))
    tc = -(-t // n_chunks)
    t_pad = n_chunks * tc
    valid_t = t if t_pad != t else None

    # batch_first (B, T, D) -> time-major, batch/time padded, bf16 activations.
    seq = jnp.transpose(x, (1, 0, 2)).astype(jnp.bfloat16)
    seq = jnp.pad(seq, ((0, t_pad - t), (0, bp - b), (0, 0)))

    layers = prep["layers"]
    n_layers = len(layers)
    out_p = None
    for li, (wi_cat, wh_cat, b_cat, bhn_p) in enumerate(layers):
        din = seq.shape[2]
        g3 = wi_cat.shape[1]
        gp = _proj_time_chunk(t_pad, bp, din, g3)
        gates = input_projection(seq, wi_cat, b_cat, gp)          # (Tp, Bp, 3Hp) bf16
        if li == n_layers - 1:
            # Top layer: fuse the final Linear; only the last hidden is needed.
            out_p = gru_recurrent_last_fc(gates, wh_cat, bhn_p,
                                          prep["fc_w"], prep["fc_b"],
                                          tc, valid_t, nsplit)     # (Bp, Op) f32
        else:
            seq = gru_recurrent_seq(gates, wh_cat, bhn_p,
                                    tc, valid_t, nsplit)           # (Tp, Bp, Hp) bf16

    return out_p[:b, :out_dim]


# ----------------------------------------------------------------------------
# Pure-JAX f32 reference (for the correctness check).
# ----------------------------------------------------------------------------
def gru_reference(x, params):
    def layer(seq, w_ih, w_hh, b_ih, b_hh):
        h = w_hh.shape[1]
        wir, wiz, win = (w_ih[i * h:(i + 1) * h] for i in range(3))
        whr, whz, whn = (w_hh[i * h:(i + 1) * h] for i in range(3))
        bir, biz, bin_ = (b_ih[i * h:(i + 1) * h] for i in range(3))
        bhr, bhz, bhn = (b_hh[i * h:(i + 1) * h] for i in range(3))

        def step(hh, x_t):
            r = jax.nn.sigmoid(x_t @ wir.T + bir + hh @ whr.T + bhr)
            z = jax.nn.sigmoid(x_t @ wiz.T + biz + hh @ whz.T + bhz)
            n = jnp.tanh(x_t @ win.T + bin_ + r * (hh @ whn.T + bhn))
            h_new = (1.0 - z) * n + z * hh
            return h_new, h_new

        h0 = jnp.zeros((seq.shape[1], h), jnp.float32)
        _, ys = jax.lax.scan(step, h0, seq)
        return ys

    seq = jnp.transpose(x, (1, 0, 2))
    for (w_ih, w_hh, b_ih, b_hh) in params["gru"]:
        seq = layer(seq, w_ih, w_hh, b_ih, b_hh)
    return seq[-1] @ params["fc_w"].T + params["fc_b"]


# ----------------------------------------------------------------------------
# Deterministic parameter init (PyTorch-style uniform(-1/sqrt(H), 1/sqrt(H))).
# ----------------------------------------------------------------------------
def init_params(key, input_dim, hidden_dim, num_layers, output_dim):
    k = 1.0 / jnp.sqrt(hidden_dim)
    layers = []
    for l in range(num_layers):
        d_in = input_dim if l == 0 else hidden_dim
        key, k1, k2, k3, k4 = jax.random.split(key, 5)
        layers.append((
            jax.random.uniform(k1, (3 * hidden_dim, d_in), jnp.float32, -k, k),
            jax.random.uniform(k2, (3 * hidden_dim, hidden_dim), jnp.float32, -k, k),
            jax.random.uniform(k3, (3 * hidden_dim,), jnp.float32, -k, k),
            jax.random.uniform(k4, (3 * hidden_dim,), jnp.float32, -k, k),
        ))
    key, k5, k6 = jax.random.split(key, 3)
    fc_w = jax.random.uniform(k5, (output_dim, hidden_dim), jnp.float32, -k, k)
    fc_b = jax.random.uniform(k6, (output_dim,), jnp.float32, -k, k)
    return {"gru": layers, "fc_w": fc_w, "fc_b": fc_b}


if __name__ == "__main__":
    # Primary config (matches the small spec shapes).
    B, T, D, H, L, O = 2, 8, 4, 32, 2, 3
    key = jax.random.PRNGKey(0)
    key, kx, kp = jax.random.split(key, 3)
    x = jax.random.normal(kx, (B, T, D), jnp.float32)
    params = init_params(kp, D, H, L, O)
    prep = prepare_params(params)

    out = jax.block_until_ready(gru_model_forward(x, prep, O))
    ref = gru_reference(x, params)
    assert out.shape == (B, O), out.shape
    assert jnp.allclose(out, ref, rtol=2e-2, atol=2e-2)   # bf16 matmul tolerance

    # Second config: exercises multi-chunk h carry, padded-time masking (T=10, tc=4)
    # and the dual-core batch-split path (Bp=16, num_batch_splits=2).
    B2, T2 = 16, 10
    key, kx2, kp2 = jax.random.split(key, 3)
    x2 = jax.random.normal(kx2, (B2, T2, D), jnp.float32)
    params2 = init_params(kp2, D, H, L, O)
    prep2 = prepare_params(params2)
    out2 = jax.block_until_ready(
        gru_model_forward(x2, prep2, O, time_chunk=4, num_batch_splits=2))
    ref2 = gru_reference(x2, params2)
    assert out2.shape == (B2, O), out2.shape
    assert jnp.allclose(out2, ref2, rtol=2e-2, atol=2e-2)

    print("KERNEL_OK")
</pallas_src>

<mosaic_0001>
module attributes {stable_mosaic.version = 11 : i64} {
  func.func @k(%arg0: i32, %arg1: memref<8x128xf32, #tpu.memory_space<vmem>>, %arg2: memref<8x128xf32, #tpu.memory_space<vmem>>) attributes {dimension_semantics = [#tpu.dimension_semantics<arbitrary>], iteration_bounds = array<i64: 4>, scalar_prefetch = 0 : i64, scratch_operands = 0 : i64, tpu.core_type = #tpu.core_type<tc>, window_params = [{pipeline_mode = #tpu.pipeline_mode<synchronous>, transform_indices = @transform_0, window_bounds = array<i64: 8, 128>}, {transform_indices = @transform_1, window_bounds = array<i64: 8, 128>}]} {
    %c0 = arith.constant 0 : index
    %c0_0 = arith.constant 0 : index
    %0 = vector.load %arg1[%c0, %c0_0] : memref<8x128xf32, #tpu.memory_space<vmem>>, vector<8x128xf32>
    %1 = arith.sitofp %arg0 : i32 to f32
    %2 = vector.broadcast %1 : f32 to vector<8x128xf32>
    %3 = arith.addf %0, %2 : vector<8x128xf32>
    %c0_1 = arith.constant 0 : index
    %c0_2 = arith.constant 0 : index
    %4 = vector.load %arg2[%c0_1, %c0_2] : memref<8x128xf32, #tpu.memory_space<vmem>>, vector<8x128xf32>
    tpu.vector_store %arg2[%c0_1, %c0_2], %3 {strides = array<i32>} : memref<8x128xf32, #tpu.memory_space<vmem>>, vector<8x128xf32>,
    return
  }
  func.func @transform_0(%arg0: i32) -> (i32, i32) {
    %c0_i32 = arith.constant 0 : i32
    %c0_i32_0 = arith.constant 0 : i32
    %c0_i32_1 = arith.constant 0 : i32
    return %c0_i32, %c0_i32_0 : i32, i32
  }
  func.func @transform_1(%arg0: i32) -> (i32, i32) {
    %c0_i32 = arith.constant 0 : i32
    %c0_i32_0 = arith.constant 0 : i32
    return %arg0, %c0_i32 : i32, i32
  }
}

module attributes {stable_mosaic.version = 11 : i64} {
  func.func @input_proj_kernel(%arg0: i32, %arg1: memref<64x4xbf16, #tpu.memory_space<vmem>>, %arg2: memref<4x384xbf16, #tpu.memory_space<vmem>>, %arg3: memref<1x384xf32, #tpu.memory_space<vmem>>, %arg4: memref<64x384xbf16, #tpu.memory_space<vmem>>) attributes {dimension_semantics = [#tpu.dimension_semantics<parallel>], iteration_bounds = array<i64: 1>, scalar_prefetch = 0 : i64, scratch_operands = 0 : i64, tpu.core_type = #tpu.core_type<tc>, window_params = [{transform_indices = @transform_0, window_bounds = array<i64: 64, 4>}, {pipeline_mode = #tpu.pipeline_mode<synchronous>, transform_indices = @transform_1, window_bounds = array<i64: 4, 384>}, {pipeline_mode = #tpu.pipeline_mode<synchronous>, transform_indices = @transform_2, window_bounds = array<i64: 1, 384>}, {transform_indices = @transform_3, window_bounds = array<i64: 64, 384>}]} {
    %c0 = arith.constant 0 : index
    %c0_0 = arith.constant 0 : index
    %0 = vector.load %arg1[%c0, %c0_0] : memref<64x4xbf16, #tpu.memory_space<vmem>>, vector<64x4xbf16>
    %c0_1 = arith.constant 0 : index
    %c0_2 = arith.constant 0 : index
    %1 = vector.load %arg2[%c0_1, %c0_2] : memref<4x384xbf16, #tpu.memory_space<vmem>>, vector<4x384xbf16>
    %cst = arith.constant dense<0.000000e+00> : vector<64x384xf32>
    %2 = tpu.matmul %0, %1, %cst {dimension_numbers = #tpu.dot_dimension_numbers<[1], [0], [0], [1], [0, 0, 1, 1], [], []>} : vector<64x4xbf16>, vector<4x384xbf16>, vector<64x384xf32> -> vector<64x384xf32>
    %c0_3 = arith.constant 0 : index
    %c0_4 = arith.constant 0 : index
    %3 = vector.load %arg3[%c0_3, %c0_4] : memref<1x384xf32, #tpu.memory_space<vmem>>, vector<1x384xf32>
    %4 = vector.broadcast %3 : vector<1x384xf32> to vector<64x384xf32>
    %5 = arith.addf %2, %4 : vector<64x384xf32>
    %6 = arith.truncf %5 : vector<64x384xf32> to vector<64x384xbf16>
    %c0_5 = arith.constant 0 : index
    %c0_6 = arith.constant 0 : index
    %7 = vector.load %arg4[%c0_5, %c0_6] : memref<64x384xbf16, #tpu.memory_space<vmem>>, vector<64x384xbf16>
    tpu.vector_store %arg4[%c0_5, %c0_6], %6 {strides = array<i32>} : memref<64x384xbf16, #tpu.memory_space<vmem>>, vector<64x384xbf16>,
    return
  }
  func.func @transform_0(%arg0: i32) -> (i32, i32) {
    %c0_i32 = arith.constant 0 : i32
    %c0_i32_0 = arith.constant 0 : i32
    return %arg0, %c0_i32 : i32, i32
  }
  func.func @transform_1(%arg0: i32) -> (i32, i32) {
    %c0_i32 = arith.constant 0 : i32
    %c0_i32_0 = arith.constant 0 : i32
    %c0_i32_1 = arith.constant 0 : i32
    return %c0_i32, %c0_i32_0 : i32, i32
  }
  func.func @transform_2(%arg0: i32) -> (i32, i32) {
    %c0_i32 = arith.constant 0 : i32
    %c0_i32_0 = arith.constant 0 : i32
    %c0_i32_1 = arith.constant 0 : i32
    return %c0_i32, %c0_i32_0 : i32, i32
  }
  func.func @transform_3(%arg0: i32) -> (i32, i32) {
    %c0_i32 = arith.constant 0 : i32
    %c0_i32_0 = arith.constant 0 : i32
    return %arg0, %c0_i32 : i32, i32
  }
}

module attributes {stable_mosaic.version = 11 : i64} {
  func.func @input_proj_kernel(%arg0: i32, %arg1: memref<64x128xbf16, #tpu.memory_space<vmem>>, %arg2: memref<128x384xbf16, #tpu.memory_space<vmem>>, %arg3: memref<1x384xf32, #tpu.memory_space<vmem>>, %arg4: memref<64x384xbf16, #tpu.memory_space<vmem>>) attributes {dimension_semantics = [#tpu.dimension_semantics<parallel>], iteration_bounds = array<i64: 1>, scalar_prefetch = 0 : i64, scratch_operands = 0 : i64, tpu.core_type = #tpu.core_type<tc>, window_params = [{transform_indices = @transform_0, window_bounds = array<i64: 64, 128>}, {pipeline_mode = #tpu.pipeline_mode<synchronous>, transform_indices = @transform_1, window_bounds = array<i64: 128, 384>}, {pipeline_mode = #tpu.pipeline_mode<synchronous>, transform_indices = @transform_2, window_bounds = array<i64: 1, 384>}, {transform_indices = @transform_3, window_bounds = array<i64: 64, 384>}]} {
    %c0 = arith.constant 0 : index
    %c0_0 = arith.constant 0 : index
    %0 = vector.load %arg1[%c0, %c0_0] : memref<64x128xbf16, #tpu.memory_space<vmem>>, vector<64x128xbf16>
    %c0_1 = arith.constant 0 : index
    %c0_2 = arith.constant 0 : index
    %1 = vector.load %arg2[%c0_1, %c0_2] : memref<128x384xbf16, #tpu.memory_space<vmem>>, vector<128x384xbf16>
    %cst = arith.constant dense<0.000000e+00> : vector<64x384xf32>
    %2 = tpu.matmul %0, %1, %cst {dimension_numbers = #tpu.dot_dimension_numbers<[1], [0], [0], [1], [0, 0, 1, 1], [], []>} : vector<64x128xbf16>, vector<128x384xbf16>, vector<64x384xf32> -> vector<64x384xf32>
    %c0_3 = arith.constant 0 : index
    %c0_4 = arith.constant 0 : index
    %3 = vector.load %arg3[%c0_3, %c0_4] : memref<1x384xf32, #tpu.memory_space<vmem>>, vector<1x384xf32>
    %4 = vector.broadcast %3 : vector<1x384xf32> to vector<64x384xf32>
    %5 = arith.addf %2, %4 : vector<64x384xf32>
    %6 = arith.truncf %5 : vector<64x384xf32> to vector<64x384xbf16>
    %c0_5 = arith.constant 0 : index
    %c0_6 = arith.constant 0 : index
    %7 = vector.load %arg4[%c0_5, %c0_6] : memref<64x384xbf16, #tpu.memory_space<vmem>>, vector<64x384xbf16>
    tpu.vector_store %arg4[%c0_5, %c0_6], %6 {strides = array<i32>} : memref<64x384xbf16, #tpu.memory_space<vmem>>, vector<64x384xbf16>,
    return
  }
  func.func @transform_0(%arg0: i32) -> (i32, i32) {
    %c0_i32 = arith.constant 0 : i32
    %c0_i32_0 = arith.constant 0 : i32
    return %arg0, %c0_i32 : i32, i32
  }
  func.func @transform_1(%arg0: i32) -> (i32, i32) {
    %c0_i32 = arith.constant 0 : i32
    %c0_i32_0 = arith.constant 0 : i32
    %c0_i32_1 = arith.constant 0 : i32
    return %c0_i32, %c0_i32_0 : i32, i32
  }
  func.func @transform_2(%arg0: i32) -> (i32, i32) {
    %c0_i32 = arith.constant 0 : i32
    %c0_i32_0 = arith.constant 0 : i32
    %c0_i32_1 = arith.constant 0 : i32
    return %c0_i32, %c0_i32_0 : i32, i32
  }
  func.func @transform_3(%arg0: i32) -> (i32, i32) {
    %c0_i32 = arith.constant 0 : i32
    %c0_i32_0 = arith.constant 0 : i32
    return %arg0, %c0_i32 : i32, i32
  }
}

module attributes {stable_mosaic.version = 11 : i64} {
  func.func @gru_seq_kernel(%arg0: i32, %arg1: i32, %arg2: memref<8x8x384xbf16, #tpu.memory_space<vmem>>, %arg3: memref<128x384xbf16, #tpu.memory_space<vmem>>, %arg4: memref<1x128xf32, #tpu.memory_space<vmem>>, %arg5: memref<8x8x128xbf16, #tpu.memory_space<vmem>>, %arg6: memref<8x128xf32, #tpu.memory_space<vmem>>) attributes {dimension_semantics = [#tpu.dimension_semantics<parallel>, #tpu.dimension_semantics<arbitrary>], iteration_bounds = array<i64: 1, 1>, scalar_prefetch = 0 : i64, scratch_operands = 1 : i64, tpu.core_type = #tpu.core_type<tc>, window_params = [{transform_indices = @transform_0, window_bounds = array<i64: 8, 8, 384>}, {pipeline_mode = #tpu.pipeline_mode<synchronous>, transform_indices = @transform_1, window_bounds = array<i64: 128, 384>}, {pipeline_mode = #tpu.pipeline_mode<synchronous>, transform_indices = @transform_2, window_bounds = array<i64: 1, 128>}, {transform_indices = @transform_3, window_bounds = array<i64: 8, 8, 128>}]} {
    %c0_i32 = arith.constant 0 : i32
    %0 = arith.cmpi eq, %arg1, %c0_i32 : i32
    %1 = arith.extui %0 : i1 to i32
    %c0_i32_0 = arith.constant 0 : i32
    %2 = arith.cmpi ne, %1, %c0_i32_0 : i32
    scf.if %2 {
      %cst_92 = arith.constant 0.000000e+00 : f32
      %317 = vector.broadcast %cst_92 : f32 to vector<8x128xf32>
      %c0_93 = arith.constant 0 : index
      %c0_94 = arith.constant 0 : index
      %318 = vector.load %arg6[%c0_93, %c0_94] : memref<8x128xf32, #tpu.memory_space<vmem>>, vector<8x128xf32>
      tpu.vector_store %arg6[%c0_93, %c0_94], %317 {strides = array<i32>} : memref<8x128xf32, #tpu.memory_space<vmem>>, vector<8x128xf32>,
    } else {
    }
    %c0 = arith.constant 0 : index
    %c0_1 = arith.constant 0 : index
    %3 = vector.load %arg3[%c0, %c0_1] : memref<128x384xbf16, #tpu.memory_space<vmem>>, vector<128x384xbf16>
    %c0_2 = arith.constant 0 : index
    %c0_3 = arith.constant 0 : index
    %4 = vector.load %arg4[%c0_2, %c0_3] : memref<1x128xf32, #tpu.memory_space<vmem>>, vector<1x128xf32>
    %c0_i32_4 = arith.constant 0 : i32
    %c0_5 = arith.constant 0 : index
    %c0_6 = arith.constant 0 : index
    %5 = vector.load %arg6[%c0_5, %c0_6] : memref<8x128xf32, #tpu.memory_space<vmem>>, vector<8x128xf32>
    %6 = arith.index_cast %c0_i32_4 : i32 to index
    %c0_7 = arith.constant 0 : index
    %c0_8 = arith.constant 0 : index
    %7 = vector.load %arg2[%6, %c0_7, %c0_8] : memref<8x8x384xbf16, #tpu.memory_space<vmem>>, vector<1x8x384xbf16>
    %8 = vector.shape_cast %7 : vector<1x8x384xbf16> to vector<8x384xbf16>
    %9 = arith.extf %8 : vector<8x384xbf16> to vector<8x384xf32>
    %10 = arith.truncf %5 : vector<8x128xf32> to vector<8x128xbf16>
    %cst = arith.constant dense<0.000000e+00> : vector<8x384xf32>
    %11 = tpu.matmul %10, %3, %cst {dimension_numbers = #tpu.dot_dimension_numbers<[1], [0], [0], [1], [0, 0, 1, 1], [], []>} : vector<8x128xbf16>, vector<128x384xbf16>, vector<8x384xf32> -> vector<8x384xf32>
    %12 = vector.extract_strided_slice %9 {offsets = [0, 0], sizes = [8, 128], strides = [1, 1]} : vector<8x384xf32> to vector<8x128xf32>
    %13 = vector.extract_strided_slice %11 {offsets = [0, 0], sizes = [8, 128], strides = [1, 1]} : vector<8x384xf32> to vector<8x128xf32>
    %14 = arith.addf %12, %13 : vector<8x128xf32>
    %15 = arith.negf %14 : vector<8x128xf32>
    %16 = math.exp %15 : vector<8x128xf32>
    %cst_9 = arith.constant 1.000000e+00 : f32
    %17 = vector.broadcast %cst_9 : f32 to vector<8x128xf32>
    %18 = arith.addf %17, %16 : vector<8x128xf32>
    %19 = arith.divf %17, %18 : vector<8x128xf32>
    %20 = vector.extract_strided_slice %9 {offsets = [0, 128], sizes = [8, 128], strides = [1, 1]} : vector<8x384xf32> to vector<8x128xf32>
    %21 = vector.extract_strided_slice %11 {offsets = [0, 128], sizes = [8, 128], strides = [1, 1]} : vector<8x384xf32> to vector<8x128xf32>
    %22 = arith.addf %20, %21 : vector<8x128xf32>
    %23 = arith.negf %22 : vector<8x128xf32>
    %24 = math.exp %23 : vector<8x128xf32>
    %cst_10 = arith.constant 1.000000e+00 : f32
    %25 = vector.broadcast %cst_10 : f32 to vector<8x128xf32>
    %26 = arith.addf %25, %24 : vector<8x128xf32>
    %27 = arith.divf %25, %26 : vector<8x128xf32>
    %28 = vector.extract_strided_slice %9 {offsets = [0, 256], sizes = [8, 128], strides = [1, 1]} : vector<8x384xf32> to vector<8x128xf32>
    %29 = vector.extract_strided_slice %11 {offsets = [0, 256], sizes = [8, 128], strides = [1, 1]} : vector<8x384xf32> to vector<8x128xf32>
    %30 = vector.broadcast %4 : vector<1x128xf32> to vector<8x128xf32>
    %31 = arith.addf %29, %30 : vector<8x128xf32>
    %32 = arith.mulf %19, %31 : vector<8x128xf32>
    %33 = arith.addf %28, %32 : vector<8x128xf32>
    %34 = math.tanh %33 : vector<8x128xf32>
    %35 = arith.subf %5, %34 : vector<8x128xf32>
    %36 = arith.mulf %27, %35 : vector<8x128xf32>
    %37 = arith.addf %34, %36 : vector<8x128xf32>
    %c0_11 = arith.constant 0 : index
    %c0_12 = arith.constant 0 : index
    %38 = vector.load %arg6[%c0_11, %c0_12] : memref<8x128xf32, #tpu.memory_space<vmem>>, vector<8x128xf32>
    tpu.vector_store %arg6[%c0_11, %c0_12], %37 {strides = array<i32>} : memref<8x128xf32, #tpu.memory_space<vmem>>, vector<8x128xf32>,
    %39 = arith.truncf %37 : vector<8x128xf32> to vector<8x128xbf16>
    %40 = arith.index_cast %c0_i32_4 : i32 to index
    %c0_13 = arith.constant 0 : index
    %c0_14 = arith.constant 0 : index
    %41 = vector.load %arg5[%40, %c0_13, %c0_14] : memref<8x8x128xbf16, #tpu.memory_space<vmem>>, vector<1x8x128xbf16>
    %42 = vector.shape_cast %41 : vector<1x8x128xbf16> to vector<8x128xbf16>
    %43 = vector.shape_cast %39 : vector<8x128xbf16> to vector<1x8x128xbf16>
    tpu.vector_store %arg5[%40, %c0_13, %c0_14], %43 {strides = array<i32>} : memref<8x8x128xbf16, #tpu.memory_space<vmem>>, vector<1x8x128xbf16>,
    %c1_i32 = arith.constant 1 : i32
    %c0_15 = arith.constant 0 : index
    %c0_16 = arith.constant 0 : index
    %44 = vector.load %arg6[%c0_15, %c0_16] : memref<8x128xf32, #tpu.memory_space<vmem>>, vector<8x128xf32>
    %45 = arith.index_cast %c1_i32 : i32 to index
    %c0_17 = arith.constant 0 : index
    %c0_18 = arith.constant 0 : index
    %46 = vector.load %arg2[%45, %c0_17, %c0_18] : memref<8x8x384xbf16, #tpu.memory_space<vmem>>, vector<1x8x384xbf16>
    %47 = vector.shape_cast %46 : vector<1x8x384xbf16> to vector<8x384xbf16>
    %48 = arith.extf %47 : vector<8x384xbf16> to vector<8x384xf32>
    %49 = arith.truncf %44 : vector<8x128xf32> to vector<8x128xbf16>
    %cst_19 = arith.constant dense<0.000000e+00> : vector<8x384xf32>
    %50 = tpu.matmul %49, %3, %cst_19 {dimension_numbers = #tpu.dot_dimension_numbers<[1], [0], [0], [1], [0, 0, 1, 1], [], []>} : vector<8x128xbf16>, vector<128x384xbf16>, vector<8x384xf32> -> vector<8x384xf32>
    %51 = vector.extract_strided_slice %48 {offsets = [0, 0], sizes = [8, 128], strides = [1, 1]} : vector<8x384xf32> to vector<8x128xf32>
    %52 = vector.extract_strided_slice %50 {offsets = [0, 0], sizes = [8, 128], strides = [1, 1]} : vector<8x384xf32> to vector<8x128xf32>
    %53 = arith.addf %51, %52 : vector<8x128xf32>
    %54 = arith.negf %53 : vector<8x128xf32>
    %55 = math.exp %54 : vector<8x128xf32>
    %cst_20 = arith.constant 1.000000e+00 : f32
    %56 = vector.broadcast %cst_20 : f32 to vector<8x128xf32>
    %57 = arith.addf %56, %55 : vector<8x128xf32>
    %58 = arith.divf %56, %57 : vector<8x128xf32>
    %59 = vector.extract_strided_slice %48 {offsets = [0, 128], sizes = [8, 128], strides = [1, 1]} : vector<8x384xf32> to vector<8x128xf32>
    %60 = vector.extract_strided_slice %50 {offsets = [0, 128], sizes = [8, 128], strides = [1, 1]} : vector<8x384xf32> to vector<8x128xf32>
    %61 = arith.addf %59, %60 : vector<8x128xf32>
    %62 = arith.negf %61 : vector<8x128xf32>
    %63 = math.exp %62 : vector<8x128xf32>
    %cst_21 = arith.constant 1.000000e+00 : f32
    %64 = vector.broadcast %cst_21 : f32 to vector<8x128xf32>
    %65 = arith.addf %64, %63 : vector<8x128xf32>
    %66 = arith.divf %64, %65 : vector<8x128xf32>
    %67 = vector.extract_strided_slice %48 {offsets = [0, 256], sizes = [8, 128], strides = [1, 1]} : vector<8x384xf32> to vector<8x128xf32>
    %68 = vector.extract_strided_slice %50 {offsets = [0, 256], sizes = [8, 128], strides = [1, 1]} : vector<8x384xf32> to vector<8x128xf32>
    %69 = vector.broadcast %4 : vector<1x128xf32> to vector<8x128xf32>
    %70 = arith.addf %68, %69 : vector<8x128xf32>
    %71 = arith.mulf %58, %70 : vector<8x128xf32>
    %72 = arith.addf %67, %71 : vector<8x128xf32>
    %73 = math.tanh %72 : vector<8x128xf32>
    %74 = arith.subf %44, %73 : vector<8x128xf32>
    %75 = arith.mulf %66, %74 : vector<8x128xf32>
    %76 = arith.addf %73, %75 : vector<8x128xf32>
    %c0_22 = arith.constant 0 : index
    %c0_23 = arith.constant 0 : index
    %77 = vector.load %arg6[%c0_22, %c0_23] : memref<8x128xf32, #tpu.memory_space<vmem>>, vector<8x128xf32>
    tpu.vector_store %arg6[%c0_22, %c0_23], %76 {strides = array<i32>} : memref<8x128xf32, #tpu.memory_space<vmem>>, vector<8x128xf32>,
    %78 = arith.truncf %76 : vector<8x128xf32> to vector<8x128xbf16>
    %79 = arith.index_cast %c1_i32 : i32 to index
    %c0_24 = arith.constant 0 : index
    %c0_25 = arith.constant 0 : index
    %80 = vector.load %arg5[%79, %c0_24, %c0_25] : memref<8x8x128xbf16, #tpu.memory_space<vmem>>, vector<1x8x128xbf16>
    %81 = vector.shape_cast %80 : vector<1x8x128xbf16> to vector<8x128xbf16>
    %82 = vector.shape_cast %78 : vector<8x128xbf16> to vector<1x8x128xbf16>
    tpu.vector_store %arg5[%79, %c0_24, %c0_25], %82 {strides = array<i32>} : memref<8x8x128xbf16, #tpu.memory_space<vmem>>, vector<1x8x128xbf16>,
    %c2_i32 = arith.constant 2 : i32
    %c0_26 = arith.constant 0 : index
    %c0_27 = arith.constant 0 : index
    %83 = vector.load %arg6[%c0_26, %c0_27] : memref<8x128xf32, #tpu.memory_space<vmem>>, vector<8x128xf32>
    %84 = arith.index_cast %c2_i32 : i32 to index
    %c0_28 = arith.constant 0 : index
    %c0_29 = arith.constant 0 : index
    %85 = vector.load %arg2[%84, %c0_28, %c0_29] : memref<8x8x384xbf16, #tpu.memory_space<vmem>>, vector<1x8x384xbf16>
    %86 = vector.shape_cast %85 : vector<1x8x384xbf16> to vector<8x384xbf16>
    %87 = arith.extf %86 : vector<8x384xbf16> to vector<8x384xf32>
    %88 = arith.truncf %83 : vector<8x128xf32> to vector<8x128xbf16>
    %cst_30 = arith.constant dense<0.000000e+00> : vector<8x384xf32>
    %89 = tpu.matmul %88, %3, %cst_30 {dimension_numbers = #tpu.dot_dimension_numbers<[1], [0], [0], [1], [0, 0, 1, 1], [], []>} : vector<8x128xbf16>, vector<128x384xbf16>, vector<8x384xf32> -> vector<8x384xf32>
    %90 = vector.extract_strided_slice %87 {offsets = [0, 0], sizes = [8, 128], strides = [1, 1]} : vector<8x384xf32> to vector<8x128xf32>
    %91 = vector.extract_strided_slice %89 {offsets = [0, 0], sizes = [8, 128], strides = [1, 1]} : vector<8x384xf32> to vector<8x128xf32>
    %92 = arith.addf %90, %91 : vector<8x128xf32>
    %93 = arith.negf %92 : vector<8x128xf32>
    %94 = math.exp %93 : vector<8x128xf32>
    %cst_31 = arith.constant 1.000000e+00 : f32
    %95 = vector.broadcast %cst_31 : f32 to vector<8x128xf32>
    %96 = arith.addf %95, %94 : vector<8x128xf32>
    %97 = arith.divf %95, %96 : vector<8x128xf32>
    %98 = vector.extract_strided_slice %87 {offsets = [0, 128], sizes = [8, 128], strides = [1, 1]} : vector<8x384xf32> to vector<8x128xf32>
    %99 = vector.extract_strided_slice %89 {offsets = [0, 128], sizes = [8, 128], strides = [1, 1]} : vector<8x384xf32> to vector<8x128xf32>
    %100 = arith.addf %98, %99 : vector<8x128xf32>
    %101 = arith.negf %100 : vector<8x128xf32>
    %102 = math.exp %101 : vector<8x128xf32>
    %cst_32 = arith.constant 1.000000e+00 : f32
    %103 = vector.broadcast %cst_32 : f32 to vector<8x128xf32>
    %104 = arith.addf %103, %102 : vector<8x128xf32>
    %105 = arith.divf %103, %104 : vector<8x128xf32>
    %106 = vector.extract_strided_slice %87 {offsets = [0, 256], sizes = [8, 128], strides = [1, 1]} : vector<8x384xf32> to vector<8x128xf32>
    %107 = vector.extract_strided_slice %89 {offsets = [0, 256], sizes = [8, 128], strides = [1, 1]} : vector<8x384xf32> to vector<8x128xf32>
    %108 = vector.broadcast %4 : vector<1x128xf32> to vector<8x128xf32>
    %109 = arith.addf %107, %108 : vector<8x128xf32>
    %110 = arith.mulf %97, %109 : vector<8x128xf32>
    %111 = arith.addf %106, %110 : vector<8x128xf32>
    %112 = math.tanh %111 : vector<8x128xf32>
    %113 = arith.subf %83, %112 : vector<8x128xf32>
    %114 = arith.mulf %105, %113 : vector<8x128xf32>
    %115 = arith.addf %112, %114 : vector<8x128xf32>
    %c0_33 = arith.constant 0 : index
    %c0_34 = arith.constant 0 : index
    %116 = vector.load %arg6[%c0_33, %c0_34] : memref<8x128xf32, #tpu.memory_space<vmem>>, vector<8x128xf32>
    tpu.vector_store %arg6[%c0_33, %c0_34], %115 {strides = array<i32>} : memref<8x128xf32, #tpu.memory_space<vmem>>, vector<8x128xf32>,
    %117 = arith.truncf %115 : vector<8x128xf32> to vector<8x128xbf16>
    %118 = arith.index_cast %c2_i32 : i32 to index
    %c0_35 = arith.constant 0 : index
    %c0_36 = arith.constant 0 : index
    %119 = vector.load %arg5[%118, %c0_35, %c0_36] : memref<8x8x128xbf16, #tpu.memory_space<vmem>>, vector<1x8x128xbf16>
    %120 = vector.shape_cast %119 : vector<1x8x128xbf16> to vector<8x128xbf16>
    %121 = vector.shape_cast %117 : vector<8x128xbf16> to vector<1x8x128xbf16>
    tpu.vector_store %arg5[%118, %c0_35, %c0_36], %121 {strides = array<i32>} : memref<8x8x128xbf16, #tpu.memory_space<vmem>>, vector<1x8x128xbf16>,
    %c3_i32 = arith.constant 3 : i32
    %c0_37 = arith.constant 0 : index
    %c0_38 = arith.constant 0 : index
    %122 = vector.load %arg6[%c0_37, %c0_38] : memref<8x128xf32, #tpu.memory_space<vmem>>, vector<8x128xf32>
    %123 = arith.index_cast %c3_i32 : i32 to index
    %c0_39 = arith.constant 0 : index
    %c0_40 = arith.constant 0 : index
    %124 = vector.load %arg2[%123, %c0_39, %c0_40] : memref<8x8x384xbf16, #tpu.memory_space<vmem>>, vector<1x8x384xbf16>
    %125 = vector.shape_cast %124 : vector<1x8x384xbf16> to vector<8x384xbf16>
    %126 = arith.extf %125 : vector<8x384xbf16> to vector<8x384xf32>
    %127 = arith.truncf %122 : vector<8x128xf32> to vector<8x128xbf16>
    %cst_41 = arith.constant dense<0.000000e+00> : vector<8x384xf32>
    %128 = tpu.matmul %127, %3, %cst_41 {dimension_numbers = #tpu.dot_dimension_numbers<[1], [0], [0], [1], [0, 0, 1, 1], [], []>} : vector<8x128xbf16>, vector<128x384xbf16>, vector<8x384xf32> -> vector<8x384xf32>
    %129 = vector.extract_strided_slice %126 {offsets = [0, 0], sizes = [8, 128], strides = [1, 1]} : vector<8x384xf32> to vector<8x128xf32>
    %130 = vector.extract_strided_slice %128 {offsets = [0, 0], sizes = [8, 128], strides = [1, 1]} : vector<8x384xf32> to vector<8x128xf32>
    %131 = arith.addf %129, %130 : vector<8x128xf32>
    %132 = arith.negf %131 : vector<8x128xf32>
    %133 = math.exp %132 : vector<8x128xf32>
    %cst_42 = arith.constant 1.000000e+00 : f32
    %134 = vector.broadcast %cst_42 : f32 to vector<8x128xf32>
    %135 = arith.addf %134, %133 : vector<8x128xf32>
    %136 = arith.divf %134, %135 : vector<8x128xf32>
    %137 = vector.extract_strided_slice %126 {offsets = [0, 128], sizes = [8, 128], strides = [1, 1]} : vector<8x384xf32> to vector<8x128xf32>
    %138 = vector.extract_strided_slice %128 {offsets = [0, 128], sizes = [8, 128], strides = [1, 1]} : vector<8x384xf32> to vector<8x128xf32>
    %139 = arith.addf %137, %138 : vector<8x128xf32>
    %140 = arith.negf %139 : vector<8x128xf32>
    %141 = math.exp %140 : vector<8x128xf32>
    %cst_43 = arith.constant 1.000000e+00 : f32
    %142 = vector.broadcast %cst_43 : f32 to vector<8x128xf32>
    %143 = arith.addf %142, %141 : vector<8x128xf32>
    %144 = arith.divf %142, %143 : vector<8x128xf32>
    %145 = vector.extract_strided_slice %126 {offsets = [0, 256], sizes = [8, 128], strides = [1, 1]} : vector<8x384xf32> to vector<8x128xf32>
    %146 = vector.extract_strided_slice %128 {offsets = [0, 256], sizes = [8, 128], strides = [1, 1]} : vector<8x384xf32> to vector<8x128xf32>
    %147 = vector.broadcast %4 : vector<1x128xf32> to vector<8x128xf32>
    %148 = arith.addf %146, %147 : vector<8x128xf32>
    %149 = arith.mulf %136, %148 : vector<8x128xf32>
    %150 = arith.addf %145, %149 : vector<8x128xf32>
    %151 = math.tanh %150 : vector<8x128xf32>
    %152 = arith.subf %122, %151 : vector<8x128xf32>
    %153 = arith.mulf %144, %152 : vector<8x128xf32>
    %154 = arith.addf %151, %153 : vector<8x128xf32>
    %c0_44 = arith.constant 0 : index
    %c0_45 = arith.constant 0 : index
    %155 = vector.load %arg6[%c0_44, %c0_45] : memref<8x128xf32, #tpu.memory_space<vmem>>, vector<8x128xf32>
    tpu.vector_store %arg6[%c0_44, %c0_45], %154 {strides = array<i32>} : memref<8x128xf32, #tpu.memory_space<vmem>>, vector<8x128xf32>,
    %156 = arith.truncf %154 : vector<8x128xf32> to vector<8x128xbf16>
    %157 = arith.index_cast %c3_i32 : i32 to index
    %c0_46 = arith.constant 0 : index
    %c0_47 = arith.constant 0 : index
    %158 = vector.load %arg5[%157, %c0_46, %c0_47] : memref<8x8x128xbf16, #tpu.memory_space<vmem>>, vector<1x8x128xbf16>
    %159 = vector.shape_cast %158 : vector<1x8x128xbf16> to vector<8x128xbf16>
    %160 = vector.shape_cast %156 : vector<8x128xbf16> to vector<1x8x128xbf16>
    tpu.vector_store %arg5[%157, %c0_46, %c0_47], %160 {strides = array<i32>} : memref<8x8x128xbf16, #tpu.memory_space<vmem>>, vector<1x8x128xbf16>,
    %c4_i32 = arith.constant 4 : i32
    %c0_48 = arith.constant 0 : index
    %c0_49 = arith.constant 0 : index
    %161 = vector.load %arg6[%c0_48, %c0_49] : memref<8x128xf32, #tpu.memory_space<vmem>>, vector<8x128xf32>
    %162 = arith.index_cast %c4_i32 : i32 to index
    %c0_50 = arith.constant 0 : index
    %c0_51 = arith.constant 0 : index
    %163 = vector.load %arg2[%162, %c0_50, %c0_51] : memref<8x8x384xbf16, #tpu.memory_space<vmem>>, vector<1x8x384xbf16>
    %164 = vector.shape_cast %163 : vector<1x8x384xbf16> to vector<8x384xbf16>
    %165 = arith.extf %164 : vector<8x384xbf16> to vector<8x384xf32>
    %166 = arith.truncf %161 : vector<8x128xf32> to vector<8x128xbf16>
    %cst_52 = arith.constant dense<0.000000e+00> : vector<8x384xf32>
    %167 = tpu.matmul %166, %3, %cst_52 {dimension_numbers = #tpu.dot_dimension_numbers<[1], [0], [0], [1], [0, 0, 1, 1], [], []>} : vector<8x128xbf16>, vector<128x384xbf16>, vector<8x384xf32> -> vector<8x384xf32>
    %168 = vector.extract_strided_slice %165 {offsets = [0, 0], sizes = [8, 128], strides = [1, 1]} : vector<8x384xf32> to vector<8x128xf32>
    %169 = vector.extract_strided_slice %167 {offsets = [0, 0], sizes = [8, 128], strides = [1, 1]} : vector<8x384xf32> to vector<8x128xf32>
    %170 = arith.addf %168, %169 : vector<8x128xf32>
    %171 = arith.negf %170 : vector<8x128xf32>
    %172 = math.exp %171 : vector<8x128xf32>
    %cst_53 = arith.constant 1.000000e+00 : f32
    %173 = vector.broadcast %cst_53 : f32 to vector<8x128xf32>
    %174 = arith.addf %173, %172 : vector<8x128xf32>
    %175 = arith.divf %173, %174 : vector<8x128xf32>
    %176 = vector.extract_strided_slice %165 {offsets = [0, 128], sizes = [8, 128], strides = [1, 1]} : vector<8x384xf32> to vector<8x128xf32>
    %177 = vector.extract_strided_slice %167 {offsets = [0, 128], sizes = [8, 128], strides = [1, 1]} : vector<8x384xf32> to vector<8x128xf32>
    %178 = arith.addf %176, %177 : vector<8x128xf32>
    %179 = arith.negf %178 : vector<8x128xf32>
    %180 = math.exp %179 : vector<8x128xf32>
    %cst_54 = arith.constant 1.000000e+00 : f32
    %181 = vector.broadcast %cst_54 : f32 to vector<8x128xf32>
    %182 = arith.addf %181, %180 : vector<8x128xf32>
    %183 = arith.divf %181, %182 : vector<8x128xf32>
    %184 = vector.extract_strided_slice %165 {offsets = [0, 256], sizes = [8, 128], strides = [1, 1]} : vector<8x384xf32> to vector<8x128xf32>
    %185 = vector.extract_strided_slice %167 {offsets = [0, 256], sizes = [8, 128], strides = [1, 1]} : vector<8x384xf32> to vector<8x128xf32>
    %186 = vector.broadcast %4 : vector<1x128xf32> to vector<8x128xf32>
    %187 = arith.addf %185, %186 : vector<8x128xf32>
    %188 = arith.mulf %175, %187 : vector<8x128xf32>
    %189 = arith.addf %184, %188 : vector<8x128xf32>
    %190 = math.tanh %189 : vector<8x128xf32>
    %191 = arith.subf %161, %190 : vector<8x128xf32>
    %192 = arith.mulf %183, %191 : vector<8x128xf32>
    %193 = arith.addf %190, %192 : vector<8x128xf32>
    %c0_55 = arith.constant 0 : index
    %c0_56 = arith.constant 0 : index
    %194 = vector.load %arg6[%c0_55, %c0_56] : memref<8x128xf32, #tpu.memory_space<vmem>>, vector<8x128xf32>
    tpu.vector_store %arg6[%c0_55, %c0_56], %193 {strides = array<i32>} : memref<8x128xf32, #tpu.memory_space<vmem>>, vector<8x128xf32>,
    %195 = arith.truncf %193 : vector<8x128xf32> to vector<8x128xbf16>
    %196 = arith.index_cast %c4_i32 : i32 to index
    %c0_57 = arith.constant 0 : index
    %c0_58 = arith.constant 0 : index
    %197 = vector.load %arg5[%196, %c0_57, %c0_58] : memref<8x8x128xbf16, #tpu.memory_space<vmem>>, vector<1x8x128xbf16>
    %198 = vector.shape_cast %197 : vector<1x8x128xbf16> to vector<8x128xbf16>
    %199 = vector.shape_cast %195 : vector<8x128xbf16> to vector<1x8x128xbf16>
    tpu.vector_store %arg5[%196, %c0_57, %c0_58], %199 {strides = array<i32>} : memref<8x8x128xbf16, #tpu.memory_space<vmem>>, vector<1x8x128xbf16>,
    %c5_i32 = arith.constant 5 : i32
    %c0_59 = arith.constant 0 : index
    %c0_60 = arith.constant 0 : index
    %200 = vector.load %arg6[%c0_59, %c0_60] : memref<8x128xf32, #tpu.memory_space<vmem>>, vector<8x128xf32>
    %201 = arith.index_cast %c5_i32 : i32 to index
    %c0_61 = arith.constant 0 : index
    %c0_62 = arith.constant 0 : index
    %202 = vector.load %arg2[%201, %c0_61, %c0_62] : memref<8x8x384xbf16, #tpu.memory_space<vmem>>, vector<1x8x384xbf16>
    %203 = vector.shape_cast %202 : vector<1x8x384xbf16> to vector<8x384xbf16>
    %204 = arith.extf %203 : vector<8x384xbf16> to vector<8x384xf32>
    %205 = arith.truncf %200 : vector<8x128xf32> to vector<8x128xbf16>
    %cst_63 = arith.constant dense<0.000000e+00> : vector<8x384xf32>
    %206 = tpu.matmul %205, %3, %cst_63 {dimension_numbers = #tpu.dot_dimension_numbers<[1], [0], [0], [1], [0, 0, 1, 1], [], []>} : vector<8x128xbf16>, vector<128x384xbf16>, vector<8x384xf32> -> vector<8x384xf32>
    %207 = vector.extract_strided_slice %204 {offsets = [0, 0], sizes = [8, 128], strides = [1, 1]} : vector<8x384xf32> to vector<8x128xf32>
    %208 = vector.extract_strided_slice %206 {offsets = [0, 0], sizes = [8, 128], strides = [1, 1]} : vector<8x384xf32> to vector<8x128xf32>
    %209 = arith.addf %207, %208 : vector<8x128xf32>
    %210 = arith.negf %209 : vector<8x128xf32>
    %211 = math.exp %210 : vector<8x128xf32>
    %cst_64 = arith.constant 1.000000e+00 : f32
    %212 = vector.broadcast %cst_64 : f32 to vector<8x128xf32>
    %213 = arith.addf %212, %211 : vector<8x128xf32>
    %214 = arith.divf %212, %213 : vector<8x128xf32>
    %215 = vector.extract_strided_slice %204 {offsets = [0, 128], sizes = [8, 128], strides = [1, 1]} : vector<8x384xf32> to vector<8x128xf32>
    %216 = vector.extract_strided_slice %206 {offsets = [0, 128], sizes = [8, 128], strides = [1, 1]} : vector<8x384xf32> to vector<8x128xf32>
    %217 = arith.addf %215, %216 : vector<8x128xf32>
    %218 = arith.negf %217 : vector<8x128xf32>
    %219 = math.exp %218 : vector<8x128xf32>
    %cst_65 = arith.constant 1.000000e+00 : f32
    %220 = vector.broadcast %cst_65 : f32 to vector<8x128xf32>
    %221 = arith.addf %220, %219 : vector<8x128xf32>
    %222 = arith.divf %220, %221 : vector<8x128xf32>
    %223 = vector.extract_strided_slice %204 {offsets = [0, 256], sizes = [8, 128], strides = [1, 1]} : vector<8x384xf32> to vector<8x128xf32>
    %224 = vector.extract_strided_slice %206 {offsets = [0, 256], sizes = [8, 128], strides = [1, 1]} : vector<8x384xf32> to vector<8x128xf32>
    %225 = vector.broadcast %4 : vector<1x128xf32> to vector<8x128xf32>
    %226 = arith.addf %224, %225 : vector<8x128xf32>
    %227 = arith.mulf %214, %226 : vector<8x128xf32>
    %228 = arith.addf %223, %227 : vector<8x128xf32>
    %229 = math.tanh %228 : vector<8x128xf32>
    %230 = arith.subf %200, %229 : vector<8x128xf32>
    %231 = arith.mulf %222, %230 : vector<8x128xf32>
    %232 = arith.addf %229, %231 : vector<8x128xf32>
    %c0_66 = arith.constant 0 : index
    %c0_67 = arith.constant 0 : index
    %233 = vector.load %arg6[%c0_66, %c0_67] : memref<8x128xf32, #tpu.memory_space<vmem>>, vector<8x128xf32>
    tpu.vector_store %arg6[%c0_66, %c0_67], %232 {strides = array<i32>} : memref<8x128xf32, #tpu.memory_space<vmem>>, vector<8x128xf32>,
    %234 = arith.truncf %232 : vector<8x128xf32> to vector<8x128xbf16>
    %235 = arith.index_cast %c5_i32 : i32 to index
    %c0_68 = arith.constant 0 : index
    %c0_69 = arith.constant 0 : index
    %236 = vector.load %arg5[%235, %c0_68, %c0_69] : memref<8x8x128xbf16, #tpu.memory_space<vmem>>, vector<1x8x128xbf16>
    %237 = vector.shape_cast %236 : vector<1x8x128xbf16> to vector<8x128xbf16>
    %238 = vector.shape_cast %234 : vector<8x128xbf16> to vector<1x8x128xbf16>
    tpu.vector_store %arg5[%235, %c0_68, %c0_69], %238 {strides = array<i32>} : memref<8x8x128xbf16, #tpu.memory_space<vmem>>, vector<1x8x128xbf16>,
    %c6_i32 = arith.constant 6 : i32
    %c0_70 = arith.constant 0 : index
    %c0_71 = arith.constant 0 : index
    %239 = vector.load %arg6[%c0_70, %c0_71] : memref<8x128xf32, #tpu.memory_space<vmem>>, vector<8x128xf32>
    %240 = arith.index_cast %c6_i32 : i32 to index
    %c0_72 = arith.constant 0 : index
    %c0_73 = arith.constant 0 : index
    %241 = vector.load %arg2[%240, %c0_72, %c0_73] : memref<8x8x384xbf16, #tpu.memory_space<vmem>>, vector<1x8x384xbf16>
    %242 = vector.shape_cast %241 : vector<1x8x384xbf16> to vector<8x384xbf16>
    %243 = arith.extf %242 : vector<8x384xbf16> to vector<8x384xf32>
    %244 = arith.truncf %239 : vector<8x128xf32> to vector<8x128xbf16>
    %cst_74 = arith.constant dense<0.000000e+00> : vector<8x384xf32>
    %245 = tpu.matmul %244, %3, %cst_74 {dimension_numbers = #tpu.dot_dimension_numbers<[1], [0], [0], [1], [0, 0, 1, 1], [], []>} : vector<8x128xbf16>, vector<128x384xbf16>, vector<8x384xf32> -> vector<8x384xf32>
    %246 = vector.extract_strided_slice %243 {offsets = [0, 0], sizes = [8, 128], strides = [1, 1]} : vector<8x384xf32> to vector<8x128xf32>
    %247 = vector.extract_strided_slice %245 {offsets = [0, 0], sizes = [8, 128], strides = [1, 1]} : vector<8x384xf32> to vector<8x128xf32>
    %248 = arith.addf %246, %247 : vector<8x128xf32>
    %249 = arith.negf %248 : vector<8x128xf32>
    %250 = math.exp %249 : vector<8x128xf32>
    %cst_75 = arith.constant 1.000000e+00 : f32
    %251 = vector.broadcast %cst_75 : f32 to vector<8x128xf32>
    %252 = arith.addf %251, %250 : vector<8x128xf32>
    %253 = arith.divf %251, %252 : vector<8x128xf32>
    %254 = vector.extract_strided_slice %243 {offsets = [0, 128], sizes = [8, 128], strides = [1, 1]} : vector<8x384xf32> to vector<8x128xf32>
    %255 = vector.extract_strided_slice %245 {offsets = [0, 128], sizes = [8, 128], strides = [1, 1]} : vector<8x384xf32> to vector<8x128xf32>
    %256 = arith.addf %254, %255 : vector<8x128xf32>
    %257 = arith.negf %256 : vector<8x128xf32>
    %258 = math.exp %257 : vector<8x128xf32>
    %cst_76 = arith.constant 1.000000e+00 : f32
    %259 = vector.broadcast %cst_76 : f32 to vector<8x128xf32>
    %260 = arith.addf %259, %258 : vector<8x128xf32>
    %261 = arith.divf %259, %260 : vector<8x128xf32>
    %262 = vector.extract_strided_slice %243 {offsets = [0, 256], sizes = [8, 128], strides = [1, 1]} : vector<8x384xf32> to vector<8x128xf32>
    %263 = vector.extract_strided_slice %245 {offsets = [0, 256], sizes = [8, 128], strides = [1, 1]} : vector<8x384xf32> to vector<8x128xf32>
    %264 = vector.broadcast %4 : vector<1x128xf32> to vector<8x128xf32>
    %265 = arith.addf %263, %264 : vector<8x128xf32>
    %266 = arith.mulf %253, %265 : vector<8x128xf32>
    %267 = arith.addf %262, %266 : vector<8x128xf32>
    %268 = math.tanh %267 : vector<8x128xf32>
    %269 = arith.subf %239, %268 : vector<8x128xf32>
    %270 = arith.mulf %261, %269 : vector<8x128xf32>
    %271 = arith.addf %268, %270 : vector<8x128xf32>
    %c0_77 = arith.constant 0 : index
    %c0_78 = arith.constant 0 : index
    %272 = vector.load %arg6[%c0_77, %c0_78] : memref<8x128xf32, #tpu.memory_space<vmem>>, vector<8x128xf32>
    tpu.vector_store %arg6[%c0_77, %c0_78], %271 {strides = array<i32>} : memref<8x128xf32, #tpu.memory_space<vmem>>, vector<8x128xf32>,
    %273 = arith.truncf %271 : vector<8x128xf32> to vector<8x128xbf16>
    %274 = arith.index_cast %c6_i32 : i32 to index
    %c0_79 = arith.constant 0 : index
    %c0_80 = arith.constant 0 : index
    %275 = vector.load %arg5[%274, %c0_79, %c0_80] : memref<8x8x128xbf16, #tpu.memory_space<vmem>>, vector<1x8x128xbf16>
    %276 = vector.shape_cast %275 : vector<1x8x128xbf16> to vector<8x128xbf16>
    %277 = vector.shape_cast %273 : vector<8x128xbf16> to vector<1x8x128xbf16>
    tpu.vector_store %arg5[%274, %c0_79, %c0_80], %277 {strides = array<i32>} : memref<8x8x128xbf16, #tpu.memory_space<vmem>>, vector<1x8x128xbf16>,
    %c7_i32 = arith.constant 7 : i32
    %c0_81 = arith.constant 0 : index
    %c0_82 = arith.constant 0 : index
    %278 = vector.load %arg6[%c0_81, %c0_82] : memref<8x128xf32, #tpu.memory_space<vmem>>, vector<8x128xf32>
    %279 = arith.index_cast %c7_i32 : i32 to index
    %c0_83 = arith.constant 0 : index
    %c0_84 = arith.constant 0 : index
    %280 = vector.load %arg2[%279, %c0_83, %c0_84] : memref<8x8x384xbf16, #tpu.memory_space<vmem>>, vector<1x8x384xbf16>
    %281 = vector.shape_cast %280 : vector<1x8x384xbf16> to vector<8x384xbf16>
    %282 = arith.extf %281 : vector<8x384xbf16> to vector<8x384xf32>
    %283 = arith.truncf %278 : vector<8x128xf32> to vector<8x128xbf16>
    %cst_85 = arith.constant dense<0.000000e+00> : vector<8x384xf32>
    %284 = tpu.matmul %283, %3, %cst_85 {dimension_numbers = #tpu.dot_dimension_numbers<[1], [0], [0], [1], [0, 0, 1, 1], [], []>} : vector<8x128xbf16>, vector<128x384xbf16>, vector<8x384xf32> -> vector<8x384xf32>
    %285 = vector.extract_strided_slice %282 {offsets = [0, 0], sizes = [8, 128], strides = [1, 1]} : vector<8x384xf32> to vector<8x128xf32>
    %286 = vector.extract_strided_slice %284 {offsets = [0, 0], sizes = [8, 128], strides = [1, 1]} : vector<8x384xf32> to vector<8x128xf32>
    %287 = arith.addf %285, %286 : vector<8x128xf32>
    %288 = arith.negf %287 : vector<8x128xf32>
    %289 = math.exp %288 : vector<8x128xf32>
    %cst_86 = arith.constant 1.000000e+00 : f32
    %290 = vector.broadcast %cst_86 : f32 to vector<8x128xf32>
    %291 = arith.addf %290, %289 : vector<8x128xf32>
    %292 = arith.divf %290, %291 : vector<8x128xf32>
    %293 = vector.extract_strided_slice %282 {offsets = [0, 128], sizes = [8, 128], strides = [1, 1]} : vector<8x384xf32> to vector<8x128xf32>
    %294 = vector.extract_strided_slice %284 {offsets = [0, 128], sizes = [8, 128], strides = [1, 1]} : vector<8x384xf32> to vector<8x128xf32>
    %295 = arith.addf %293, %294 : vector<8x128xf32>
    %296 = arith.negf %295 : vector<8x128xf32>
    %297 = math.exp %296 : vector<8x128xf32>
    %cst_87 = arith.constant 1.000000e+00 : f32
    %298 = vector.broadcast %cst_87 : f32 to vector<8x128xf32>
    %299 = arith.addf %298, %297 : vector<8x128xf32>
    %300 = arith.divf %298, %299 : vector<8x128xf32>
    %301 = vector.extract_strided_slice %282 {offsets = [0, 256], sizes = [8, 128], strides = [1, 1]} : vector<8x384xf32> to vector<8x128xf32>
    %302 = vector.extract_strided_slice %284 {offsets = [0, 256], sizes = [8, 128], strides = [1, 1]} : vector<8x384xf32> to vector<8x128xf32>
    %303 = vector.broadcast %4 : vector<1x128xf32> to vector<8x128xf32>
    %304 = arith.addf %302, %303 : vector<8x128xf32>
    %305 = arith.mulf %292, %304 : vector<8x128xf32>
    %306 = arith.addf %301, %305 : vector<8x128xf32>
    %307 = math.tanh %306 : vector<8x128xf32>
    %308 = arith.subf %278, %307 : vector<8x128xf32>
    %309 = arith.mulf %300, %308 : vector<8x128xf32>
    %310 = arith.addf %307, %309 : vector<8x128xf32>
    %c0_88 = arith.constant 0 : index
    %c0_89 = arith.constant 0 : index
    %311 = vector.load %arg6[%c0_88, %c0_89] : memref<8x128xf32, #tpu.memory_space<vmem>>, vector<8x128xf32>
    tpu.vector_store %arg6[%c0_88, %c0_89], %310 {strides = array<i32>} : memref<8x128xf32, #tpu.memory_space<vmem>>, vector<8x128xf32>,
    %312 = arith.truncf %310 : vector<8x128xf32> to vector<8x128xbf16>
    %313 = arith.index_cast %c7_i32 : i32 to index
    %c0_90 = arith.constant 0 : index
    %c0_91 = arith.constant 0 : index
    %314 = vector.load %arg5[%313, %c0_90, %c0_91] : memref<8x8x128xbf16, #tpu.memory_space<vmem>>, vector<1x8x128xbf16>
    %315 = vector.shape_cast %314 : vector<1x8x128xbf16> to vector<8x128xbf16>
    %316 = vector.shape_cast %312 : vector<8x128xbf16> to vector<1x8x128xbf16>
    tpu.vector_store %arg5[%313, %c0_90, %c0_91], %316 {strides = array<i32>} : memref<8x8x128xbf16, #tpu.memory_space<vmem>>, vector<1x8x128xbf16>,
    %c8_i32 = arith.constant 8 : i32
    return
  }
  func.func @transform_0(%arg0: i32, %arg1: i32) -> (i32, i32, i32) {
    %c0_i32 = arith.constant 0 : i32
    %c0_i32_0 = arith.constant 0 : i32
    return %arg1, %arg0, %c0_i32 : i32, i32, i32
  }
  func.func @transform_1(%arg0: i32, %arg1: i32) -> (i32, i32) {
    %c0_i32 = arith.constant 0 : i32
    %c0_i32_0 = arith.constant 0 : i32
    %c0_i32_1 = arith.constant 0 : i32
    return %c0_i32, %c0_i32_0 : i32, i32
  }
  func.func @transform_2(%arg0: i32, %arg1: i32) -> (i32, i32) {
    %c0_i32 = arith.constant 0 : i32
    %c0_i32_0 = arith.constant 0 : i32
    %c0_i32_1 = arith.constant 0 : i32
    return %c0_i32, %c0_i32_0 : i32, i32
  }
  func.func @transform_3(%arg0: i32, %arg1: i32) -> (i32, i32, i32) {
    %c0_i32 = arith.constant 0 : i32
    %c0_i32_0 = arith.constant 0 : i32
    return %arg1, %arg0, %c0_i32 : i32, i32, i32
  }
}

module attributes {stable_mosaic.version = 11 : i64} {
  func.func @gru_last_fc_kernel(%arg0: i32, %arg1: i32, %arg2: memref<8x8x384xbf16, #tpu.memory_space<vmem>>, %arg3: memref<128x384xbf16, #tpu.memory_space<vmem>>, %arg4: memref<1x128xf32, #tpu.memory_space<vmem>>, %arg5: memref<128x128xbf16, #tpu.memory_space<vmem>>, %arg6: memref<1x128xf32, #tpu.memory_space<vmem>>, %arg7: memref<8x128xf32, #tpu.memory_space<vmem>>, %arg8: memref<8x128xf32, #tpu.memory_space<vmem>>) attributes {dimension_semantics = [#tpu.dimension_semantics<parallel>, #tpu.dimension_semantics<arbitrary>], iteration_bounds = array<i64: 1, 1>, scalar_prefetch = 0 : i64, scratch_operands = 1 : i64, tpu.core_type = #tpu.core_type<tc>, window_params = [{transform_indices = @transform_0, window_bounds = array<i64: 8, 8, 384>}, {pipeline_mode = #tpu.pipeline_mode<synchronous>, transform_indices = @transform_1, window_bounds = array<i64: 128, 384>}, {pipeline_mode = #tpu.pipeline_mode<synchronous>, transform_indices = @transform_2, window_bounds = array<i64: 1, 128>}, {pipeline_mode = #tpu.pipeline_mode<synchronous>, transform_indices = @transform_3, window_bounds = array<i64: 128, 128>}, {pipeline_mode = #tpu.pipeline_mode<synchronous>, transform_indices = @transform_4, window_bounds = array<i64: 1, 128>}, {transform_indices = @transform_5, window_bounds = array<i64: 8, 128>}]} {
    %c0_i32 = arith.constant 0 : i32
    %0 = arith.cmpi eq, %arg1, %c0_i32 : i32
    %1 = arith.extui %0 : i1 to i32
    %c0_i32_0 = arith.constant 0 : i32
    %2 = arith.cmpi ne, %1, %c0_i32_0 : i32
    scf.if %2 {
      %cst_78 = arith.constant 0.000000e+00 : f32
      %280 = vector.broadcast %cst_78 : f32 to vector<8x128xf32>
      %c0_79 = arith.constant 0 : index
      %c0_80 = arith.constant 0 : index
      %281 = vector.load %arg8[%c0_79, %c0_80] : memref<8x128xf32, #tpu.memory_space<vmem>>, vector<8x128xf32>
      tpu.vector_store %arg8[%c0_79, %c0_80], %280 {strides = array<i32>} : memref<8x128xf32, #tpu.memory_space<vmem>>, vector<8x128xf32>,
    } else {
    }
    %c0 = arith.constant 0 : index
    %c0_1 = arith.constant 0 : index
    %3 = vector.load %arg3[%c0, %c0_1] : memref<128x384xbf16, #tpu.memory_space<vmem>>, vector<128x384xbf16>
    %c0_2 = arith.constant 0 : index
    %c0_3 = arith.constant 0 : index
    %4 = vector.load %arg4[%c0_2, %c0_3] : memref<1x128xf32, #tpu.memory_space<vmem>>, vector<1x128xf32>
    %c0_i32_4 = arith.constant 0 : i32
    %c0_5 = arith.constant 0 : index
    %c0_6 = arith.constant 0 : index
    %5 = vector.load %arg8[%c0_5, %c0_6] : memref<8x128xf32, #tpu.memory_space<vmem>>, vector<8x128xf32>
    %6 = arith.index_cast %c0_i32_4 : i32 to index
    %c0_7 = arith.constant 0 : index
    %c0_8 = arith.constant 0 : index
    %7 = vector.load %arg2[%6, %c0_7, %c0_8] : memref<8x8x384xbf16, #tpu.memory_space<vmem>>, vector<1x8x384xbf16>
    %8 = vector.shape_cast %7 : vector<1x8x384xbf16> to vector<8x384xbf16>
    %9 = arith.extf %8 : vector<8x384xbf16> to vector<8x384xf32>
    %10 = arith.truncf %5 : vector<8x128xf32> to vector<8x128xbf16>
    %cst = arith.constant dense<0.000000e+00> : vector<8x384xf32>
    %11 = tpu.matmul %10, %3, %cst {dimension_numbers = #tpu.dot_dimension_numbers<[1], [0], [0], [1], [0, 0, 1, 1], [], []>} : vector<8x128xbf16>, vector<128x384xbf16>, vector<8x384xf32> -> vector<8x384xf32>
    %12 = vector.extract_strided_slice %9 {offsets = [0, 0], sizes = [8, 128], strides = [1, 1]} : vector<8x384xf32> to vector<8x128xf32>
    %13 = vector.extract_strided_slice %11 {offsets = [0, 0], sizes = [8, 128], strides = [1, 1]} : vector<8x384xf32> to vector<8x128xf32>
    %14 = arith.addf %12, %13 : vector<8x128xf32>
    %15 = arith.negf %14 : vector<8x128xf32>
    %16 = math.exp %15 : vector<8x128xf32>
    %cst_9 = arith.constant 1.000000e+00 : f32
    %17 = vector.broadcast %cst_9 : f32 to vector<8x128xf32>
    %18 = arith.addf %17, %16 : vector<8x128xf32>
    %19 = arith.divf %17, %18 : vector<8x128xf32>
    %20 = vector.extract_strided_slice %9 {offsets = [0, 128], sizes = [8, 128], strides = [1, 1]} : vector<8x384xf32> to vector<8x128xf32>
    %21 = vector.extract_strided_slice %11 {offsets = [0, 128], sizes = [8, 128], strides = [1, 1]} : vector<8x384xf32> to vector<8x128xf32>
    %22 = arith.addf %20, %21 : vector<8x128xf32>
    %23 = arith.negf %22 : vector<8x128xf32>
    %24 = math.exp %23 : vector<8x128xf32>
    %cst_10 = arith.constant 1.000000e+00 : f32
    %25 = vector.broadcast %cst_10 : f32 to vector<8x128xf32>
    %26 = arith.addf %25, %24 : vector<8x128xf32>
    %27 = arith.divf %25, %26 : vector<8x128xf32>
    %28 = vector.extract_strided_slice %9 {offsets = [0, 256], sizes = [8, 128], strides = [1, 1]} : vector<8x384xf32> to vector<8x128xf32>
    %29 = vector.extract_strided_slice %11 {offsets = [0, 256], sizes = [8, 128], strides = [1, 1]} : vector<8x384xf32> to vector<8x128xf32>
    %30 = vector.broadcast %4 : vector<1x128xf32> to vector<8x128xf32>
    %31 = arith.addf %29, %30 : vector<8x128xf32>
    %32 = arith.mulf %19, %31 : vector<8x128xf32>
    %33 = arith.addf %28, %32 : vector<8x128xf32>
    %34 = math.tanh %33 : vector<8x128xf32>
    %35 = arith.subf %5, %34 : vector<8x128xf32>
    %36 = arith.mulf %27, %35 : vector<8x128xf32>
    %37 = arith.addf %34, %36 : vector<8x128xf32>
    %c0_11 = arith.constant 0 : index
    %c0_12 = arith.constant 0 : index
    %38 = vector.load %arg8[%c0_11, %c0_12] : memref<8x128xf32, #tpu.memory_space<vmem>>, vector<8x128xf32>
    tpu.vector_store %arg8[%c0_11, %c0_12], %37 {strides = array<i32>} : memref<8x128xf32, #tpu.memory_space<vmem>>, vector<8x128xf32>,
    %c1_i32 = arith.constant 1 : i32
    %c0_13 = arith.constant 0 : index
    %c0_14 = arith.constant 0 : index
    %39 = vector.load %arg8[%c0_13, %c0_14] : memref<8x128xf32, #tpu.memory_space<vmem>>, vector<8x128xf32>
    %40 = arith.index_cast %c1_i32 : i32 to index
    %c0_15 = arith.constant 0 : index
    %c0_16 = arith.constant 0 : index
    %41 = vector.load %arg2[%40, %c0_15, %c0_16] : memref<8x8x384xbf16, #tpu.memory_space<vmem>>, vector<1x8x384xbf16>
    %42 = vector.shape_cast %41 : vector<1x8x384xbf16> to vector<8x384xbf16>
    %43 = arith.extf %42 : vector<8x384xbf16> to vector<8x384xf32>
    %44 = arith.truncf %39 : vector<8x128xf32> to vector<8x128xbf16>
    %cst_17 = arith.constant dense<0.000000e+00> : vector<8x384xf32>
    %45 = tpu.matmul %44, %3, %cst_17 {dimension_numbers = #tpu.dot_dimension_numbers<[1], [0], [0], [1], [0, 0, 1, 1], [], []>} : vector<8x128xbf16>, vector<128x384xbf16>, vector<8x384xf32> -> vector<8x384xf32>
    %46 = vector.extract_strided_slice %43 {offsets = [0, 0], sizes = [8, 128], strides = [1, 1]} : vector<8x384xf32> to vector<8x128xf32>
    %47 = vector.extract_strided_slice %45 {offsets = [0, 0], sizes = [8, 128], strides = [1, 1]} : vector<8x384xf32> to vector<8x128xf32>
    %48 = arith.addf %46, %47 : vector<8x128xf32>
    %49 = arith.negf %48 : vector<8x128xf32>
    %50 = math.exp %49 : vector<8x128xf32>
    %cst_18 = arith.constant 1.000000e+00 : f32
    %51 = vector.broadcast %cst_18 : f32 to vector<8x128xf32>
    %52 = arith.addf %51, %50 : vector<8x128xf32>
    %53 = arith.divf %51, %52 : vector<8x128xf32>
    %54 = vector.extract_strided_slice %43 {offsets = [0, 128], sizes = [8, 128], strides = [1, 1]} : vector<8x384xf32> to vector<8x128xf32>
    %55 = vector.extract_strided_slice %45 {offsets = [0, 128], sizes = [8, 128], strides = [1, 1]} : vector<8x384xf32> to vector<8x128xf32>
    %56 = arith.addf %54, %55 : vector<8x128xf32>
    %57 = arith.negf %56 : vector<8x128xf32>
    %58 = math.exp %57 : vector<8x128xf32>
    %cst_19 = arith.constant 1.000000e+00 : f32
    %59 = vector.broadcast %cst_19 : f32 to vector<8x128xf32>
    %60 = arith.addf %59, %58 : vector<8x128xf32>
    %61 = arith.divf %59, %60 : vector<8x128xf32>
    %62 = vector.extract_strided_slice %43 {offsets = [0, 256], sizes = [8, 128], strides = [1, 1]} : vector<8x384xf32> to vector<8x128xf32>
    %63 = vector.extract_strided_slice %45 {offsets = [0, 256], sizes = [8, 128], strides = [1, 1]} : vector<8x384xf32> to vector<8x128xf32>
    %64 = vector.broadcast %4 : vector<1x128xf32> to vector<8x128xf32>
    %65 = arith.addf %63, %64 : vector<8x128xf32>
    %66 = arith.mulf %53, %65 : vector<8x128xf32>
    %67 = arith.addf %62, %66 : vector<8x128xf32>
    %68 = math.tanh %67 : vector<8x128xf32>
    %69 = arith.subf %39, %68 : vector<8x128xf32>
    %70 = arith.mulf %61, %69 : vector<8x128xf32>
    %71 = arith.addf %68, %70 : vector<8x128xf32>
    %c0_20 = arith.constant 0 : index
    %c0_21 = arith.constant 0 : index
    %72 = vector.load %arg8[%c0_20, %c0_21] : memref<8x128xf32, #tpu.memory_space<vmem>>, vector<8x128xf32>
    tpu.vector_store %arg8[%c0_20, %c0_21], %71 {strides = array<i32>} : memref<8x128xf32, #tpu.memory_space<vmem>>, vector<8x128xf32>,
    %c2_i32 = arith.constant 2 : i32
    %c0_22 = arith.constant 0 : index
    %c0_23 = arith.constant 0 : index
    %73 = vector.load %arg8[%c0_22, %c0_23] : memref<8x128xf32, #tpu.memory_space<vmem>>, vector<8x128xf32>
    %74 = arith.index_cast %c2_i32 : i32 to index
    %c0_24 = arith.constant 0 : index
    %c0_25 = arith.constant 0 : index
    %75 = vector.load %arg2[%74, %c0_24, %c0_25] : memref<8x8x384xbf16, #tpu.memory_space<vmem>>, vector<1x8x384xbf16>
    %76 = vector.shape_cast %75 : vector<1x8x384xbf16> to vector<8x384xbf16>
    %77 = arith.extf %76 : vector<8x384xbf16> to vector<8x384xf32>
    %78 = arith.truncf %73 : vector<8x128xf32> to vector<8x128xbf16>
    %cst_26 = arith.constant dense<0.000000e+00> : vector<8x384xf32>
    %79 = tpu.matmul %78, %3, %cst_26 {dimension_numbers = #tpu.dot_dimension_numbers<[1], [0], [0], [1], [0, 0, 1, 1], [], []>} : vector<8x128xbf16>, vector<128x384xbf16>, vector<8x384xf32> -> vector<8x384xf32>
    %80 = vector.extract_strided_slice %77 {offsets = [0, 0], sizes = [8, 128], strides = [1, 1]} : vector<8x384xf32> to vector<8x128xf32>
    %81 = vector.extract_strided_slice %79 {offsets = [0, 0], sizes = [8, 128], strides = [1, 1]} : vector<8x384xf32> to vector<8x128xf32>
    %82 = arith.addf %80, %81 : vector<8x128xf32>
    %83 = arith.negf %82 : vector<8x128xf32>
    %84 = math.exp %83 : vector<8x128xf32>
    %cst_27 = arith.constant 1.000000e+00 : f32
    %85 = vector.broadcast %cst_27 : f32 to vector<8x128xf32>
    %86 = arith.addf %85, %84 : vector<8x128xf32>
    %87 = arith.divf %85, %86 : vector<8x128xf32>
    %88 = vector.extract_strided_slice %77 {offsets = [0, 128], sizes = [8, 128], strides = [1, 1]} : vector<8x384xf32> to vector<8x128xf32>
    %89 = vector.extract_strided_slice %79 {offsets = [0, 128], sizes = [8, 128], strides = [1, 1]} : vector<8x384xf32> to vector<8x128xf32>
    %90 = arith.addf %88, %89 : vector<8x128xf32>
    %91 = arith.negf %90 : vector<8x128xf32>
    %92 = math.exp %91 : vector<8x128xf32>
    %cst_28 = arith.constant 1.000000e+00 : f32
    %93 = vector.broadcast %cst_28 : f32 to vector<8x128xf32>
    %94 = arith.addf %93, %92 : vector<8x128xf32>
    %95 = arith.divf %93, %94 : vector<8x128xf32>
    %96 = vector.extract_strided_slice %77 {offsets = [0, 256], sizes = [8, 128], strides = [1, 1]} : vector<8x384xf32> to vector<8x128xf32>
    %97 = vector.extract_strided_slice %79 {offsets = [0, 256], sizes = [8, 128], strides = [1, 1]} : vector<8x384xf32> to vector<8x128xf32>
    %98 = vector.broadcast %4 : vector<1x128xf32> to vector<8x128xf32>
    %99 = arith.addf %97, %98 : vector<8x128xf32>
    %100 = arith.mulf %87, %99 : vector<8x128xf32>
    %101 = arith.addf %96, %100 : vector<8x128xf32>
    %102 = math.tanh %101 : vector<8x128xf32>
    %103 = arith.subf %73, %102 : vector<8x128xf32>
    %104 = arith.mulf %95, %103 : vector<8x128xf32>
    %105 = arith.addf %102, %104 : vector<8x128xf32>
    %c0_29 = arith.constant 0 : index
    %c0_30 = arith.constant 0 : index
    %106 = vector.load %arg8[%c0_29, %c0_30] : memref<8x128xf32, #tpu.memory_space<vmem>>, vector<8x128xf32>
    tpu.vector_store %arg8[%c0_29, %c0_30], %105 {strides = array<i32>} : memref<8x128xf32, #tpu.memory_space<vmem>>, vector<8x128xf32>,
    %c3_i32 = arith.constant 3 : i32
    %c0_31 = arith.constant 0 : index
    %c0_32 = arith.constant 0 : index
    %107 = vector.load %arg8[%c0_31, %c0_32] : memref<8x128xf32, #tpu.memory_space<vmem>>, vector<8x128xf32>
    %108 = arith.index_cast %c3_i32 : i32 to index
    %c0_33 = arith.constant 0 : index
    %c0_34 = arith.constant 0 : index
    %109 = vector.load %arg2[%108, %c0_33, %c0_34] : memref<8x8x384xbf16, #tpu.memory_space<vmem>>, vector<1x8x384xbf16>
    %110 = vector.shape_cast %109 : vector<1x8x384xbf16> to vector<8x384xbf16>
    %111 = arith.extf %110 : vector<8x384xbf16> to vector<8x384xf32>
    %112 = arith.truncf %107 : vector<8x128xf32> to vector<8x128xbf16>
    %cst_35 = arith.constant dense<0.000000e+00> : vector<8x384xf32>
    %113 = tpu.matmul %112, %3, %cst_35 {dimension_numbers = #tpu.dot_dimension_numbers<[1], [0], [0], [1], [0, 0, 1, 1], [], []>} : vector<8x128xbf16>, vector<128x384xbf16>, vector<8x384xf32> -> vector<8x384xf32>
    %114 = vector.extract_strided_slice %111 {offsets = [0, 0], sizes = [8, 128], strides = [1, 1]} : vector<8x384xf32> to vector<8x128xf32>
    %115 = vector.extract_strided_slice %113 {offsets = [0, 0], sizes = [8, 128], strides = [1, 1]} : vector<8x384xf32> to vector<8x128xf32>
    %116 = arith.addf %114, %115 : vector<8x128xf32>
    %117 = arith.negf %116 : vector<8x128xf32>
    %118 = math.exp %117 : vector<8x128xf32>
    %cst_36 = arith.constant 1.000000e+00 : f32
    %119 = vector.broadcast %cst_36 : f32 to vector<8x128xf32>
    %120 = arith.addf %119, %118 : vector<8x128xf32>
    %121 = arith.divf %119, %120 : vector<8x128xf32>
    %122 = vector.extract_strided_slice %111 {offsets = [0, 128], sizes = [8, 128], strides = [1, 1]} : vector<8x384xf32> to vector<8x128xf32>
    %123 = vector.extract_strided_slice %113 {offsets = [0, 128], sizes = [8, 128], strides = [1, 1]} : vector<8x384xf32> to vector<8x128xf32>
    %124 = arith.addf %122, %123 : vector<8x128xf32>
    %125 = arith.negf %124 : vector<8x128xf32>
    %126 = math.exp %125 : vector<8x128xf32>
    %cst_37 = arith.constant 1.000000e+00 : f32
    %127 = vector.broadcast %cst_37 : f32 to vector<8x128xf32>
    %128 = arith.addf %127, %126 : vector<8x128xf32>
    %129 = arith.divf %127, %128 : vector<8x128xf32>
    %130 = vector.extract_strided_slice %111 {offsets = [0, 256], sizes = [8, 128], strides = [1, 1]} : vector<8x384xf32> to vector<8x128xf32>
    %131 = vector.extract_strided_slice %113 {offsets = [0, 256], sizes = [8, 128], strides = [1, 1]} : vector<8x384xf32> to vector<8x128xf32>
    %132 = vector.broadcast %4 : vector<1x128xf32> to vector<8x128xf32>
    %133 = arith.addf %131, %132 : vector<8x128xf32>
    %134 = arith.mulf %121, %133 : vector<8x128xf32>
    %135 = arith.addf %130, %134 : vector<8x128xf32>
    %136 = math.tanh %135 : vector<8x128xf32>
    %137 = arith.subf %107, %136 : vector<8x128xf32>
    %138 = arith.mulf %129, %137 : vector<8x128xf32>
    %139 = arith.addf %136, %138 : vector<8x128xf32>
    %c0_38 = arith.constant 0 : index
    %c0_39 = arith.constant 0 : index
    %140 = vector.load %arg8[%c0_38, %c0_39] : memref<8x128xf32, #tpu.memory_space<vmem>>, vector<8x128xf32>
    tpu.vector_store %arg8[%c0_38, %c0_39], %139 {strides = array<i32>} : memref<8x128xf32, #tpu.memory_space<vmem>>, vector<8x128xf32>,
    %c4_i32 = arith.constant 4 : i32
    %c0_40 = arith.constant 0 : index
    %c0_41 = arith.constant 0 : index
    %141 = vector.load %arg8[%c0_40, %c0_41] : memref<8x128xf32, #tpu.memory_space<vmem>>, vector<8x128xf32>
    %142 = arith.index_cast %c4_i32 : i32 to index
    %c0_42 = arith.constant 0 : index
    %c0_43 = arith.constant 0 : index
    %143 = vector.load %arg2[%142, %c0_42, %c0_43] : memref<8x8x384xbf16, #tpu.memory_space<vmem>>, vector<1x8x384xbf16>
    %144 = vector.shape_cast %143 : vector<1x8x384xbf16> to vector<8x384xbf16>
    %145 = arith.extf %144 : vector<8x384xbf16> to vector<8x384xf32>
    %146 = arith.truncf %141 : vector<8x128xf32> to vector<8x128xbf16>
    %cst_44 = arith.constant dense<0.000000e+00> : vector<8x384xf32>
    %147 = tpu.matmul %146, %3, %cst_44 {dimension_numbers = #tpu.dot_dimension_numbers<[1], [0], [0], [1], [0, 0, 1, 1], [], []>} : vector<8x128xbf16>, vector<128x384xbf16>, vector<8x384xf32> -> vector<8x384xf32>
    %148 = vector.extract_strided_slice %145 {offsets = [0, 0], sizes = [8, 128], strides = [1, 1]} : vector<8x384xf32> to vector<8x128xf32>
    %149 = vector.extract_strided_slice %147 {offsets = [0, 0], sizes = [8, 128], strides = [1, 1]} : vector<8x384xf32> to vector<8x128xf32>
    %150 = arith.addf %148, %149 : vector<8x128xf32>
    %151 = arith.negf %150 : vector<8x128xf32>
    %152 = math.exp %151 : vector<8x128xf32>
    %cst_45 = arith.constant 1.000000e+00 : f32
    %153 = vector.broadcast %cst_45 : f32 to vector<8x128xf32>
    %154 = arith.addf %153, %152 : vector<8x128xf32>
    %155 = arith.divf %153, %154 : vector<8x128xf32>
    %156 = vector.extract_strided_slice %145 {offsets = [0, 128], sizes = [8, 128], strides = [1, 1]} : vector<8x384xf32> to vector<8x128xf32>
    %157 = vector.extract_strided_slice %147 {offsets = [0, 128], sizes = [8, 128], strides = [1, 1]} : vector<8x384xf32> to vector<8x128xf32>
    %158 = arith.addf %156, %157 : vector<8x128xf32>
    %159 = arith.negf %158 : vector<8x128xf32>
    %160 = math.exp %159 : vector<8x128xf32>
    %cst_46 = arith.constant 1.000000e+00 : f32
    %161 = vector.broadcast %cst_46 : f32 to vector<8x128xf32>
    %162 = arith.addf %161, %160 : vector<8x128xf32>
    %163 = arith.divf %161, %162 : vector<8x128xf32>
    %164 = vector.extract_strided_slice %145 {offsets = [0, 256], sizes = [8, 128], strides = [1, 1]} : vector<8x384xf32> to vector<8x128xf32>
    %165 = vector.extract_strided_slice %147 {offsets = [0, 256], sizes = [8, 128], strides = [1, 1]} : vector<8x384xf32> to vector<8x128xf32>
    %166 = vector.broadcast %4 : vector<1x128xf32> to vector<8x128xf32>
    %167 = arith.addf %165, %166 : vector<8x128xf32>
    %168 = arith.mulf %155, %167 : vector<8x128xf32>
    %169 = arith.addf %164, %168 : vector<8x128xf32>
    %170 = math.tanh %169 : vector<8x128xf32>
    %171 = arith.subf %141, %170 : vector<8x128xf32>
    %172 = arith.mulf %163, %171 : vector<8x128xf32>
    %173 = arith.addf %170, %172 : vector<8x128xf32>
    %c0_47 = arith.constant 0 : index
    %c0_48 = arith.constant 0 : index
    %174 = vector.load %arg8[%c0_47, %c0_48] : memref<8x128xf32, #tpu.memory_space<vmem>>, vector<8x128xf32>
    tpu.vector_store %arg8[%c0_47, %c0_48], %173 {strides = array<i32>} : memref<8x128xf32, #tpu.memory_space<vmem>>, vector<8x128xf32>,
    %c5_i32 = arith.constant 5 : i32
    %c0_49 = arith.constant 0 : index
    %c0_50 = arith.constant 0 : index
    %175 = vector.load %arg8[%c0_49, %c0_50] : memref<8x128xf32, #tpu.memory_space<vmem>>, vector<8x128xf32>
    %176 = arith.index_cast %c5_i32 : i32 to index
    %c0_51 = arith.constant 0 : index
    %c0_52 = arith.constant 0 : index
    %177 = vector.load %arg2[%176, %c0_51, %c0_52] : memref<8x8x384xbf16, #tpu.memory_space<vmem>>, vector<1x8x384xbf16>
    %178 = vector.shape_cast %177 : vector<1x8x384xbf16> to vector<8x384xbf16>
    %179 = arith.extf %178 : vector<8x384xbf16> to vector<8x384xf32>
    %180 = arith.truncf %175 : vector<8x128xf32> to vector<8x128xbf16>
    %cst_53 = arith.constant dense<0.000000e+00> : vector<8x384xf32>
    %181 = tpu.matmul %180, %3, %cst_53 {dimension_numbers = #tpu.dot_dimension_numbers<[1], [0], [0], [1], [0, 0, 1, 1], [], []>} : vector<8x128xbf16>, vector<128x384xbf16>, vector<8x384xf32> -> vector<8x384xf32>
    %182 = vector.extract_strided_slice %179 {offsets = [0, 0], sizes = [8, 128], strides = [1, 1]} : vector<8x384xf32> to vector<8x128xf32>
    %183 = vector.extract_strided_slice %181 {offsets = [0, 0], sizes = [8, 128], strides = [1, 1]} : vector<8x384xf32> to vector<8x128xf32>
    %184 = arith.addf %182, %183 : vector<8x128xf32>
    %185 = arith.negf %184 : vector<8x128xf32>
    %186 = math.exp %185 : vector<8x128xf32>
    %cst_54 = arith.constant 1.000000e+00 : f32
    %187 = vector.broadcast %cst_54 : f32 to vector<8x128xf32>
    %188 = arith.addf %187, %186 : vector<8x128xf32>
    %189 = arith.divf %187, %188 : vector<8x128xf32>
    %190 = vector.extract_strided_slice %179 {offsets = [0, 128], sizes = [8, 128], strides = [1, 1]} : vector<8x384xf32> to vector<8x128xf32>
    %191 = vector.extract_strided_slice %181 {offsets = [0, 128], sizes = [8, 128], strides = [1, 1]} : vector<8x384xf32> to vector<8x128xf32>
    %192 = arith.addf %190, %191 : vector<8x128xf32>
    %193 = arith.negf %192 : vector<8x128xf32>
    %194 = math.exp %193 : vector<8x128xf32>
    %cst_55 = arith.constant 1.000000e+00 : f32
    %195 = vector.broadcast %cst_55 : f32 to vector<8x128xf32>
    %196 = arith.addf %195, %194 : vector<8x128xf32>
    %197 = arith.divf %195, %196 : vector<8x128xf32>
    %198 = vector.extract_strided_slice %179 {offsets = [0, 256], sizes = [8, 128], strides = [1, 1]} : vector<8x384xf32> to vector<8x128xf32>
    %199 = vector.extract_strided_slice %181 {offsets = [0, 256], sizes = [8, 128], strides = [1, 1]} : vector<8x384xf32> to vector<8x128xf32>
    %200 = vector.broadcast %4 : vector<1x128xf32> to vector<8x128xf32>
    %201 = arith.addf %199, %200 : vector<8x128xf32>
    %202 = arith.mulf %189, %201 : vector<8x128xf32>
    %203 = arith.addf %198, %202 : vector<8x128xf32>
    %204 = math.tanh %203 : vector<8x128xf32>
    %205 = arith.subf %175, %204 : vector<8x128xf32>
    %206 = arith.mulf %197, %205 : vector<8x128xf32>
    %207 = arith.addf %204, %206 : vector<8x128xf32>
    %c0_56 = arith.constant 0 : index
    %c0_57 = arith.constant 0 : index
    %208 = vector.load %arg8[%c0_56, %c0_57] : memref<8x128xf32, #tpu.memory_space<vmem>>, vector<8x128xf32>
    tpu.vector_store %arg8[%c0_56, %c0_57], %207 {strides = array<i32>} : memref<8x128xf32, #tpu.memory_space<vmem>>, vector<8x128xf32>,
    %c6_i32 = arith.constant 6 : i32
    %c0_58 = arith.constant 0 : index
    %c0_59 = arith.constant 0 : index
    %209 = vector.load %arg8[%c0_58, %c0_59] : memref<8x128xf32, #tpu.memory_space<vmem>>, vector<8x128xf32>
    %210 = arith.index_cast %c6_i32 : i32 to index
    %c0_60 = arith.constant 0 : index
    %c0_61 = arith.constant 0 : index
    %211 = vector.load %arg2[%210, %c0_60, %c0_61] : memref<8x8x384xbf16, #tpu.memory_space<vmem>>, vector<1x8x384xbf16>
    %212 = vector.shape_cast %211 : vector<1x8x384xbf16> to vector<8x384xbf16>
    %213 = arith.extf %212 : vector<8x384xbf16> to vector<8x384xf32>
    %214 = arith.truncf %209 : vector<8x128xf32> to vector<8x128xbf16>
    %cst_62 = arith.constant dense<0.000000e+00> : vector<8x384xf32>
    %215 = tpu.matmul %214, %3, %cst_62 {dimension_numbers = #tpu.dot_dimension_numbers<[1], [0], [0], [1], [0, 0, 1, 1], [], []>} : vector<8x128xbf16>, vector<128x384xbf16>, vector<8x384xf32> -> vector<8x384xf32>
    %216 = vector.extract_strided_slice %213 {offsets = [0, 0], sizes = [8, 128], strides = [1, 1]} : vector<8x384xf32> to vector<8x128xf32>
    %217 = vector.extract_strided_slice %215 {offsets = [0, 0], sizes = [8, 128], strides = [1, 1]} : vector<8x384xf32> to vector<8x128xf32>
    %218 = arith.addf %216, %217 : vector<8x128xf32>
    %219 = arith.negf %218 : vector<8x128xf32>
    %220 = math.exp %219 : vector<8x128xf32>
    %cst_63 = arith.constant 1.000000e+00 : f32
    %221 = vector.broadcast %cst_63 : f32 to vector<8x128xf32>
    %222 = arith.addf %221, %220 : vector<8x128xf32>
    %223 = arith.divf %221, %222 : vector<8x128xf32>
    %224 = vector.extract_strided_slice %213 {offsets = [0, 128], sizes = [8, 128], strides = [1, 1]} : vector<8x384xf32> to vector<8x128xf32>
    %225 = vector.extract_strided_slice %215 {offsets = [0, 128], sizes = [8, 128], strides = [1, 1]} : vector<8x384xf32> to vector<8x128xf32>
    %226 = arith.addf %224, %225 : vector<8x128xf32>
    %227 = arith.negf %226 : vector<8x128xf32>
    %228 = math.exp %227 : vector<8x128xf32>
    %cst_64 = arith.constant 1.000000e+00 : f32
    %229 = vector.broadcast %cst_64 : f32 to vector<8x128xf32>
    %230 = arith.addf %229, %228 : vector<8x128xf32>
    %231 = arith.divf %229, %230 : vector<8x128xf32>
    %232 = vector.extract_strided_slice %213 {offsets = [0, 256], sizes = [8, 128], strides = [1, 1]} : vector<8x384xf32> to vector<8x128xf32>
    %233 = vector.extract_strided_slice %215 {offsets = [0, 256], sizes = [8, 128], strides = [1, 1]} : vector<8x384xf32> to vector<8x128xf32>
    %234 = vector.broadcast %4 : vector<1x128xf32> to vector<8x128xf32>
    %235 = arith.addf %233, %234 : vector<8x128xf32>
    %236 = arith.mulf %223, %235 : vector<8x128xf32>
    %237 = arith.addf %232, %236 : vector<8x128xf32>
    %238 = math.tanh %237 : vector<8x128xf32>
    %239 = arith.subf %209, %238 : vector<8x128xf32>
    %240 = arith.mulf %231, %239 : vector<8x128xf32>
    %241 = arith.addf %238, %240 : vector<8x128xf32>
    %c0_65 = arith.constant 0 : index
    %c0_66 = arith.constant 0 : index
    %242 = vector.load %arg8[%c0_65, %c0_66] : memref<8x128xf32, #tpu.memory_space<vmem>>, vector<8x128xf32>
    tpu.vector_store %arg8[%c0_65, %c0_66], %241 {strides = array<i32>} : memref<8x128xf32, #tpu.memory_space<vmem>>, vector<8x128xf32>,
    %c7_i32 = arith.constant 7 : i32
    %c0_67 = arith.constant 0 : index
    %c0_68 = arith.constant 0 : index
    %243 = vector.load %arg8[%c0_67, %c0_68] : memref<8x128xf32, #tpu.memory_space<vmem>>, vector<8x128xf32>
    %244 = arith.index_cast %c7_i32 : i32 to index
    %c0_69 = arith.constant 0 : index
    %c0_70 = arith.constant 0 : index
    %245 = vector.load %arg2[%244, %c0_69, %c0_70] : memref<8x8x384xbf16, #tpu.memory_space<vmem>>, vector<1x8x384xbf16>
    %246 = vector.shape_cast %245 : vector<1x8x384xbf16> to vector<8x384xbf16>
    %247 = arith.extf %246 : vector<8x384xbf16> to vector<8x384xf32>
    %248 = arith.truncf %243 : vector<8x128xf32> to vector<8x128xbf16>
    %cst_71 = arith.constant dense<0.000000e+00> : vector<8x384xf32>
    %249 = tpu.matmul %248, %3, %cst_71 {dimension_numbers = #tpu.dot_dimension_numbers<[1], [0], [0], [1], [0, 0, 1, 1], [], []>} : vector<8x128xbf16>, vector<128x384xbf16>, vector<8x384xf32> -> vector<8x384xf32>
    %250 = vector.extract_strided_slice %247 {offsets = [0, 0], sizes = [8, 128], strides = [1, 1]} : vector<8x384xf32> to vector<8x128xf32>
    %251 = vector.extract_strided_slice %249 {offsets = [0, 0], sizes = [8, 128], strides = [1, 1]} : vector<8x384xf32> to vector<8x128xf32>
    %252 = arith.addf %250, %251 : vector<8x128xf32>
    %253 = arith.negf %252 : vector<8x128xf32>
    %254 = math.exp %253 : vector<8x128xf32>
    %cst_72 = arith.constant 1.000000e+00 : f32
    %255 = vector.broadcast %cst_72 : f32 to vector<8x128xf32>
    %256 = arith.addf %255, %254 : vector<8x128xf32>
    %257 = arith.divf %255, %256 : vector<8x128xf32>
    %258 = vector.extract_strided_slice %247 {offsets = [0, 128], sizes = [8, 128], strides = [1, 1]} : vector<8x384xf32> to vector<8x128xf32>
    %259 = vector.extract_strided_slice %249 {offsets = [0, 128], sizes = [8, 128], strides = [1, 1]} : vector<8x384xf32> to vector<8x128xf32>
    %260 = arith.addf %258, %259 : vector<8x128xf32>
    %261 = arith.negf %260 : vector<8x128xf32>
    %262 = math.exp %261 : vector<8x128xf32>
    %cst_73 = arith.constant 1.000000e+00 : f32
    %263 = vector.broadcast %cst_73 : f32 to vector<8x128xf32>
    %264 = arith.addf %263, %262 : vector<8x128xf32>
    %265 = arith.divf %263, %264 : vector<8x128xf32>
    %266 = vector.extract_strided_slice %247 {offsets = [0, 256], sizes = [8, 128], strides = [1, 1]} : vector<8x384xf32> to vector<8x128xf32>
    %267 = vector.extract_strided_slice %249 {offsets = [0, 256], sizes = [8, 128], strides = [1, 1]} : vector<8x384xf32> to vector<8x128xf32>
    %268 = vector.broadcast %4 : vector<1x128xf32> to vector<8x128xf32>
    %269 = arith.addf %267, %268 : vector<8x128xf32>
    %270 = arith.mulf %257, %269 : vector<8x128xf32>
    %271 = arith.addf %266, %270 : vector<8x128xf32>
    %272 = math.tanh %271 : vector<8x128xf32>
    %273 = arith.subf %243, %272 : vector<8x128xf32>
    %274 = arith.mulf %265, %273 : vector<8x128xf32>
    %275 = arith.addf %272, %274 : vector<8x128xf32>
    %c0_74 = arith.constant 0 : index
    %c0_75 = arith.constant 0 : index
    %276 = vector.load %arg8[%c0_74, %c0_75] : memref<8x128xf32, #tpu.memory_space<vmem>>, vector<8x128xf32>
    tpu.vector_store %arg8[%c0_74, %c0_75], %275 {strides = array<i32>} : memref<8x128xf32, #tpu.memory_space<vmem>>, vector<8x128xf32>,
    %c8_i32 = arith.constant 8 : i32
    %c0_i32_76 = arith.constant 0 : i32
    %277 = arith.cmpi eq, %arg1, %c0_i32_76 : i32
    %278 = arith.extui %277 : i1 to i32
    %c0_i32_77 = arith.constant 0 : i32
    %279 = arith.cmpi ne, %278, %c0_i32_77 : i32
    scf.if %279 {
      %c0_78 = arith.constant 0 : index
      %c0_79 = arith.constant 0 : index
      %280 = vector.load %arg8[%c0_78, %c0_79] : memref<8x128xf32, #tpu.memory_space<vmem>>, vector<8x128xf32>
      %281 = arith.truncf %280 : vector<8x128xf32> to vector<8x128xbf16>
      %c0_80 = arith.constant 0 : index
      %c0_81 = arith.constant 0 : index
      %282 = vector.load %arg5[%c0_80, %c0_81] : memref<128x128xbf16, #tpu.memory_space<vmem>>, vector<128x128xbf16>
      %cst_82 = arith.constant dense<0.000000e+00> : vector<8x128xf32>
      %283 = tpu.matmul %281, %282, %cst_82 {dimension_numbers = #tpu.dot_dimension_numbers<[1], [0], [0], [1], [0, 0, 1, 1], [], []>} : vector<8x128xbf16>, vector<128x128xbf16>, vector<8x128xf32> -> vector<8x128xf32>
      %c0_83 = arith.constant 0 : index
      %c0_84 = arith.constant 0 : index
      %284 = vector.load %arg6[%c0_83, %c0_84] : memref<1x128xf32, #tpu.memory_space<vmem>>, vector<1x128xf32>
      %285 = vector.broadcast %284 : vector<1x128xf32> to vector<8x128xf32>
      %286 = arith.addf %283, %285 : vector<8x128xf32>
      %c0_85 = arith.constant 0 : index
      %c0_86 = arith.constant 0 : index
      %287 = vector.load %arg7[%c0_85, %c0_86] : memref<8x128xf32, #tpu.memory_space<vmem>>, vector<8x128xf32>
      tpu.vector_store %arg7[%c0_85, %c0_86], %286 {strides = array<i32>} : memref<8x128xf32, #tpu.memory_space<vmem>>, vector<8x128xf32>,
    } else {
    }
    return
  }
  func.func @transform_0(%arg0: i32, %arg1: i32) -> (i32, i32, i32) {
    %c0_i32 = arith.constant 0 : i32
    %c0_i32_0 = arith.constant 0 : i32
    return %arg1, %arg0, %c0_i32 : i32, i32, i32
  }
  func.func @transform_1(%arg0: i32, %arg1: i32) -> (i32, i32) {
    %c0_i32 = arith.constant 0 : i32
    %c0_i32_0 = arith.constant 0 : i32
    %c0_i32_1 = arith.constant 0 : i32
    return %c0_i32, %c0_i32_0 : i32, i32
  }
  func.func @transform_2(%arg0: i32, %arg1: i32) -> (i32, i32) {
    %c0_i32 = arith.constant 0 : i32
    %c0_i32_0 = arith.constant 0 : i32
    %c0_i32_1 = arith.constant 0 : i32
    return %c0_i32, %c0_i32_0 : i32, i32
  }
  func.func @transform_3(%arg0: i32, %arg1: i32) -> (i32, i32) {
    %c0_i32 = arith.constant 0 : i32
    %c0_i32_0 = arith.constant 0 : i32
    %c0_i32_1 = arith.constant 0 : i32
    return %c0_i32, %c0_i32_0 : i32, i32
  }
  func.func @transform_4(%arg0: i32, %arg1: i32) -> (i32, i32) {
    %c0_i32 = arith.constant 0 : i32
    %c0_i32_0 = arith.constant 0 : i32
    %c0_i32_1 = arith.constant 0 : i32
    return %c0_i32, %c0_i32_0 : i32, i32
  }
  func.func @transform_5(%arg0: i32, %arg1: i32) -> (i32, i32) {
    %c0_i32 = arith.constant 0 : i32
    %c0_i32_0 = arith.constant 0 : i32
    return %arg0, %c0_i32 : i32, i32
  }
}

</mosaic_0001>

<bundles_post_ra>
// kernel: tpu_custom_call.1
= control target key start
LH: loop header
LB: loop body
LE: loop exit
PB: predicated region body
PF: predicated region fallthrough
CT: control target
= control target key end

     0   :  { %6 = vsyncpa [#allocation3], 0  ;;  %s444_s0 = inlined_call_operand.hbm [shape: f32[8,128], index: 0, kind: input, shape index: {}]   ;;  %s445_s1 = inlined_call_operand.hbm [shape: f32[32,128], index: 1, kind: output, shape index: {}]  }
   0x1   :  { %7 = vsyncpa [#allocation4], 0 }
   0x2   :  { %9 = vsyncpa [#allocation4 + $0x1], 0  ;;  %s359_s6 = smov 0   ;;  %s361_s7 = smov 0  }
   0x3   :  { %s363_s8 = smov 0   ;;  %s365_s9 = smov 0  }
   0x4 LB: > { %s380_s10 = sadd.s32 4294967295, %s346_s9   ;;  %s190_s11 = sadd.s32 4294967294, %s346_s9   ;;  %s346_s9 = sphi %s365_s9, %s451_s9   ;;  %s342_s8 = sphi %s363_s8, %s450_s8   ;;  %s338_s7 = sphi %s361_s7, %s449_s7   ;;  %s334_s6 = sphi %s359_s6, %s448_s6  }
   0x5   : > { %s384_s12 = sadd.s32 1, %s346_s9   ;;  %s43_s13 = sadd.s32 1, %s342_s8 }
   0x6   : > { %s40_s14 = ssub.s32 %s346_s9, %s384_s12  ;;  %p53_p0 = scmp.ne.s32.totalorder %s342_s8, %s338_s7 }
   0x7   : > { %p41_p1 = scmp.eq.s32.totalorder %s40_s14, 0  ;;  %p54_p2 = scmp.eq.s32.totalorder %s380_s10, 3 }
   0x8   : > { %p59_p3 = scmp.ne.s32.totalorder %s338_s7, %s334_s6  ;;  %p60_p4 = scmp.eq.s32.totalorder %s190_s11, 3 }
   0x9   : > { %s395_s15 = scalar_select %p41_p1, %s342_s8, %s43_s13  }
   0xa   : > { %p397_p5 = por %p54_p2, %p53_p0  ;;  %p401_p6 = por %p60_p4, %p59_p3 }
   0xb   : > { %p191_p7 = scmp.ge.s32.totalorder %s346_s9, 1  ;;  %p67_p8 = scmp.lt.s32.totalorder %s346_s9, 5 }
   0xc   : > { %p214_p9 = scmp.eq.s32.totalorder %s380_s10, 0  ;;  %s79_s20 = sshll.u32 %s444_s0, 4  ;;  %s80_s20 = int_to_ptr.hbm [resolvable:$true] %s79_s20 }
   0xd   : > { %p68_p10 = pnand %p191_p7, %p67_p8  ;;  %s348_s21 = smov [#allocation2]  }
   0xe   : > { %s81_s22 = sshll.u32 %s348_s21, 4  ;;  %s82_s22 = int_to_ptr.vmem [resolvable:$true] %s81_s22 }
   0xf   : > { %p206_p11 = pneg %p68_p10  ;;  %94 = sbr.rel (%p68_p10) target bundleno = 37 (0x25), region = 24 }
  0x11   : > { %p207_p12 = pnand %p214_p9, %p206_p11 }
  0x13   : > { %209 = dma.hbm_to_vmem [thread:$0]  (!%p207_p12), %s80_s20, 128, %s82_s22, [#allocation3]  }
  0x14   : > { %325 = dma.done.wait (%p214_p9), [#allocation3], 128  }
  0x15   : > { %327 = vsyncadd (%p214_p9), [#allocation3], 4294967168  ;;  %s107_s23 = sand.u32 1, %s338_s7   ;;  %s111_s25 = scvt.s32.f32 %s380_s10  ;;  %v110_v1 = vld [vmem:[#allocation2] sm:$0xff] }
  0x16   : > { %s195_s24 = sshll.u32 %s107_s23, 3  ;;  %s197_s26 = sshll.u32 %s380_s10, 3 }
  0x17   : > { %s126_s29 = scalar_lea.hbm %s445_s1, %s197_s26  ;;  %v112_v0 = vstv %s111_s25  ;;  %s109_s30 = scalar_lea.vmem [#allocation5], %s195_s24 }
  0x18   : > { %s128_s2 = sshll.u32 %s109_s30, 4  ;;  %s130_s3 = sshll.u32 %s126_s29, 4  ;;  %v113_v2 = vadd.f32 %v112_v0, %v110_v1  ;;  %s129_s2 = int_to_ptr.vmem [resolvable:$true] %s128_s2  ;;  %s131_s3 = int_to_ptr.hbm [resolvable:$true] %s130_s3 }
  0x19   : > { %s116_s4 = scalar_lea.sflag [#allocation4], %s107_s23  ;;  %s294_s5 = sshra.s32 %s131_s3, 4  ;;  %s295_s5 = int_to_ptr.hbm [resolvable:$true] %s294_s5 }
  0x1a   : > { %114 = vst [vmem:[%s109_s30] sm:$0xff] %v113_v2  ;;  %s296_s11 = scalar_lea.hbm %s295_s5, 8  ;;  %s300_s14 = scalar_lea.hbm %s445_s1, 32 }
  0x1b   : > { %p297_p13 = scmp.ne.s32.totalorder %s295_s5, %s296_s11  ;;  %p301_p2 = scmp.lt.s32.totalorder %s295_s5, %s445_s1 }
  0x1c   : > { %p302_p3 = scmp.lt.s32.totalorder %s300_s14, %s296_s11 }
  0x1d   : > { %p298_p0 = pnand %p297_p13, %p397_p5 }
  0x1e   : > { %p303_p4 = por %p302_p3, %p301_p2 }
  0x1f   : > { %p299_p1 = pneg %p298_p0 }
  0x21   : > { %p304_p7 = pnand %p303_p4, %p299_p1 }
  0x23   : > { %307 = shalt.err (!%p304_p7)
}
  0x24   : > { %204 = dma.vmem_to_hbm [thread:$0]  (%p397_p5), %s129_s2, 128, %s131_s3, %s116_s4  }
  0x25 PF: > { %p216_p8 = scmp.ge.s32.totalorder %s346_s9, 2  ;;  %s142_s20 = sand.u32 1, %s334_s6  }
  0x26   : > { %s143_s21 = scalar_lea.sflag [#allocation4], %s142_s20 }
  0x27   : > { %p211_p9 = pnand %p216_p8, %p401_p6 }
  0x29   : > { %p212_p10 = pneg %p211_p9 }
  0x2b   : > { %329 = dma.done.wait (%p212_p10), %s143_s21, 128  }
  0x2c   : > { %331 = vsyncadd (%p212_p10), %s143_s21, 4294967168  ;;  %p12_p11 = scmp.ge.s32.totalorder %s384_s12, 6   ;;  %s448_s6 = smov %s338_s7 }
  0x2d   : > { %s449_s7 = smov %s342_s8  ;;  %s450_s8 = smov %s395_s15 }
  0x2e   : > { %s451_s9 = smov %s384_s12  ;;  %14 = sbr.rel (!%p12_p11) target bundleno = 4 (0x4), region = 61 }
  0x33   :  { %149 = vsyncpa [#allocation3], 1 }
  0x34   :  { %151 = vsyncpa [#allocation3 + $0x1], 1 }
  0x35   :  { %152 = vsyncpa [#allocation4], 1 }
  0x36   :  { %154 = vsyncpa [#allocation4 + $0x1], 1 }

// kernel: _forward_impl.4
= control target key start
LH: loop header
LB: loop body
LE: loop exit
PB: predicated region body
PF: predicated region fallthrough
CT: control target
= control target key end

     0   :  { %vm70_vm0 = vcmask 1041408   ;;  %vm57_vm1 = vcmask 31744   ;;  %s363_s1 = inlined_call_operand.vmem [shape: bf16[4,384], index: 1, kind: input, shape index: {}]   ;;  %s364_s0 = inlined_call_operand.vmem [shape: bf16[64,4], index: 0, kind: input, shape index: {}]   ;;  %s365_s2 = inlined_call_operand.vmem [shape: f32[1,384], index: 2, kind: input, shape index: {}]   ;;  %s366_s3 = inlined_call_operand.vmem [shape: bf16[64,384], index: 3, kind: output, shape index: {}]  }
   0x1   :  { %v23_v0 = vld [vmem:[%s363_s1] sm:$0x3f]  ;;  %v229_v7 = vld [vmem:[%s364_s0 + $0x8] sm:$0xff]  ;;  %v230_v9 = vld [vmem:[%s364_s0 + $0x10] sm:$0xff] }
   0x2   :  { %53 = vst [vmem:[#allocation1] ss:$4 sm:$0xff] %v23_v0  ;;  %v228_v1 = vld [vmem:[%s364_s0] sm:$0xff]  ;;  %v231_v10 = vld [vmem:[%s364_s0 + $0x18] sm:$0xff] }
   0x3   :  { %v24_v11 = vld [vmem:[%s365_s2] sm:$0x7] }
   0x4   :  { %v285_v13 = vperm.slane %v24_v11, 1  ;;  %v287_v15 = vperm.slane %v24_v11, 0  ;;  %v289_v16 = vperm.slane %v24_v11, 2 }
   0x9   :  { %v54_v2 = vld.sshfl [vmem:[#allocation1] sm:$0xff pattern:$0x73625140]  ;;  %v55_v3 = vld.sshfl [vmem:[#allocation1 + $0x8] sm:$0xff pattern:$0x73625140] }
   0xa   :  { %v71_v4 = vsel %vm70_vm0, %v54_v2, 0  ;;  %v73_v5 = vsel %vm70_vm0, %v55_v3, 0  ;;  %v56_v6 = vld.sshfl [vmem:[#allocation1 + $0x10] sm:$0xff pattern:$0x73625140] }
   0xb   :  { %84 = vmatpush.bf16.msra.mxu0 %v71_v4  ;;  %232 = vmatpush.bf16.msra.mxu3 %v71_v4  ;;  %v75_v8 = vsel %vm70_vm0, %v56_v6, 0 }
   0xc   :  { %233 = vmatpush.bf16.msra.mxu1 %v73_v5  ;;  %234 = vmatpush.bf16.msra.mxu2 %v75_v8 }
   0xe   :  { %216 = vmatmul.msk.bf16.vlgmr.msra.gmra.mxu0 %vm57_vm1, %v228_v1  ;;  %217 = vmatmul.msk.bf16.vlgmr.msra.gmra.mxu3 %vm57_vm1, %v229_v7 }
   0xf   :  { %113 = vmatpush.bf16.msrb.mxu0 %v73_v5  ;;  %221 = vmatmul.msk.bf16.vlgmr.msra.gmra.mxu1 %vm57_vm1, %v229_v7 }
  0x10   :  { %225 = vmatmul.msk.bf16.vlgmr.msra.gmra.mxu2 %vm57_vm1, %v229_v7 }
  0x13   :  { %142 = vmatpush.bf16.msra.mxu0 %v75_v8 }
  0x1e   :  { %218 = vmatmul.msk.bf16.gmra.mxu3 %vm57_vm1, %v230_v9  ;;  %220 = vmatmul.msk.bf16.vlgmr.msrb.gmra.mxu0 %vm57_vm1, %v228_v1 }
  0x1f   :  { %222 = vmatmul.msk.bf16.gmra.mxu1 %vm57_vm1, %v230_v9 }
  0x20   :  { %226 = vmatmul.msk.bf16.gmra.mxu2 %vm57_vm1, %v230_v9 }
  0x2e   :  { %219 = vmatmul.msk.bf16.gmra.mxu3 %vm57_vm1, %v231_v10  ;;  %224 = vmatmul.msk.bf16.vlgmr.msra.gmra.mxu0 %vm57_vm1, %v228_v1 }
  0x2f   :  { %223 = vmatmul.msk.bf16.gmra.mxu1 %vm57_vm1, %v231_v10 }
  0x30   :  { %227 = vmatmul.msk.bf16.gmra.mxu2 %vm57_vm1, %v231_v10 }
  0x8b   :  { %v86_v12 = vpop.f32.mrf.mxu0 }
  0x8c   :  { %v120_v14 = vpop.f32.mrf.mxu1  ;;  %v87_v32 = vadd.f32 %v86_v12, %v287_v15 }
  0x8d   :  { %v121_v17 = vadd.f32 %v120_v14, %v285_v13 }
  0x91   :  { %v91_v18 = vpop.f32.mrf.mxu3 }
  0x92   :  { %v92_v19 = vadd.f32 %v91_v18, %v287_v15 }
  0x93   :  { %v149_v20 = vpop.f32.mrf.mxu2  ;;  %v88_v22 = vpop.f32.mrf.mxu0 }
  0x94   :  { %v150_v21 = vadd.f32 %v149_v20, %v289_v16  ;;  %v168_v23 = vpack.c.bf16 %v121_v17, %v92_v19  ;;  %v122_v24 = vpop.f32.mrf.mxu1  ;;  %v89_v44 = vadd.f32 %v88_v22, %v287_v15 }
  0x95   :  { %v123_v27 = vadd.f32 %v122_v24, %v285_v13 }
  0x96   :  { %v169_v25 = vpack.c.bf16 %v150_v21, %v150_v21  ;;  %184 = vst [vmem:[%s366_s3 + $0x18] sm:$0xff] %v168_v23 }
  0x98   :  { %185 = vst [vmem:[%s366_s3 + $0x20] sm:$0xf] %v169_v25 }
  0x99   :  { %v93_v26 = vpop.f32.mrf.mxu3 }
  0x9a   :  { %v94_v28 = vadd.f32 %v93_v26, %v287_v15 }
  0x9b   :  { %v151_v29 = vpop.f32.mrf.mxu2  ;;  %v115_v31 = vpop.f32.mrf.mxu0 }
  0x9c   :  { %v152_v30 = vadd.f32 %v151_v29, %v289_v16  ;;  %v170_v33 = vpack.c.bf16 %v123_v27, %v94_v28  ;;  %v116_v34 = vadd.f32 %v115_v31, %v285_v13  ;;  %v125_v35 = vpop.f32.mrf.mxu1 }
  0x9d   :  { %v126_v38 = vadd.f32 %v125_v35, %v285_v13 }
  0x9e   :  { %v171_v36 = vpack.c.bf16 %v152_v30, %v152_v30  ;;  %186 = vst [vmem:[%s366_s3 + $0x24] sm:$0xff] %v170_v33  ;;  %v164_v37 = vpack.c.bf16 %v116_v34, %v87_v32 }
  0xa0   :  { %187 = vst [vmem:[%s366_s3 + $0x2c] sm:$0xf] %v171_v36 }
  0xa1   :  { %180 = vst [vmem:[%s366_s3] sm:$0xff] %v164_v37  ;;  %v96_v39 = vpop.f32.mrf.mxu3 }
  0xa2   :  { %v97_v40 = vadd.f32 %v96_v39, %v287_v15 }
  0xa3   :  { %v154_v41 = vpop.f32.mrf.mxu2  ;;  %v117_v43 = vpop.f32.mrf.mxu0 }
  0xa4   :  { %v155_v42 = vadd.f32 %v154_v41, %v289_v16  ;;  %v172_v45 = vpack.c.bf16 %v126_v38, %v97_v40  ;;  %v118_v46 = vadd.f32 %v117_v43, %v285_v13  ;;  %v127_v47 = vpop.f32.mrf.mxu1 }
  0xa5   :  { %v128_v51 = vadd.f32 %v127_v47, %v285_v13 }
  0xa6   :  { %v173_v48 = vpack.c.bf16 %v155_v42, %v155_v42  ;;  %188 = vst [vmem:[%s366_s3 + $0x30] sm:$0xff] %v172_v45  ;;  %v166_v49 = vpack.c.bf16 %v118_v46, %v89_v44 }
  0xa8   :  { %189 = vst [vmem:[%s366_s3 + $0x38] sm:$0xf] %v173_v48 }
  0xa9   :  { %182 = vst [vmem:[%s366_s3 + $0xc] sm:$0xff] %v166_v49  ;;  %v98_v50 = vpop.f32.mrf.mxu3 }
  0xaa   :  { %v99_v52 = vadd.f32 %v98_v50, %v287_v15 }
  0xab   :  { %v156_v53 = vpop.f32.mrf.mxu2  ;;  %v144_v55 = vpop.f32.mrf.mxu0 }
  0xac   :  { %v157_v54 = vadd.f32 %v156_v53, %v289_v16  ;;  %v174_v56 = vpack.c.bf16 %v128_v51, %v99_v52  ;;  %v145_v57 = vadd.f32 %v144_v55, %v289_v16  ;;  %v130_v59 = vpop.f32.mrf.mxu1 }
  0xad   :  { %v131_v61 = vadd.f32 %v130_v59, %v285_v13 }
  0xae   :  { %v175_v58 = vpack.c.bf16 %v157_v54, %v157_v54  ;;  %190 = vst [vmem:[%s366_s3 + $0x3c] sm:$0xff] %v174_v56  ;;  %v165_v60 = vpack.c.bf16 %v145_v57, %v145_v57 }
  0xb0   :  { %191 = vst [vmem:[%s366_s3 + $0x44] sm:$0xf] %v175_v58 }
  0xb1   :  { %181 = vst [vmem:[%s366_s3 + $0x8] sm:$0xf] %v165_v60  ;;  %v101_v62 = vpop.f32.mrf.mxu3 }
  0xb2   :  { %v102_v63 = vadd.f32 %v101_v62, %v287_v15 }
  0xb3   :  { %v159_v0 = vpop.f32.mrf.mxu2  ;;  %v146_v2 = vpop.f32.mrf.mxu0 }
  0xb4   :  { %v160_v1 = vadd.f32 %v159_v0, %v289_v16  ;;  %v176_v3 = vpack.c.bf16 %v131_v61, %v102_v63  ;;  %v147_v4 = vadd.f32 %v146_v2, %v289_v16  ;;  %v132_v7 = vpop.f32.mrf.mxu1 }
  0xb5   :  { %v133_v9 = vadd.f32 %v132_v7, %v285_v13 }
  0xb6   :  { %v177_v5 = vpack.c.bf16 %v160_v1, %v160_v1  ;;  %192 = vst [vmem:[%s366_s3 + $0x48] sm:$0xff] %v176_v3  ;;  %v167_v6 = vpack.c.bf16 %v147_v4, %v147_v4 }
  0xb8   :  { %193 = vst [vmem:[%s366_s3 + $0x50] sm:$0xf] %v177_v5 }
  0xb9   :  { %183 = vst [vmem:[%s366_s3 + $0x14] sm:$0xf] %v167_v6  ;;  %v103_v8 = vpop.f32.mrf.mxu3 }
  0xba   :  { %v104_v10 = vadd.f32 %v103_v8, %v287_v15 }
  0xbb   :  { %v161_v11 = vpop.f32.mrf.mxu2 }
  0xbc   :  { %v162_v12 = vadd.f32 %v161_v11, %v289_v16  ;;  %v178_v14 = vpack.c.bf16 %v133_v9, %v104_v10 }
  0xbe   :  { %v179_v17 = vpack.c.bf16 %v162_v12, %v162_v12  ;;  %194 = vst [vmem:[%s366_s3 + $0x54] sm:$0xff] %v178_v14 }
  0xc0   :  { %195 = vst [vmem:[%s366_s3 + $0x5c] sm:$0xf] %v179_v17 }

// kernel: _forward_impl.6
= control target key start
LH: loop header
LB: loop body
LE: loop exit
PB: predicated region body
PF: predicated region fallthrough
CT: control target
= control target key end

     0   :  { %8 = vsyncpa [#allocation3], 0  ;;  %s531_s15 = smov [#allocation2]   ;;  %s532_s17 = smov 192   ;;  %s650_s0 = inlined_call_operand.vmem [shape: bf16[64,128], index: 0, kind: input, shape index: {}]   ;;  %s651_s1 = inlined_call_operand.hbm [shape: bf16[128,384], index: 1, kind: input, shape index: {}]   ;;  %s652_s2 = inlined_call_operand.vmem [shape: f32[1,384], index: 2, kind: input, shape index: {}]   ;;  %s653_s3 = inlined_call_operand.vmem [shape: bf16[64,384], index: 3, kind: output, shape index: {}]  }
   0x1   :  { %s15_s14 = sshll.u32 %s651_s1, 4  ;;  %s17_s16 = sshll.u32 %s531_s15, 4  ;;  %s16_s14 = int_to_ptr.hbm [resolvable:$true] %s15_s14  ;;  %s18_s16 = int_to_ptr.vmem [resolvable:$true] %s17_s16 }
   0x2   :  { %s533_s18 = smov 12  }
   0x3   :  { %23 = dma.hbm_to_vmem [thread:$0]  %s16_s14, 3072, %s18_s16, [#allocation3], %s532_s17, %s532_s17, %s533_s18  }
   0x4   :  { %529 = dma.done.wait [#allocation3], 3072  }
   0x5   :  { %530 = vsyncadd [#allocation3], 4294964224  ;;  %v456_v0 = vld [vmem:[#allocation2 + $0xa8] sm:$0xf]  ;;  %v492_v1 = vld [vmem:[#allocation2 + $0xb0] sm:$0xf0] }
   0x6   :  { %v491_v2 = vld [vmem:[#allocation2 + $0xac] sm:$0xf]  ;;  %v457_v3 = vor.u32 %v492_v1, %v456_v0  ;;  %v458_v4 = vld [vmem:[#allocation2 + $0xb4] sm:$0xf0]  ;;  %v464_v5 = vld [vmem:[#allocation2 + $0xb0] sm:$0xf] }
   0x7   :  { %v493_v6 = vld [vmem:[#allocation2 + $0xb8] sm:$0xf0]  ;;  %v461_v7 = vor.u32 %v491_v2, %v458_v4  ;;  %v444_v9 = vld [vmem:[#allocation2 + $0x90] sm:$0xf]  ;;  %v488_v11 = vld [vmem:[#allocation2 + $0x94] sm:$0xf] }
   0x8   :  { %v465_v8 = vor.u32 %v493_v6, %v464_v5  ;;  %v489_v10 = vld [vmem:[#allocation2 + $0x98] sm:$0xf0]  ;;  %230 = vmatpush.bf16.msra.mxu0 %v457_v3  ;;  %v446_v13 = vld [vmem:[#allocation2 + $0x9c] sm:$0xf0]  ;;  %v452_v14 = vld [vmem:[#allocation2 + $0x98] sm:$0xf]  ;;  %494 = vmatpush.bf16.msra.mxu3 %v457_v3 }
   0x9   :  { %v445_v12 = vor.u32 %v489_v10, %v444_v9  ;;  %v490_v15 = vld [vmem:[#allocation2 + $0xa0] sm:$0xf0]  ;;  %259 = vmatpush.bf16.msra.mxu1 %v461_v7  ;;  %v449_v16 = vor.u32 %v488_v11, %v446_v13  ;;  %v432_v18 = vld [vmem:[#allocation2 + $0x78] sm:$0xf]  ;;  %v485_v20 = vld [vmem:[#allocation2 + $0x7c] sm:$0xf] }
   0xa   :  { %288 = vmatpush.bf16.msra.mxu2 %v465_v8  ;;  %v453_v17 = vor.u32 %v490_v15, %v452_v14  ;;  %v486_v19 = vld [vmem:[#allocation2 + $0x80] sm:$0xf0]  ;;  %v434_v21 = vld [vmem:[#allocation2 + $0x84] sm:$0xf0]  ;;  %v440_v22 = vld [vmem:[#allocation2 + $0x80] sm:$0xf] }
   0xb   :  { %v487_v23 = vld [vmem:[#allocation2 + $0x88] sm:$0xf0]  ;;  %v433_v24 = vor.u32 %v486_v19, %v432_v18  ;;  %v437_v25 = vor.u32 %v485_v20, %v434_v21  ;;  %v420_v27 = vld [vmem:[#allocation2 + $0x60] sm:$0xf]  ;;  %v482_v29 = vld [vmem:[#allocation2 + $0x64] sm:$0xf] }
   0xc   :  { %231 = vmatpush.bf16.msra.mxu0 %v445_v12  ;;  %495 = vmatpush.bf16.msra.mxu3 %v445_v12  ;;  %v441_v26 = vor.u32 %v487_v23, %v440_v22  ;;  %v483_v28 = vld [vmem:[#allocation2 + $0x68] sm:$0xf0]  ;;  %v422_v30 = vld [vmem:[#allocation2 + $0x6c] sm:$0xf0]  ;;  %v428_v31 = vld [vmem:[#allocation2 + $0x68] sm:$0xf] }
   0xd   :  { %260 = vmatpush.bf16.msra.mxu1 %v449_v16  ;;  %v484_v32 = vld [vmem:[#allocation2 + $0x70] sm:$0xf0]  ;;  %v421_v33 = vor.u32 %v483_v28, %v420_v27  ;;  %v425_v34 = vor.u32 %v482_v29, %v422_v30  ;;  %v408_v36 = vld [vmem:[#allocation2 + $0x48] sm:$0xf]  ;;  %v479_v38 = vld [vmem:[#allocation2 + $0x4c] sm:$0xf] }
   0xe   :  { %289 = vmatpush.bf16.msra.mxu2 %v453_v17  ;;  %v429_v35 = vor.u32 %v484_v32, %v428_v31  ;;  %v480_v37 = vld [vmem:[#allocation2 + $0x50] sm:$0xf0]  ;;  %v410_v39 = vld [vmem:[#allocation2 + $0x54] sm:$0xf0]  ;;  %v416_v40 = vld [vmem:[#allocation2 + $0x50] sm:$0xf] }
   0xf   :  { %v481_v41 = vld [vmem:[#allocation2 + $0x58] sm:$0xf0]  ;;  %v409_v42 = vor.u32 %v480_v37, %v408_v36  ;;  %v413_v43 = vor.u32 %v479_v38, %v410_v39  ;;  %v396_v45 = vld [vmem:[#allocation2 + $0x30] sm:$0xf]  ;;  %v476_v47 = vld [vmem:[#allocation2 + $0x34] sm:$0xf] }
  0x10   :  { %232 = vmatpush.bf16.msra.mxu0 %v433_v24  ;;  %496 = vmatpush.bf16.msra.mxu3 %v433_v24  ;;  %v417_v44 = vor.u32 %v481_v41, %v416_v40  ;;  %v477_v46 = vld [vmem:[#allocation2 + $0x38] sm:$0xf0]  ;;  %v398_v48 = vld [vmem:[#allocation2 + $0x3c] sm:$0xf0]  ;;  %v404_v49 = vld [vmem:[#allocation2 + $0x38] sm:$0xf] }
  0x11   :  { %261 = vmatpush.bf16.msra.mxu1 %v437_v25  ;;  %v478_v50 = vld [vmem:[#allocation2 + $0x40] sm:$0xf0]  ;;  %v397_v51 = vor.u32 %v477_v46, %v396_v45  ;;  %v401_v52 = vor.u32 %v476_v47, %v398_v48  ;;  %v384_v54 = vld [vmem:[#allocation2 + $0x18] sm:$0xf]  ;;  %v473_v56 = vld [vmem:[#allocation2 + $0x1c] sm:$0xf] }
  0x12   :  { %290 = vmatpush.bf16.msra.mxu2 %v441_v26  ;;  %v405_v53 = vor.u32 %v478_v50, %v404_v49  ;;  %v474_v55 = vld [vmem:[#allocation2 + $0x20] sm:$0xf0]  ;;  %v386_v57 = vld [vmem:[#allocation2 + $0x24] sm:$0xf0]  ;;  %v392_v58 = vld [vmem:[#allocation2 + $0x20] sm:$0xf] }
  0x13   :  { %v475_v59 = vld [vmem:[#allocation2 + $0x28] sm:$0xf0]  ;;  %v385_v60 = vor.u32 %v474_v55, %v384_v54  ;;  %v389_v61 = vor.u32 %v473_v56, %v386_v57  ;;  %v372_v63 = vld [vmem:[#allocation2] sm:$0xf]  ;;  %v470_v1 = vld [vmem:[#allocation2 + $0x4] sm:$0xf] }
  0x14   :  { %233 = vmatpush.bf16.msra.mxu0 %v421_v33  ;;  %497 = vmatpush.bf16.msra.mxu3 %v421_v33  ;;  %v393_v62 = vor.u32 %v475_v59, %v392_v58  ;;  %v471_v0 = vld [vmem:[#allocation2 + $0x8] sm:$0xf0]  ;;  %v374_v2 = vld [vmem:[#allocation2 + $0xc] sm:$0xf0]  ;;  %v380_v3 = vld [vmem:[#allocation2 + $0x8] sm:$0xf] }
  0x15   :  { %262 = vmatpush.bf16.msra.mxu1 %v425_v34  ;;  %v472_v4 = vld [vmem:[#allocation2 + $0x10] sm:$0xf0]  ;;  %v373_v5 = vor.u32 %v471_v0, %v372_v63  ;;  %v377_v6 = vor.u32 %v470_v1, %v374_v2  ;;  %v466_v8 = vld [vmem:[%s650_s0] sm:$0xff]  ;;  %v467_v9 = vld [vmem:[%s650_s0 + $0x8] sm:$0xff] }
  0x16   :  { %291 = vmatpush.bf16.msra.mxu2 %v429_v35  ;;  %v381_v7 = vor.u32 %v472_v4, %v380_v3  ;;  %v468_v10 = vld [vmem:[%s650_s0 + $0x10] sm:$0xff]  ;;  %v469_v11 = vld [vmem:[%s650_s0 + $0x18] sm:$0xff]  ;;  %v70_v12 = vld [vmem:[%s652_s2] sm:$0x7] }
  0x17   :  { %v572_v13 = vperm.slane %v70_v12, 0  ;;  %v574_v14 = vperm.slane %v70_v12, 1  ;;  %v578_v20 = vperm.slane %v70_v12, 2 }
  0x18   :  { %234 = vmatpush.bf16.msra.mxu0 %v409_v42  ;;  %498 = vmatpush.bf16.msra.mxu3 %v409_v42 }
  0x19   :  { %263 = vmatpush.bf16.msra.mxu1 %v413_v43 }
  0x1a   :  { %292 = vmatpush.bf16.msra.mxu2 %v417_v44 }
  0x1c   :  { %235 = vmatpush.bf16.msra.mxu0 %v397_v51  ;;  %499 = vmatpush.bf16.msra.mxu3 %v397_v51 }
  0x1d   :  { %264 = vmatpush.bf16.msra.mxu1 %v401_v52 }
  0x1e   :  { %293 = vmatpush.bf16.msra.mxu2 %v405_v53 }
  0x20   :  { %236 = vmatpush.bf16.msra.mxu0 %v385_v60  ;;  %500 = vmatpush.bf16.msra.mxu3 %v385_v60 }
  0x21   :  { %265 = vmatpush.bf16.msra.mxu1 %v389_v61 }
  0x22   :  { %294 = vmatpush.bf16.msra.mxu2 %v393_v62 }
  0x24   :  { %237 = vmatpush.bf16.msra.mxu0 %v373_v5  ;;  %501 = vmatpush.bf16.msra.mxu3 %v373_v5 }
  0x25   :  { %266 = vmatpush.bf16.msra.mxu1 %v377_v6 }
  0x26   :  { %295 = vmatpush.bf16.msra.mxu2 %v381_v7 }
  0x27   :  { %238 = vmatmul.bf16.vlgmr.msra.gmra.mxu0 %v466_v8  ;;  %243 = vmatmul.bf16.vlgmr.msra.gmra.mxu3 %v467_v9 }
  0x28   :  { %267 = vmatmul.bf16.vlgmr.msra.gmra.mxu1 %v466_v8 }
  0x29   :  { %296 = vmatmul.bf16.vlgmr.msra.gmra.mxu2 %v466_v8 }
  0x37   :  { %248 = vmatmul.bf16.gmra.mxu3 %v468_v10 }
  0x38   :  { %272 = vmatmul.bf16.gmra.mxu1 %v467_v9 }
  0x39   :  { %301 = vmatmul.bf16.gmra.mxu2 %v467_v9 }
  0x47   :  { %253 = vmatmul.bf16.gmra.mxu3 %v469_v11 }
  0x48   :  { %277 = vmatmul.bf16.gmra.mxu1 %v468_v10 }
  0x49   :  { %306 = vmatmul.bf16.gmra.mxu2 %v468_v10 }
  0x58   :  { %282 = vmatmul.bf16.gmra.mxu1 %v469_v11 }
  0x59   :  { %311 = vmatmul.bf16.gmra.mxu2 %v469_v11 }
  0xa4   :  { %v239_v15 = vpop.f32.mrf.mxu0 }
  0xa5   :  { %v240_v16 = vadd.f32 %v239_v15, %v572_v13  ;;  %v268_v17 = vpop.f32.mrf.mxu1 }
  0xa6   :  { %v269_v18 = vadd.f32 %v268_v17, %v574_v14 }
  0xa8   :  { %v317_v19 = vpack.c.bf16 %v269_v18, %v240_v16 }
  0xaa   :  { %333 = vst [vmem:[%s653_s3] sm:$0xff] %v317_v19  ;;  %v244_v21 = vpop.f32.mrf.mxu3 }
  0xab   :  { %v245_v32 = vadd.f32 %v244_v21, %v572_v13 }
  0xac   :  { %v297_v22 = vpop.f32.mrf.mxu2  ;;  %v241_v24 = vpop.f32.mrf.mxu0 }
  0xad   :  { %v298_v23 = vadd.f32 %v297_v22, %v578_v20  ;;  %v242_v25 = vadd.f32 %v241_v24, %v572_v13  ;;  %v270_v26 = vpop.f32.mrf.mxu1 }
  0xae   :  { %v271_v28 = vadd.f32 %v270_v26, %v574_v14 }
  0xaf   :  { %v318_v27 = vpack.c.bf16 %v298_v23, %v298_v23 }
  0xb0   :  { %v319_v29 = vpack.c.bf16 %v271_v28, %v242_v25 }
  0xb1   :  { %334 = vst [vmem:[%s653_s3 + $0x8] sm:$0xf] %v318_v27 }
  0xb2   :  { %335 = vst [vmem:[%s653_s3 + $0xc] sm:$0xff] %v319_v29  ;;  %v246_v31 = vpop.f32.mrf.mxu3 }
  0xb3   :  { %v247_v42 = vadd.f32 %v246_v31, %v572_v13 }
  0xb4   :  { %v299_v30 = vpop.f32.mrf.mxu2 }
  0xb5   :  { %v300_v33 = vadd.f32 %v299_v30, %v578_v20  ;;  %v273_v34 = vpop.f32.mrf.mxu1 }
  0xb6   :  { %v274_v36 = vadd.f32 %v273_v34, %v574_v14 }
  0xb7   :  { %v320_v35 = vpack.c.bf16 %v300_v33, %v300_v33 }
  0xb8   :  { %v321_v37 = vpack.c.bf16 %v274_v36, %v245_v32 }
  0xb9   :  { %336 = vst [vmem:[%s653_s3 + $0x14] sm:$0xf] %v320_v35 }
  0xba   :  { %337 = vst [vmem:[%s653_s3 + $0x18] sm:$0xff] %v321_v37  ;;  %v249_v41 = vpop.f32.mrf.mxu3 }
  0xbb   :  { %v250_v47 = vadd.f32 %v249_v41, %v572_v13 }
  0xbc   :  { %v302_v38 = vpop.f32.mrf.mxu2 }
  0xbd   :  { %v303_v39 = vadd.f32 %v302_v38, %v578_v20  ;;  %v275_v40 = vpop.f32.mrf.mxu1 }
  0xbe   :  { %v276_v44 = vadd.f32 %v275_v40, %v574_v14 }
  0xbf   :  { %v322_v43 = vpack.c.bf16 %v303_v39, %v303_v39 }
  0xc0   :  { %v323_v45 = vpack.c.bf16 %v276_v44, %v247_v42 }
  0xc1   :  { %338 = vst [vmem:[%s653_s3 + $0x20] sm:$0xf] %v322_v43 }
  0xc2   :  { %339 = vst [vmem:[%s653_s3 + $0x24] sm:$0xff] %v323_v45  ;;  %v251_v52 = vpop.f32.mrf.mxu3 }
  0xc3   :  { %v252_v57 = vadd.f32 %v251_v52, %v572_v13 }
  0xc4   :  { %v304_v46 = vpop.f32.mrf.mxu2 }
  0xc5   :  { %v305_v48 = vadd.f32 %v304_v46, %v578_v20  ;;  %v278_v49 = vpop.f32.mrf.mxu1 }
  0xc6   :  { %v279_v51 = vadd.f32 %v278_v49, %v574_v14 }
  0xc7   :  { %v324_v50 = vpack.c.bf16 %v305_v48, %v305_v48 }
  0xc8   :  { %v325_v53 = vpack.c.bf16 %v279_v51, %v250_v47 }
  0xc9   :  { %340 = vst [vmem:[%s653_s3 + $0x2c] sm:$0xf] %v324_v50 }
  0xca   :  { %341 = vst [vmem:[%s653_s3 + $0x30] sm:$0xff] %v325_v53  ;;  %v254_v61 = vpop.f32.mrf.mxu3 }
  0xcb   :  { %v255_v63 = vadd.f32 %v254_v61, %v572_v13 }
  0xcc   :  { %v307_v54 = vpop.f32.mrf.mxu2 }
  0xcd   :  { %v308_v55 = vadd.f32 %v307_v54, %v578_v20  ;;  %v280_v56 = vpop.f32.mrf.mxu1 }
  0xce   :  { %v281_v59 = vadd.f32 %v280_v56, %v574_v14 }
  0xcf   :  { %v326_v58 = vpack.c.bf16 %v308_v55, %v308_v55 }
  0xd0   :  { %v327_v60 = vpack.c.bf16 %v281_v59, %v252_v57 }
  0xd1   :  { %342 = vst [vmem:[%s653_s3 + $0x38] sm:$0xf] %v326_v58 }
  0xd2   :  { %343 = vst [vmem:[%s653_s3 + $0x3c] sm:$0xff] %v327_v60  ;;  %v256_v5 = vpop.f32.mrf.mxu3 }
  0xd3   :  { %v257_v9 = vadd.f32 %v256_v5, %v572_v13 }
  0xd4   :  { %v309_v62 = vpop.f32.mrf.mxu2 }
  0xd5   :  { %v310_v0 = vadd.f32 %v309_v62, %v578_v20  ;;  %v283_v1 = vpop.f32.mrf.mxu1 }
  0xd6   :  { %v284_v3 = vadd.f32 %v283_v1, %v574_v14 }
  0xd7   :  { %v328_v2 = vpack.c.bf16 %v310_v0, %v310_v0 }
  0xd8   :  { %v329_v4 = vpack.c.bf16 %v284_v3, %v255_v63 }
  0xd9   :  { %344 = vst [vmem:[%s653_s3 + $0x44] sm:$0xf] %v328_v2 }
  0xda   :  { %345 = vst [vmem:[%s653_s3 + $0x48] sm:$0xff] %v329_v4 }
  0xdc   :  { %v312_v6 = vpop.f32.mrf.mxu2 }
  0xdd   :  { %v313_v7 = vadd.f32 %v312_v6, %v578_v20  ;;  %v285_v8 = vpop.f32.mrf.mxu1 }
  0xde   :  { %v286_v11 = vadd.f32 %v285_v8, %v574_v14 }
  0xdf   :  { %v330_v10 = vpack.c.bf16 %v313_v7, %v313_v7 }
  0xe0   :  { %v331_v12 = vpack.c.bf16 %v286_v11, %v257_v9 }
  0xe1   :  { %346 = vst [vmem:[%s653_s3 + $0x50] sm:$0xf] %v330_v10 }
  0xe2   :  { %347 = vst [vmem:[%s653_s3 + $0x54] sm:$0xff] %v331_v12 }
  0xe4   :  { %v314_v15 = vpop.f32.mrf.mxu2 }
  0xe5   :  { %v315_v16 = vadd.f32 %v314_v15, %v578_v20 }
  0xe7   :  { %v332_v17 = vpack.c.bf16 %v315_v16, %v315_v16 }
  0xe9   :  { %348 = vst [vmem:[%s653_s3 + $0x5c] sm:$0xf] %v332_v17 }
  0xea   :  { %353 = vsyncpa [#allocation3], 1 }

// kernel: _forward_impl.5
= control target key start
LH: loop header
LB: loop body
LE: loop exit
PB: predicated region body
PF: predicated region fallthrough
CT: control target
= control target key end

     0   :  { %8 = vsyncpa [#allocation4], 0  ;;  %s1684_s0 = inlined_call_operand.vmem [shape: bf16[8,8,384], index: 0, kind: input, shape index: {}]   ;;  %s1685_s1 = inlined_call_operand.hbm [shape: bf16[128,384], index: 1, kind: input, shape index: {}]   ;;  %s1686_s2 = inlined_call_operand.hbm [shape: f32[1,128], index: 2, kind: input, shape index: {}]   ;;  %s1687_s3 = inlined_call_operand.vmem [shape: bf16[8,8,128], index: 3, kind: output, shape index: {}]  }
   0x1   :  { %s16_s14 = sshll.u32 %s1685_s1, 4  ;;  %s17_s14 = int_to_ptr.hbm [resolvable:$true] %s16_s14 }
   0x2   :  { %9 = vsyncpa [#allocation6], 0  ;;  %s1297_s15 = smov [#allocation3]   ;;  %s30_s19 = sshll.u32 %s1686_s2, 4  ;;  %s31_s19 = int_to_ptr.hbm [resolvable:$true] %s30_s19 }
   0x3   :  { %s18_s16 = sshll.u32 %s1297_s15, 4  ;;  %s1298_s20 = smov 192   ;;  %s19_s16 = int_to_ptr.vmem [resolvable:$true] %s18_s16 }
   0x4   :  { %s1299_s21 = smov 12   ;;  %s1300_s22 = smov [#allocation5]  }
   0x5   :  { %24 = dma.hbm_to_vmem [thread:$0]  %s17_s14, 3072, %s19_s16, [#allocation4], %s1298_s20, %s1298_s20, %s1299_s21  }
   0x6   :  { %s32_s23 = sshll.u32 %s1300_s22, 4  ;;  %s33_s23 = int_to_ptr.vmem [resolvable:$true] %s32_s23 }
   0x7   :  { %35 = dma.hbm_to_vmem [thread:$0]  %s31_s19, 16, %s33_s23, [#allocation6]  }
   0x8   :  { %1293 = dma.done.wait [#allocation4], 3072  }
   0x9   :  { %1294 = vsyncadd [#allocation4], 4294964224 }
   0xa   :  { %1295 = dma.done.wait [#allocation6], 16  }
   0xb   :  { %1296 = vsyncadd [#allocation6], 4294967280  ;;  %v1087_v0 = vld [vmem:[#allocation3 + $0xa8] sm:$0xf]  ;;  %v1156_v1 = vld [vmem:[#allocation3 + $0xb0] sm:$0xf0] }
   0xc   :  { %v1155_v2 = vld [vmem:[#allocation3 + $0xac] sm:$0xf]  ;;  %v1328_v3 = vor.u32 %v1156_v1, %v1087_v0  ;;  %v1089_v4 = vld [vmem:[#allocation3 + $0xb4] sm:$0xf0]  ;;  %v1075_v5 = vld [vmem:[#allocation3 + $0x90] sm:$0xf] }
   0xd   :  { %v1153_v6 = vld [vmem:[#allocation3 + $0x98] sm:$0xf0]  ;;  %v1330_v7 = vor.u32 %v1155_v2, %v1089_v4  ;;  %v1152_v8 = vld [vmem:[#allocation3 + $0x94] sm:$0xf]  ;;  %v1077_v9 = vld [vmem:[#allocation3 + $0x9c] sm:$0xf0] }
   0xe   :  { %217 = vmatpush.bf16.msra.mxu0 %v1328_v3  ;;  %v1333_v10 = vor.u32 %v1153_v6, %v1075_v5  ;;  %317 = vmatpush.bf16.msra.mxu3 %v1328_v3  ;;  %v1337_v11 = vor.u32 %v1152_v8, %v1077_v9  ;;  %v1063_v12 = vld [vmem:[#allocation3 + $0x78] sm:$0xf]  ;;  %v1150_v13 = vld [vmem:[#allocation3 + $0x80] sm:$0xf0]  ;;  %v1149_v14 = vld [vmem:[#allocation3 + $0x7c] sm:$0xf] }
   0xf   :  { %230 = vmatpush.bf16.msra.mxu1 %v1330_v7  ;;  %v1065_v15 = vld [vmem:[#allocation3 + $0x84] sm:$0xf0]  ;;  %v1095_v16 = vld [vmem:[#allocation3 + $0xb0] sm:$0xf]  ;;  %v1157_v17 = vld [vmem:[#allocation3 + $0xb8] sm:$0xf0]  ;;  %v1342_v19 = vor.u32 %v1150_v13, %v1063_v12 }
  0x10   :  { %v1339_v18 = vor.u32 %v1157_v17, %v1095_v16  ;;  %v1083_v20 = vld [vmem:[#allocation3 + $0x98] sm:$0xf]  ;;  %v1154_v21 = vld [vmem:[#allocation3 + $0xa0] sm:$0xf0]  ;;  %v1346_v22 = vor.u32 %v1149_v14, %v1065_v15  ;;  %v1051_v23 = vld [vmem:[#allocation3 + $0x60] sm:$0xf] }
  0x11   :  { %v1147_v24 = vld [vmem:[#allocation3 + $0x68] sm:$0xf0]  ;;  %v1146_v25 = vld [vmem:[#allocation3 + $0x64] sm:$0xf]  ;;  %v1349_v26 = vor.u32 %v1154_v21, %v1083_v20  ;;  %v1053_v27 = vld [vmem:[#allocation3 + $0x6c] sm:$0xf0] }
  0x12   :  { %218 = vmatpush.bf16.msra.mxu0 %v1333_v10  ;;  %318 = vmatpush.bf16.msra.mxu3 %v1333_v10  ;;  %v1071_v28 = vld [vmem:[#allocation3 + $0x80] sm:$0xf]  ;;  %v1151_v29 = vld [vmem:[#allocation3 + $0x88] sm:$0xf0]  ;;  %v1352_v30 = vor.u32 %v1147_v24, %v1051_v23  ;;  %v1356_v31 = vor.u32 %v1146_v25, %v1053_v27  ;;  %v1039_v32 = vld [vmem:[#allocation3 + $0x48] sm:$0xf] }
  0x13   :  { %231 = vmatpush.bf16.msra.mxu1 %v1337_v11  ;;  %243 = vmatpush.bf16.msra.mxu2 %v1339_v18  ;;  %v1144_v33 = vld [vmem:[#allocation3 + $0x50] sm:$0xf0]  ;;  %v1143_v34 = vld [vmem:[#allocation3 + $0x4c] sm:$0xf]  ;;  %v1359_v35 = vor.u32 %v1151_v29, %v1071_v28  ;;  %v1041_v36 = vld [vmem:[#allocation3 + $0x54] sm:$0xf0] }
  0x14   :  { %v1059_v37 = vld [vmem:[#allocation3 + $0x68] sm:$0xf]  ;;  %v1148_v38 = vld [vmem:[#allocation3 + $0x70] sm:$0xf0]  ;;  %v1362_v39 = vor.u32 %v1144_v33, %v1039_v32  ;;  %v1027_v40 = vld [vmem:[#allocation3 + $0x30] sm:$0xf]  ;;  %v1366_v41 = vor.u32 %v1143_v34, %v1041_v36 }
  0x15   :  { %v1141_v42 = vld [vmem:[#allocation3 + $0x38] sm:$0xf0]  ;;  %v1140_v43 = vld [vmem:[#allocation3 + $0x34] sm:$0xf]  ;;  %v1369_v44 = vor.u32 %v1148_v38, %v1059_v37  ;;  %v1029_v45 = vld [vmem:[#allocation3 + $0x3c] sm:$0xf0] }
  0x16   :  { %219 = vmatpush.bf16.msra.mxu0 %v1342_v19  ;;  %319 = vmatpush.bf16.msra.mxu3 %v1342_v19  ;;  %v1047_v46 = vld [vmem:[#allocation3 + $0x50] sm:$0xf]  ;;  %v1145_v47 = vld [vmem:[#allocation3 + $0x58] sm:$0xf0]  ;;  %v1372_v48 = vor.u32 %v1141_v42, %v1027_v40  ;;  %v1376_v49 = vor.u32 %v1140_v43, %v1029_v45  ;;  %v1015_v50 = vld [vmem:[#allocation3 + $0x18] sm:$0xf] }
  0x17   :  { %232 = vmatpush.bf16.msra.mxu1 %v1346_v22  ;;  %244 = vmatpush.bf16.msra.mxu2 %v1349_v26  ;;  %v1138_v51 = vld [vmem:[#allocation3 + $0x20] sm:$0xf0]  ;;  %v1137_v52 = vld [vmem:[#allocation3 + $0x1c] sm:$0xf]  ;;  %v1379_v53 = vor.u32 %v1145_v47, %v1047_v46  ;;  %v1017_v54 = vld [vmem:[#allocation3 + $0x24] sm:$0xf0] }
  0x18   :  { %v1035_v55 = vld [vmem:[#allocation3 + $0x38] sm:$0xf]  ;;  %v1142_v56 = vld [vmem:[#allocation3 + $0x40] sm:$0xf0]  ;;  %v1382_v57 = vor.u32 %v1138_v51, %v1015_v50  ;;  %v1386_v58 = vor.u32 %v1137_v52, %v1017_v54  ;;  %v1003_v59 = vld [vmem:[#allocation3] sm:$0xf] }
  0x19   :  { %v1135_v60 = vld [vmem:[#allocation3 + $0x8] sm:$0xf0]  ;;  %v1134_v61 = vld [vmem:[#allocation3 + $0x4] sm:$0xf]  ;;  %v1389_v62 = vor.u32 %v1142_v56, %v1035_v55  ;;  %v1005_v63 = vld [vmem:[#allocation3 + $0xc] sm:$0xf0] }
  0x1a   :  { %220 = vmatpush.bf16.msra.mxu0 %v1352_v30  ;;  %320 = vmatpush.bf16.msra.mxu3 %v1352_v30  ;;  %v1023_v0 = vld [vmem:[#allocation3 + $0x20] sm:$0xf]  ;;  %v1139_v1 = vld [vmem:[#allocation3 + $0x28] sm:$0xf0]  ;;  %v1392_v2 = vor.u32 %v1135_v60, %v1003_v59  ;;  %v1396_v4 = vor.u32 %v1134_v61, %v1005_v63  ;;  %v1011_v6 = vld [vmem:[#allocation3 + $0x8] sm:$0xf] }
  0x1b   :  { %233 = vmatpush.bf16.msra.mxu1 %v1356_v31  ;;  %245 = vmatpush.bf16.msra.mxu2 %v1359_v35  ;;  %v1399_v5 = vor.u32 %v1139_v1, %v1023_v0  ;;  %v1136_v8 = vld [vmem:[#allocation3 + $0x10] sm:$0xf0]  ;;  %v1301_v12 = vmov 0.0|0.0   ;;  %v83_v13 = vld [vmem:[%s1684_s0] sm:$0xff]  ;;  %v84_v51 = vld [vmem:[%s1684_s0 + $0x8] sm:$0xf] }
  0x1c   :  { %v1405_v9 = vor.u32 %v1136_v8, %v1011_v6  ;;  %v85_v14 = vunpack.c.l.bf16 %v83_v13  ;;  %v86_v15 = vunpack.c.h.bf16 %v83_v13  ;;  %v1467_v43 = vld [vmem:[#allocation5] ss:$0 sm:$0xff]  ;;  %v87_v59 = vunpack.c.l.bf16 %v84_v51 }
  0x1e   :  { %221 = vmatpush.bf16.msra.mxu0 %v1362_v39  ;;  %321 = vmatpush.bf16.msra.mxu3 %v1362_v39 }
  0x1f   :  { %234 = vmatpush.bf16.msra.mxu1 %v1366_v41  ;;  %246 = vmatpush.bf16.msra.mxu2 %v1369_v44 }
  0x22   :  { %222 = vmatpush.bf16.msra.mxu0 %v1372_v48  ;;  %322 = vmatpush.bf16.msra.mxu3 %v1372_v48 }
  0x23   :  { %235 = vmatpush.bf16.msra.mxu1 %v1376_v49  ;;  %247 = vmatpush.bf16.msra.mxu2 %v1379_v53 }
  0x26   :  { %223 = vmatpush.bf16.msra.mxu0 %v1382_v57  ;;  %323 = vmatpush.bf16.msra.mxu3 %v1382_v57 }
  0x27   :  { %236 = vmatpush.bf16.msra.mxu1 %v1386_v58  ;;  %248 = vmatpush.bf16.msra.mxu2 %v1389_v62 }
  0x2a   :  { %224 = vmatpush.bf16.msra.mxu0 %v1392_v2  ;;  %324 = vmatpush.bf16.msra.mxu3 %v1392_v2 }
  0x2b   :  { %237 = vmatpush.bf16.msra.mxu1 %v1396_v4  ;;  %249 = vmatpush.bf16.msra.mxu2 %v1399_v5 }
  0x2d   :  { %225 = vmatmul.bf16.vlgmr.msra.gmra.mxu0 %v1301_v12 }
  0x2e   :  { %330 = vmatpush.bf16.msrb.mxu0 %v1330_v7  ;;  %428 = vmatpush.bf16.msrb.mxu3 %v1330_v7 }
  0x2f   :  { %343 = vmatpush.bf16.msrb.mxu1 %v1339_v18  ;;  %250 = vmatpush.bf16.msra.mxu2 %v1405_v9 }
  0x30   :  { %238 = vmatmul.bf16.vlgmr.msra.gmra.mxu1 %v1301_v12 }
  0x32   :  { %331 = vmatpush.bf16.msrb.mxu0 %v1337_v11  ;;  %429 = vmatpush.bf16.msrb.mxu3 %v1337_v11 }
  0x33   :  { %344 = vmatpush.bf16.msrb.mxu1 %v1349_v26  ;;  %415 = vmatpush.bf16.msrb.mxu2 %v1328_v3 }
  0x34   :  { %251 = vmatmul.bf16.vlgmr.msra.gmra.mxu2 %v1301_v12 }
  0x36   :  { %332 = vmatpush.bf16.msrb.mxu0 %v1346_v22  ;;  %430 = vmatpush.bf16.msrb.mxu3 %v1346_v22 }
  0x37   :  { %345 = vmatpush.bf16.msrb.mxu1 %v1359_v35  ;;  %416 = vmatpush.bf16.msrb.mxu2 %v1333_v10 }
  0x3a   :  { %333 = vmatpush.bf16.msrb.mxu0 %v1356_v31  ;;  %431 = vmatpush.bf16.msrb.mxu3 %v1356_v31 }
  0x3b   :  { %346 = vmatpush.bf16.msrb.mxu1 %v1369_v44  ;;  %417 = vmatpush.bf16.msrb.mxu2 %v1342_v19 }
  0x3e   :  { %334 = vmatpush.bf16.msrb.mxu0 %v1366_v41  ;;  %432 = vmatpush.bf16.msrb.mxu3 %v1366_v41 }
  0x3f   :  { %347 = vmatpush.bf16.msrb.mxu1 %v1379_v53  ;;  %418 = vmatpush.bf16.msrb.mxu2 %v1352_v30 }
  0x42   :  { %335 = vmatpush.bf16.msrb.mxu0 %v1376_v49  ;;  %433 = vmatpush.bf16.msrb.mxu3 %v1376_v49 }
  0x43   :  { %348 = vmatpush.bf16.msrb.mxu1 %v1389_v62  ;;  %419 = vmatpush.bf16.msrb.mxu2 %v1362_v39 }
  0x46   :  { %336 = vmatpush.bf16.msrb.mxu0 %v1386_v58  ;;  %434 = vmatpush.bf16.msrb.mxu3 %v1386_v58 }
  0x47   :  { %349 = vmatpush.bf16.msrb.mxu1 %v1399_v5  ;;  %420 = vmatpush.bf16.msrb.mxu2 %v1372_v48 }
  0x4a   :  { %337 = vmatpush.bf16.msrb.mxu0 %v1396_v4  ;;  %435 = vmatpush.bf16.msrb.mxu3 %v1396_v4 }
  0x4b   :  { %350 = vmatpush.bf16.msrb.mxu1 %v1405_v9  ;;  %421 = vmatpush.bf16.msrb.mxu2 %v1382_v57 }
  0x4e   :  { %441 = vmatpush.bf16.msra.mxu0 %v1339_v18 }
  0x4f   :  { %513 = vmatpush.bf16.msra.mxu1 %v1328_v3  ;;  %422 = vmatpush.bf16.msrb.mxu2 %v1392_v2 }
  0x52   :  { %442 = vmatpush.bf16.msra.mxu0 %v1349_v26 }
  0x53   :  { %526 = vmatpush.bf16.msra.mxu2 %v1330_v7  ;;  %514 = vmatpush.bf16.msra.mxu1 %v1333_v10 }
  0x56   :  { %443 = vmatpush.bf16.msra.mxu0 %v1359_v35 }
  0x57   :  { %527 = vmatpush.bf16.msra.mxu2 %v1337_v11  ;;  %515 = vmatpush.bf16.msra.mxu1 %v1342_v19 }
  0x5a   :  { %444 = vmatpush.bf16.msra.mxu0 %v1369_v44 }
  0x5b   :  { %528 = vmatpush.bf16.msra.mxu2 %v1346_v22  ;;  %516 = vmatpush.bf16.msra.mxu1 %v1352_v30 }
  0x5e   :  { %445 = vmatpush.bf16.msra.mxu0 %v1379_v53 }
  0x5f   :  { %529 = vmatpush.bf16.msra.mxu2 %v1356_v31  ;;  %517 = vmatpush.bf16.msra.mxu1 %v1362_v39 }
  0x62   :  { %446 = vmatpush.bf16.msra.mxu0 %v1389_v62 }
  0x63   :  { %530 = vmatpush.bf16.msra.mxu2 %v1366_v41  ;;  %518 = vmatpush.bf16.msra.mxu1 %v1372_v48 }
  0x66   :  { %447 = vmatpush.bf16.msra.mxu0 %v1399_v5 }
  0x67   :  { %531 = vmatpush.bf16.msra.mxu2 %v1376_v49  ;;  %519 = vmatpush.bf16.msra.mxu1 %v1382_v57 }
  0x6a   :  { %448 = vmatpush.bf16.msra.mxu0 %v1405_v9 }
  0x6b   :  { %532 = vmatpush.bf16.msra.mxu2 %v1386_v58  ;;  %520 = vmatpush.bf16.msra.mxu1 %v1392_v2 }
  0x6f   :  { %533 = vmatpush.bf16.msra.mxu2 %v1396_v4 }
  0xaa   :  { %v226_v16 = vpop.f32.mrf.mxu0 }
  0xab   :  { %v256_v17 = vadd.f32 %v226_v16, %v85_v14 }
  0xad   :  { %v239_v20 = vpop.f32.mrf.mxu1  ;;  %v1097_v23 = vmul.f32 -1.442695, %v256_v17 }
  0xae   :  { %v276_v21 = vadd.f32 %v239_v20, %v86_v15 }
  0xaf   :  { %1164 = vpow2.f32 %v1097_v23 }
  0xb0   :  { %v1098_v24 = vmul.f32 -1.442695, %v276_v21 }
  0xb2   :  { %1166 = vpow2.f32 %v1098_v24  ;;  %v228_v25 = vpop.f32.mrf.mxu0  ;;  %v1099_v24 = vld [vmem:[%s1684_s0 + $0xc] sm:$0xff] }
  0xb3   :  { %v314_v25 = vunpack.c.h.bf16 %v1099_v24 }
  0xb5   :  { %v241_v27 = vpop.f32.mrf.mxu1  ;;  %v1165_v28 = vpop.eup %1164 }
  0xb6   :  { %v260_v33 = vadd.f32 1.0, %v1165_v28 }
  0xb7   :  { %v252_v29 = vpop.f32.mrf.mxu2 }
  0xb8   :  { %v1167_v32 = vpop.eup %1166  ;;  %1168 = vrcp.f32 %v260_v33  ;;  %v272_v46 = vand.u32 2147483648, %v260_v33  ;;  %v270_v50 = vand.u32 2147483647, %v260_v33  ;;  %vm266_vm1 = vweird.f32 %v260_v33 }
  0xb9   :  { %v280_v34 = vadd.f32 1.0, %v1167_v32  ;;  %v299_v54 = vadd.f32 %v1467_v43, %v252_v29  ;;  %v313_v32 = vunpack.c.l.bf16 %v1099_v24 }
  0xba   :  { %v273_v56 = vor.u32 1.1754944e-38, %v272_v46  ;;  %vm271_vm3 = vcmp.eq.f32.partialorder %v270_v50, 8.507059e+37 }
  0xbb   :  { %1170 = vrcp.f32 %v280_v34  ;;  %vm286_vm4 = vweird.f32 %v280_v34  ;;  %v292_v6 = vand.u32 2147483648, %v280_v34  ;;  %v290_v12 = vand.u32 2147483647, %v280_v34 }
  0xbd   :  { %v293_v13 = vor.u32 1.1754944e-38, %v292_v6  ;;  %vm291_vm7 = vcmp.eq.f32.partialorder %v290_v12, 8.507059e+37 }
  0xbe   :  { %v1169_v37 = vpop.eup %1168 }
  0xbf   :  { %v254_v36 = vpop.f32.mrf.mxu2  ;;  %v262_v40 = vmul.f32 %v1169_v37, %v260_v33  ;;  %vm267_vm0 = vweird.f32 %v1169_v37 }
  0xc0   :  { %vm268_vm2 = vmor %vm266_vm1, %vm267_vm0 }
  0xc1   :  { %v1171_v38 = vpop.eup %1170  ;;  %v263_v42 = vsub.f32 1.0, %v262_v40 }
  0xc2   :  { %v282_v45 = vmul.f32 %v1171_v38, %v280_v34  ;;  %vm287_vm5 = vweird.f32 %v1171_v38 }
  0xc3   :  { %v264_v47 = vmul.f32 %v1169_v37, %v263_v42  ;;  %vm288_vm6 = vmor %vm286_vm4, %vm287_vm5 }
  0xc4   :  { %v283_v55 = vsub.f32 1.0, %v282_v45 }
  0xc5   :  { %v265_v52 = vadd.f32 %v1169_v37, %v264_v47 }
  0xc6   :  { %v284_v0 = vmul.f32 %v1171_v38, %v283_v55 }
  0xc7   :  { %v269_v60 = vsel %vm268_vm2, %v1169_v37, %v265_v52 }
  0xc8   :  { %v274_v61 = vsel %vm271_vm3, %v273_v56, %v269_v60  ;;  %v285_v8 = vadd.f32 %v1171_v38, %v284_v0 }
  0xc9   :  { %v300_v63 = vmul.f32 %v299_v54, %v274_v61 }
  0xca   :  { %v289_v14 = vsel %vm288_vm6, %v1171_v38, %v285_v8 }
  0xcb   :  { %v301_v1 = vadd.f32 %v300_v63, %v87_v59  ;;  %v294_v17 = vsel %vm291_vm7, %v293_v13, %v289_v14  ;;  %v1100_v63 = vld [vmem:[%s1684_s0 + $0x14] sm:$0xf] }
  0xcc   :  { %v315_v13 = vunpack.c.l.bf16 %v1100_v63 }
  0xcd   :  { %1172 = vtanh.f32 %v301_v1 }
  0xd3   :  { %v1173_v15 = vpop.eup %1172 }
  0xd4   :  { %v303_v16 = vsub.f32 0.0, %v1173_v15 }
  0xd6   :  { %v304_v20 = vmul.f32 %v303_v16, %v294_v17 }
  0xd8   :  { %v1473_v21 = vadd.f32 %v1173_v15, %v304_v20 }
  0xda   :  { %v307_v23 = vpack.c.bf16 %v1473_v21, %v1473_v21 }
  0xdc   :  { %308 = vst [vmem:[%s1687_s3] sm:$0xf] %v307_v23  ;;  %325 = vmatmul.bf16.vlgmr.msra.gmra.mxu3 %v307_v23  ;;  %338 = vmatmul.bf16.vlgmr.msrb.gmra.mxu0 %v307_v23 }
  0xdd   :  { %351 = vmatmul.bf16.vlgmr.msrb.gmra.mxu1 %v307_v23  ;;  %539 = vmatpush.bf16.msra.mxu3 %v1339_v18 }
  0xde   :  { %611 = vmatpush.bf16.msrb.mxu0 %v1328_v3  ;;  %624 = vmatpush.bf16.msrb.mxu1 %v1330_v7 }
  0xe1   :  { %540 = vmatpush.bf16.msra.mxu3 %v1349_v26 }
  0xe2   :  { %612 = vmatpush.bf16.msrb.mxu0 %v1333_v10  ;;  %625 = vmatpush.bf16.msrb.mxu1 %v1337_v11 }
  0xe5   :  { %541 = vmatpush.bf16.msra.mxu3 %v1359_v35 }
  0xe6   :  { %613 = vmatpush.bf16.msrb.mxu0 %v1342_v19  ;;  %626 = vmatpush.bf16.msrb.mxu1 %v1346_v22 }
  0xe9   :  { %542 = vmatpush.bf16.msra.mxu3 %v1369_v44 }
  0xea   :  { %614 = vmatpush.bf16.msrb.mxu0 %v1352_v30  ;;  %627 = vmatpush.bf16.msrb.mxu1 %v1356_v31 }
  0xed   :  { %543 = vmatpush.bf16.msra.mxu3 %v1379_v53 }
  0xee   :  { %615 = vmatpush.bf16.msrb.mxu0 %v1362_v39  ;;  %628 = vmatpush.bf16.msrb.mxu1 %v1366_v41 }
  0xf1   :  { %544 = vmatpush.bf16.msra.mxu3 %v1389_v62 }
  0xf2   :  { %616 = vmatpush.bf16.msrb.mxu0 %v1372_v48  ;;  %629 = vmatpush.bf16.msrb.mxu1 %v1376_v49 }
  0xf5   :  { %545 = vmatpush.bf16.msra.mxu3 %v1399_v5 }
  0xf6   :  { %617 = vmatpush.bf16.msrb.mxu0 %v1382_v57  ;;  %630 = vmatpush.bf16.msrb.mxu1 %v1386_v58 }
  0xf9   :  { %546 = vmatpush.bf16.msra.mxu3 %v1405_v9 }
  0xfa   :  { %618 = vmatpush.bf16.msrb.mxu0 %v1392_v2  ;;  %631 = vmatpush.bf16.msrb.mxu1 %v1396_v4 }
 0x159   :  { %v339_v27 = vpop.f32.mrf.mxu0 }
 0x15a   :  { %v376_v28 = vadd.f32 %v339_v27, %v314_v25  ;;  %v352_v29 = vpop.f32.mrf.mxu1 }
 0x15b   :  { %v396_v8 = vadd.f32 %v1467_v43, %v352_v29 }
 0x15c   :  { %v1102_v33 = vmul.f32 -1.442695, %v376_v28 }
 0x15e   :  { %1174 = vpow2.f32 %v1102_v33 }
 0x15f   :  { %v326_v34 = vpop.f32.mrf.mxu3 }
 0x160   :  { %v356_v36 = vadd.f32 %v326_v34, %v313_v32 }
 0x161   :  { %v341_v37 = vpop.f32.mrf.mxu0 }
 0x162   :  { %v1101_v38 = vmul.f32 -1.442695, %v356_v36  ;;  %v354_v40 = vpop.f32.mrf.mxu1 }
 0x164   :  { %1176 = vpow2.f32 %v1101_v38  ;;  %v1175_v42 = vpop.eup %1174 }
 0x165   :  { %v380_v47 = vadd.f32 1.0, %v1175_v42 }
 0x167   :  { %v328_v45 = vpop.f32.mrf.mxu3  ;;  %v392_v23 = vand.u32 2147483648, %v380_v47  ;;  %vm386_vm13 = vweird.f32 %v380_v47  ;;  %v390_v24 = vand.u32 2147483647, %v380_v47 }
 0x169   :  { %v393_v28 = vor.u32 1.1754944e-38, %v392_v23  ;;  %vm391_vm15 = vcmp.eq.f32.partialorder %v390_v24, 8.507059e+37 }
 0x16a   :  { %v1177_v46 = vpop.eup %1176 }
 0x16b   :  { %v360_v50 = vadd.f32 1.0, %v1177_v46 }
 0x16d   :  { %1178 = vrcp.f32 %v360_v50  ;;  %v372_v59 = vand.u32 2147483648, %v360_v50  ;;  %v370_v61 = vand.u32 2147483647, %v360_v50  ;;  %vm366_vm9 = vweird.f32 %v360_v50 }
 0x16e   :  { %1180 = vrcp.f32 %v380_v47 }
 0x16f   :  { %v373_v6 = vor.u32 1.1754944e-38, %v372_v59  ;;  %vm371_vm11 = vcmp.eq.f32.partialorder %v370_v61, 8.507059e+37 }
 0x173   :  { %v1179_v51 = vpop.eup %1178 }
 0x174   :  { %v1181_v52 = vpop.eup %1180  ;;  %v362_v54 = vmul.f32 %v1179_v51, %v360_v50  ;;  %vm367_vm8 = vweird.f32 %v1179_v51 }
 0x175   :  { %v382_v56 = vmul.f32 %v1181_v52, %v380_v47  ;;  %vm368_vm10 = vmor %vm366_vm9, %vm367_vm8  ;;  %vm387_vm12 = vweird.f32 %v1181_v52 }
 0x176   :  { %v363_v55 = vsub.f32 1.0, %v362_v54  ;;  %vm388_vm14 = vmor %vm386_vm13, %vm387_vm12 }
 0x177   :  { %v383_v1 = vsub.f32 1.0, %v382_v56 }
 0x178   :  { %v364_v60 = vmul.f32 %v1179_v51, %v363_v55 }
 0x179   :  { %v384_v16 = vmul.f32 %v1181_v52, %v383_v1 }
 0x17a   :  { %v365_v0 = vadd.f32 %v1179_v51, %v364_v60 }
 0x17b   :  { %v385_v20 = vadd.f32 %v1181_v52, %v384_v16 }
 0x17c   :  { %v369_v12 = vsel %vm368_vm10, %v1179_v51, %v365_v0 }
 0x17d   :  { %v374_v14 = vsel %vm371_vm11, %v373_v6, %v369_v12  ;;  %v389_v25 = vsel %vm388_vm14, %v1181_v52, %v385_v20 }
 0x17e   :  { %v397_v15 = vmul.f32 %v396_v8, %v374_v14  ;;  %v394_v32 = vsel %vm391_vm15, %v393_v28, %v389_v25 }
 0x180   :  { %v398_v17 = vadd.f32 %v397_v15, %v315_v13  ;;  %v1105_v15 = vld [vmem:[%s1684_s0 + $0x20] sm:$0xf] }
 0x181   :  { %v413_v25 = vunpack.c.l.bf16 %v1105_v15 }
 0x182   :  { %1182 = vtanh.f32 %v398_v17 }
 0x188   :  { %v1183_v27 = vpop.eup %1182 }
 0x189   :  { %v400_v29 = vsub.f32 %v1473_v21, %v1183_v27  ;;  %v1104_v21 = vld [vmem:[%s1684_s0 + $0x18] sm:$0xff] }
 0x18a   :  { %v411_v38 = vunpack.c.l.bf16 %v1104_v21  ;;  %v412_v40 = vunpack.c.h.bf16 %v1104_v21 }
 0x18b   :  { %v401_v33 = vmul.f32 %v400_v29, %v394_v32 }
 0x18d   :  { %v1512_v34 = vadd.f32 %v1183_v27, %v401_v33 }
 0x18f   :  { %v404_v36 = vpack.c.bf16 %v1512_v34, %v1512_v34 }
 0x191   :  { %1103 = vst [vmem:[%s1687_s3 + $0x4] sm:$0xf] %v404_v36  ;;  %423 = vmatmul.bf16.vlgmr.msrb.gmra.mxu2 %v404_v36  ;;  %436 = vmatmul.bf16.vlgmr.msrb.gmra.mxu3 %v404_v36 }
 0x192   :  { %449 = vmatmul.bf16.vlgmr.msra.gmra.mxu0 %v404_v36  ;;  %637 = vmatpush.bf16.msrb.mxu2 %v1339_v18 }
 0x193   :  { %709 = vmatpush.bf16.msrb.mxu3 %v1328_v3  ;;  %722 = vmatpush.bf16.msra.mxu0 %v1330_v7 }
 0x196   :  { %638 = vmatpush.bf16.msrb.mxu2 %v1349_v26 }
 0x197   :  { %710 = vmatpush.bf16.msrb.mxu3 %v1333_v10  ;;  %723 = vmatpush.bf16.msra.mxu0 %v1337_v11 }
 0x19a   :  { %639 = vmatpush.bf16.msrb.mxu2 %v1359_v35 }
 0x19b   :  { %711 = vmatpush.bf16.msrb.mxu3 %v1342_v19  ;;  %724 = vmatpush.bf16.msra.mxu0 %v1346_v22 }
 0x19e   :  { %640 = vmatpush.bf16.msrb.mxu2 %v1369_v44 }
 0x19f   :  { %712 = vmatpush.bf16.msrb.mxu3 %v1352_v30  ;;  %725 = vmatpush.bf16.msra.mxu0 %v1356_v31 }
 0x1a2   :  { %641 = vmatpush.bf16.msrb.mxu2 %v1379_v53 }
 0x1a3   :  { %713 = vmatpush.bf16.msrb.mxu3 %v1362_v39  ;;  %726 = vmatpush.bf16.msra.mxu0 %v1366_v41 }
 0x1a6   :  { %642 = vmatpush.bf16.msrb.mxu2 %v1389_v62 }
 0x1a7   :  { %714 = vmatpush.bf16.msrb.mxu3 %v1372_v48  ;;  %727 = vmatpush.bf16.msra.mxu0 %v1376_v49 }
 0x1aa   :  { %643 = vmatpush.bf16.msrb.mxu2 %v1399_v5 }
 0x1ab   :  { %715 = vmatpush.bf16.msrb.mxu3 %v1382_v57  ;;  %728 = vmatpush.bf16.msra.mxu0 %v1386_v58 }
 0x1ae   :  { %644 = vmatpush.bf16.msrb.mxu2 %v1405_v9 }
 0x1af   :  { %716 = vmatpush.bf16.msrb.mxu3 %v1392_v2  ;;  %729 = vmatpush.bf16.msra.mxu0 %v1396_v4 }
 0x20f   :  { %v450_v37 = vpop.f32.mrf.mxu0 }
 0x210   :  { %v494_v23 = vadd.f32 %v1467_v43, %v450_v37 }
 0x214   :  { %v424_v42 = vpop.f32.mrf.mxu2  ;;  %v437_v45 = vpop.f32.mrf.mxu3 }
 0x215   :  { %v454_v46 = vadd.f32 %v424_v42, %v411_v38  ;;  %v474_v47 = vadd.f32 %v437_v45, %v412_v40 }
 0x217   :  { %v1106_v50 = vmul.f32 -1.442695, %v454_v46  ;;  %v1107_v51 = vmul.f32 -1.442695, %v474_v47  ;;  %v452_v52 = vpop.f32.mrf.mxu0 }
 0x219   :  { %1184 = vpow2.f32 %v1106_v50 }
 0x21a   :  { %1186 = vpow2.f32 %v1107_v51 }
 0x21c   :  { %v426_v54 = vpop.f32.mrf.mxu2  ;;  %v439_v55 = vpop.f32.mrf.mxu3 }
 0x21f   :  { %v1185_v56 = vpop.eup %1184 }
 0x220   :  { %v1187_v59 = vpop.eup %1186  ;;  %v458_v60 = vadd.f32 1.0, %v1185_v56 }
 0x221   :  { %v478_v61 = vadd.f32 1.0, %v1187_v59 }
 0x222   :  { %1188 = vrcp.f32 %v458_v60  ;;  %v470_v8 = vand.u32 2147483648, %v458_v60  ;;  %v468_v14 = vand.u32 2147483647, %v458_v60  ;;  %vm464_vm1 = vweird.f32 %v458_v60 }
 0x223   :  { %1190 = vrcp.f32 %v478_v61  ;;  %v490_v36 = vand.u32 2147483648, %v478_v61  ;;  %vm484_vm5 = vweird.f32 %v478_v61  ;;  %v488_v21 = vand.u32 2147483647, %v478_v61 }
 0x224   :  { %v471_v17 = vor.u32 1.1754944e-38, %v470_v8  ;;  %vm469_vm3 = vcmp.eq.f32.partialorder %v468_v14, 8.507059e+37 }
 0x225   :  { %v491_v42 = vor.u32 1.1754944e-38, %v490_v36  ;;  %vm489_vm7 = vcmp.eq.f32.partialorder %v488_v21, 8.507059e+37 }
 0x228   :  { %v1189_v63 = vpop.eup %1188 }
 0x229   :  { %v1191_v0 = vpop.eup %1190  ;;  %v460_v1 = vmul.f32 %v1189_v63, %v458_v60  ;;  %vm465_vm0 = vweird.f32 %v1189_v63 }
 0x22a   :  { %v480_v12 = vmul.f32 %v1191_v0, %v478_v61  ;;  %vm466_vm2 = vmor %vm464_vm1, %vm465_vm0  ;;  %vm485_vm4 = vweird.f32 %v1191_v0 }
 0x22b   :  { %v461_v6 = vsub.f32 1.0, %v460_v1  ;;  %vm486_vm6 = vmor %vm484_vm5, %vm485_vm4 }
 0x22c   :  { %v481_v20 = vsub.f32 1.0, %v480_v12 }
 0x22d   :  { %v462_v13 = vmul.f32 %v1189_v63, %v461_v6 }
 0x22e   :  { %v482_v29 = vmul.f32 %v1191_v0, %v481_v20 }
 0x22f   :  { %v463_v16 = vadd.f32 %v1189_v63, %v462_v13 }
 0x230   :  { %v483_v33 = vadd.f32 %v1191_v0, %v482_v29 }
 0x231   :  { %v467_v24 = vsel %vm466_vm2, %v1189_v63, %v463_v16 }
 0x232   :  { %v472_v27 = vsel %vm469_vm3, %v471_v17, %v467_v24  ;;  %v487_v38 = vsel %vm486_vm6, %v1191_v0, %v483_v33 }
 0x233   :  { %v495_v28 = vmul.f32 %v494_v23, %v472_v27  ;;  %v492_v45 = vsel %vm489_vm7, %v491_v42, %v487_v38  ;;  %v1110_v23 = vld [vmem:[%s1684_s0 + $0x2c] sm:$0xf] }
 0x235   :  { %v496_v32 = vadd.f32 %v495_v28, %v413_v25 }
 0x237   :  { %1192 = vtanh.f32 %v496_v32  ;;  %v511_v32 = vunpack.c.l.bf16 %v1110_v23 }
 0x23d   :  { %v1193_v40 = vpop.eup %1192 }
 0x23e   :  { %v498_v37 = vsub.f32 %v1512_v34, %v1193_v40  ;;  %v1109_v34 = vld [vmem:[%s1684_s0 + $0x24] sm:$0xff] }
 0x23f   :  { %v509_v51 = vunpack.c.l.bf16 %v1109_v34  ;;  %v510_v56 = vunpack.c.h.bf16 %v1109_v34 }
 0x240   :  { %v499_v46 = vmul.f32 %v498_v37, %v492_v45 }
 0x242   :  { %v1551_v47 = vadd.f32 %v1193_v40, %v499_v46 }
 0x244   :  { %v502_v50 = vpack.c.bf16 %v1551_v47, %v1551_v47 }
 0x246   :  { %1108 = vst [vmem:[%s1687_s3 + $0x8] sm:$0xf] %v502_v50  ;;  %521 = vmatmul.bf16.vlgmr.msra.gmra.mxu1 %v502_v50  ;;  %534 = vmatmul.bf16.vlgmr.msra.gmra.mxu2 %v502_v50 }
 0x247   :  { %547 = vmatmul.bf16.vlgmr.msra.gmra.mxu3 %v502_v50  ;;  %735 = vmatpush.bf16.msra.mxu1 %v1339_v18 }
 0x248   :  { %807 = vmatpush.bf16.msra.mxu2 %v1328_v3  ;;  %820 = vmatpush.bf16.msra.mxu3 %v1330_v7 }
 0x24b   :  { %736 = vmatpush.bf16.msra.mxu1 %v1349_v26 }
 0x24c   :  { %808 = vmatpush.bf16.msra.mxu2 %v1333_v10  ;;  %821 = vmatpush.bf16.msra.mxu3 %v1337_v11 }
 0x24f   :  { %737 = vmatpush.bf16.msra.mxu1 %v1359_v35 }
 0x250   :  { %809 = vmatpush.bf16.msra.mxu2 %v1342_v19  ;;  %822 = vmatpush.bf16.msra.mxu3 %v1346_v22 }
 0x253   :  { %738 = vmatpush.bf16.msra.mxu1 %v1369_v44 }
 0x254   :  { %810 = vmatpush.bf16.msra.mxu2 %v1352_v30  ;;  %823 = vmatpush.bf16.msra.mxu3 %v1356_v31 }
 0x257   :  { %739 = vmatpush.bf16.msra.mxu1 %v1379_v53 }
 0x258   :  { %811 = vmatpush.bf16.msra.mxu2 %v1362_v39  ;;  %824 = vmatpush.bf16.msra.mxu3 %v1366_v41 }
 0x25b   :  { %740 = vmatpush.bf16.msra.mxu1 %v1389_v62 }
 0x25c   :  { %812 = vmatpush.bf16.msra.mxu2 %v1372_v48  ;;  %825 = vmatpush.bf16.msra.mxu3 %v1376_v49 }
 0x25f   :  { %741 = vmatpush.bf16.msra.mxu1 %v1399_v5 }
 0x260   :  { %813 = vmatpush.bf16.msra.mxu2 %v1382_v57  ;;  %826 = vmatpush.bf16.msra.mxu3 %v1386_v58 }
 0x263   :  { %742 = vmatpush.bf16.msra.mxu1 %v1405_v9 }
 0x264   :  { %814 = vmatpush.bf16.msra.mxu2 %v1392_v2  ;;  %827 = vmatpush.bf16.msra.mxu3 %v1396_v4 }
 0x2c3   :  { %v522_v52 = vpop.f32.mrf.mxu1 }
 0x2c4   :  { %v552_v54 = vadd.f32 %v522_v52, %v509_v51 }
 0x2c6   :  { %v1111_v55 = vmul.f32 -1.442695, %v552_v54 }
 0x2c8   :  { %1194 = vpow2.f32 %v1111_v55 }
 0x2c9   :  { %v535_v59 = vpop.f32.mrf.mxu2 }
 0x2ca   :  { %v572_v60 = vadd.f32 %v535_v59, %v510_v56  ;;  %v548_v61 = vpop.f32.mrf.mxu3 }
 0x2cb   :  { %v524_v63 = vpop.f32.mrf.mxu1  ;;  %v592_v38 = vadd.f32 %v1467_v43, %v548_v61 }
 0x2cc   :  { %v1112_v0 = vmul.f32 -1.442695, %v572_v60 }
 0x2ce   :  { %v1195_v1 = vpop.eup %1194  ;;  %1196 = vpow2.f32 %v1112_v0 }
 0x2cf   :  { %v556_v6 = vadd.f32 1.0, %v1195_v1 }
 0x2d1   :  { %1198 = vrcp.f32 %v556_v6  ;;  %v537_v8 = vpop.f32.mrf.mxu2  ;;  %v568_v20 = vand.u32 2147483648, %v556_v6  ;;  %v566_v25 = vand.u32 2147483647, %v556_v6  ;;  %vm562_vm9 = vweird.f32 %v556_v6 }
 0x2d2   :  { %v550_v12 = vpop.f32.mrf.mxu3 }
 0x2d3   :  { %v569_v33 = vor.u32 1.1754944e-38, %v568_v20  ;;  %vm567_vm11 = vcmp.eq.f32.partialorder %v566_v25, 8.507059e+37 }
 0x2d4   :  { %v1197_v13 = vpop.eup %1196 }
 0x2d5   :  { %v576_v14 = vadd.f32 1.0, %v1197_v13 }
 0x2d7   :  { %v1199_v15 = vpop.eup %1198  ;;  %1200 = vrcp.f32 %v576_v14  ;;  %v588_v50 = vand.u32 2147483648, %v576_v14  ;;  %vm582_vm13 = vweird.f32 %v576_v14  ;;  %v586_v34 = vand.u32 2147483647, %v576_v14 }
 0x2d8   :  { %v558_v16 = vmul.f32 %v1199_v15, %v556_v6  ;;  %vm563_vm8 = vweird.f32 %v1199_v15 }
 0x2d9   :  { %vm564_vm10 = vmor %vm562_vm9, %vm563_vm8  ;;  %v589_v54 = vor.u32 1.1754944e-38, %v588_v50  ;;  %vm587_vm15 = vcmp.eq.f32.partialorder %v586_v34, 8.507059e+37 }
 0x2da   :  { %v559_v17 = vsub.f32 1.0, %v558_v16 }
 0x2dc   :  { %v560_v24 = vmul.f32 %v1199_v15, %v559_v17 }
 0x2dd   :  { %v1201_v27 = vpop.eup %1200 }
 0x2de   :  { %v578_v28 = vmul.f32 %v1201_v27, %v576_v14  ;;  %v561_v29 = vadd.f32 %v1199_v15, %v560_v24  ;;  %vm583_vm12 = vweird.f32 %v1201_v27 }
 0x2df   :  { %vm584_vm14 = vmor %vm582_vm13, %vm583_vm12 }
 0x2e0   :  { %v579_v36 = vsub.f32 1.0, %v578_v28  ;;  %v565_v21 = vsel %vm564_vm10, %v1199_v15, %v561_v29  ;;  %v1115_v15 = vld [vmem:[%s1684_s0 + $0x38] sm:$0xf] }
 0x2e1   :  { %v570_v40 = vsel %vm567_vm11, %v569_v33, %v565_v21  ;;  %v609_v23 = vunpack.c.l.bf16 %v1115_v15 }
 0x2e2   :  { %v593_v42 = vmul.f32 %v592_v38, %v570_v40  ;;  %v580_v37 = vmul.f32 %v1201_v27, %v579_v36 }
 0x2e4   :  { %v594_v45 = vadd.f32 %v593_v42, %v511_v32  ;;  %v581_v46 = vadd.f32 %v1201_v27, %v580_v37 }
 0x2e6   :  { %1202 = vtanh.f32 %v594_v45  ;;  %v585_v51 = vsel %vm584_vm14, %v1201_v27, %v581_v46 }
 0x2e7   :  { %v590_v56 = vsel %vm587_vm15, %v589_v54, %v585_v51  ;;  %v1119_v51 = vld [vmem:[%s1684_s0 + $0x3c] sm:$0xff] }
 0x2ec   :  { %v1203_v52 = vpop.eup %1202 }
 0x2ed   :  { %v596_v55 = vsub.f32 %v1551_v47, %v1203_v52 }
 0x2ef   :  { %v597_v59 = vmul.f32 %v596_v55, %v590_v56  ;;  %v705_v55 = vunpack.c.l.bf16 %v1119_v51 }
 0x2f1   :  { %v1590_v60 = vadd.f32 %v1203_v52, %v597_v59  ;;  %v706_v52 = vunpack.c.h.bf16 %v1119_v51 }
 0x2f3   :  { %v600_v61 = vpack.c.bf16 %v1590_v60, %v1590_v60 }
 0x2f5   :  { %1113 = vst [vmem:[%s1687_s3 + $0xc] sm:$0xf] %v600_v61  ;;  %619 = vmatmul.bf16.vlgmr.msrb.gmra.mxu0 %v600_v61  ;;  %632 = vmatmul.bf16.vlgmr.msrb.gmra.mxu1 %v600_v61 }
 0x2f6   :  { %645 = vmatmul.bf16.vlgmr.msrb.gmra.mxu2 %v600_v61  ;;  %833 = vmatpush.bf16.msrb.mxu0 %v1339_v18 }
 0x2f7   :  { %905 = vmatpush.bf16.msrb.mxu1 %v1328_v3  ;;  %918 = vmatpush.bf16.msrb.mxu2 %v1330_v7  ;;  %v1114_v3 = vld [vmem:[%s1684_s0 + $0x30] sm:$0xff] }
 0x2f8   :  { %v607_v7 = vunpack.c.l.bf16 %v1114_v3 }
 0x2fa   :  { %834 = vmatpush.bf16.msrb.mxu0 %v1349_v26 }
 0x2fb   :  { %906 = vmatpush.bf16.msrb.mxu1 %v1333_v10  ;;  %919 = vmatpush.bf16.msrb.mxu2 %v1337_v11  ;;  %v608_v10 = vunpack.c.h.bf16 %v1114_v3 }
 0x2fe   :  { %835 = vmatpush.bf16.msrb.mxu0 %v1359_v35 }
 0x2ff   :  { %907 = vmatpush.bf16.msrb.mxu1 %v1342_v19  ;;  %920 = vmatpush.bf16.msrb.mxu2 %v1346_v22 }
 0x302   :  { %836 = vmatpush.bf16.msrb.mxu0 %v1369_v44 }
 0x303   :  { %908 = vmatpush.bf16.msrb.mxu1 %v1352_v30  ;;  %921 = vmatpush.bf16.msrb.mxu2 %v1356_v31 }
 0x306   :  { %837 = vmatpush.bf16.msrb.mxu0 %v1379_v53 }
 0x307   :  { %909 = vmatpush.bf16.msrb.mxu1 %v1362_v39  ;;  %922 = vmatpush.bf16.msrb.mxu2 %v1366_v41 }
 0x30a   :  { %838 = vmatpush.bf16.msrb.mxu0 %v1389_v62 }
 0x30b   :  { %910 = vmatpush.bf16.msrb.mxu1 %v1372_v48  ;;  %923 = vmatpush.bf16.msrb.mxu2 %v1376_v49 }
 0x30e   :  { %839 = vmatpush.bf16.msrb.mxu0 %v1399_v5 }
 0x30f   :  { %911 = vmatpush.bf16.msrb.mxu1 %v1382_v57  ;;  %924 = vmatpush.bf16.msrb.mxu2 %v1386_v58 }
 0x312   :  { %840 = vmatpush.bf16.msrb.mxu0 %v1405_v9 }
 0x313   :  { %912 = vmatpush.bf16.msrb.mxu1 %v1392_v2  ;;  %925 = vmatpush.bf16.msrb.mxu2 %v1396_v4 }
 0x372   :  { %v620_v11 = vpop.f32.mrf.mxu0  ;;  %v633_v19 = vpop.f32.mrf.mxu1 }
 0x373   :  { %v650_v22 = vadd.f32 %v620_v11, %v607_v7  ;;  %v670_v30 = vadd.f32 %v633_v19, %v608_v10 }
 0x375   :  { %v1116_v31 = vmul.f32 -1.442695, %v650_v22  ;;  %v1117_v39 = vmul.f32 -1.442695, %v670_v30 }
 0x377   :  { %1204 = vpow2.f32 %v1116_v31 }
 0x378   :  { %1206 = vpow2.f32 %v1117_v39 }
 0x379   :  { %v646_v41 = vpop.f32.mrf.mxu2 }
 0x37a   :  { %v622_v48 = vpop.f32.mrf.mxu0  ;;  %v635_v49 = vpop.f32.mrf.mxu1  ;;  %v690_v25 = vadd.f32 %v1467_v43, %v646_v41  ;;  %v1120_v41 = vld [vmem:[%s1684_s0 + $0x44] sm:$0xf] }
 0x37d   :  { %v1205_v57 = vpop.eup %1204 }
 0x37e   :  { %v1207_v58 = vpop.eup %1206  ;;  %v654_v2 = vadd.f32 1.0, %v1205_v57 }
 0x37f   :  { %v674_v4 = vadd.f32 1.0, %v1207_v58 }
 0x380   :  { %1208 = vrcp.f32 %v654_v2  ;;  %v666_v12 = vand.u32 2147483648, %v654_v2  ;;  %v664_v14 = vand.u32 2147483647, %v654_v2  ;;  %vm660_vm1 = vweird.f32 %v654_v2 }
 0x381   :  { %1210 = vrcp.f32 %v674_v4  ;;  %v648_v47 = vpop.f32.mrf.mxu2  ;;  %v686_v36 = vand.u32 2147483648, %v674_v4  ;;  %vm680_vm5 = vweird.f32 %v674_v4  ;;  %v684_v21 = vand.u32 2147483647, %v674_v4 }
 0x382   :  { %v667_v20 = vor.u32 1.1754944e-38, %v666_v12  ;;  %vm665_vm3 = vcmp.eq.f32.partialorder %v664_v14, 8.507059e+37 }
 0x383   :  { %v687_v42 = vor.u32 1.1754944e-38, %v686_v36  ;;  %vm685_vm7 = vcmp.eq.f32.partialorder %v684_v21, 8.507059e+37 }
 0x386   :  { %v1209_v63 = vpop.eup %1208 }
 0x387   :  { %v1211_v0 = vpop.eup %1210  ;;  %v656_v1 = vmul.f32 %v1209_v63, %v654_v2  ;;  %vm661_vm0 = vweird.f32 %v1209_v63 }
 0x388   :  { %v676_v8 = vmul.f32 %v1211_v0, %v674_v4  ;;  %vm662_vm2 = vmor %vm660_vm1, %vm661_vm0  ;;  %vm681_vm4 = vweird.f32 %v1211_v0  ;;  %v707_v4 = vunpack.c.l.bf16 %v1120_v41 }
 0x389   :  { %v657_v6 = vsub.f32 1.0, %v656_v1  ;;  %vm682_vm6 = vmor %vm680_vm5, %vm681_vm4 }
 0x38a   :  { %v677_v17 = vsub.f32 1.0, %v676_v8 }
 0x38b   :  { %v658_v13 = vmul.f32 %v1209_v63, %v657_v6 }
 0x38c   :  { %v678_v29 = vmul.f32 %v1211_v0, %v677_v17 }
 0x38d   :  { %v659_v16 = vadd.f32 %v1209_v63, %v658_v13 }
 0x38e   :  { %v679_v33 = vadd.f32 %v1211_v0, %v678_v29 }
 0x38f   :  { %v663_v24 = vsel %vm662_vm2, %v1209_v63, %v659_v16 }
 0x390   :  { %v668_v27 = vsel %vm665_vm3, %v667_v20, %v663_v24  ;;  %v683_v38 = vsel %vm682_vm6, %v1211_v0, %v679_v33 }
 0x391   :  { %v691_v28 = vmul.f32 %v690_v25, %v668_v27  ;;  %v688_v45 = vsel %vm685_vm7, %v687_v42, %v683_v38  ;;  %v1124_v25 = vld [vmem:[%s1684_s0 + $0x48] sm:$0xff] }
 0x392   :  { %v804_v29 = vunpack.c.h.bf16 %v1124_v25 }
 0x393   :  { %v692_v32 = vadd.f32 %v691_v28, %v609_v23  ;;  %v803_v28 = vunpack.c.l.bf16 %v1124_v25 }
 0x395   :  { %1212 = vtanh.f32 %v692_v32 }
 0x39b   :  { %v1213_v40 = vpop.eup %1212 }
 0x39c   :  { %v694_v37 = vsub.f32 %v1590_v60, %v1213_v40 }
 0x39e   :  { %v695_v46 = vmul.f32 %v694_v37, %v688_v45 }
 0x3a0   :  { %v1629_v50 = vadd.f32 %v1213_v40, %v695_v46 }
 0x3a2   :  { %v698_v34 = vpack.c.bf16 %v1629_v50, %v1629_v50 }
 0x3a4   :  { %1118 = vst [vmem:[%s1687_s3 + $0x10] sm:$0xf] %v698_v34  ;;  %717 = vmatmul.bf16.vlgmr.msrb.gmra.mxu3 %v698_v34  ;;  %730 = vmatmul.bf16.vlgmr.msra.gmra.mxu0 %v698_v34 }
 0x3a5   :  { %743 = vmatmul.bf16.vlgmr.msra.gmra.mxu1 %v698_v34  ;;  %931 = vmatpush.bf16.msrb.mxu3 %v1339_v18 }
 0x3a9   :  { %932 = vmatpush.bf16.msrb.mxu3 %v1349_v26 }
 0x3ad   :  { %933 = vmatpush.bf16.msrb.mxu3 %v1359_v35 }
 0x3b1   :  { %934 = vmatpush.bf16.msrb.mxu3 %v1369_v44 }
 0x3b5   :  { %935 = vmatpush.bf16.msrb.mxu3 %v1379_v53 }
 0x3b9   :  { %936 = vmatpush.bf16.msrb.mxu3 %v1389_v62 }
 0x3bd   :  { %937 = vmatpush.bf16.msrb.mxu3 %v1399_v5 }
 0x3c1   :  { %938 = vmatpush.bf16.msrb.mxu3 %v1405_v9 }
 0x421   :  { %v731_v18 = vpop.f32.mrf.mxu0 }
 0x422   :  { %v768_v54 = vadd.f32 %v731_v18, %v706_v52  ;;  %v744_v26 = vpop.f32.mrf.mxu1 }
 0x423   :  { %v788_v58 = vadd.f32 %v1467_v43, %v744_v26 }
 0x424   :  { %v1122_v35 = vmul.f32 -1.442695, %v768_v54 }
 0x426   :  { %1214 = vpow2.f32 %v1122_v35 }
 0x427   :  { %v718_v56 = vpop.f32.mrf.mxu3 }
 0x428   :  { %v748_v44 = vadd.f32 %v718_v56, %v705_v55 }
 0x429   :  { %v733_v53 = vpop.f32.mrf.mxu0 }
 0x42a   :  { %v1121_v59 = vmul.f32 -1.442695, %v748_v44  ;;  %v746_v62 = vpop.f32.mrf.mxu1  ;;  %v1125_v53 = vld [vmem:[%s1684_s0 + $0x50] sm:$0xf] }
 0x42c   :  { %1216 = vpow2.f32 %v1121_v59  ;;  %v1215_v5 = vpop.eup %1214 }
 0x42d   :  { %v772_v61 = vadd.f32 1.0, %v1215_v5 }
 0x42f   :  { %v720_v60 = vpop.f32.mrf.mxu3  ;;  %v784_v8 = vand.u32 2147483648, %v772_v61  ;;  %vm778_vm13 = vweird.f32 %v772_v61  ;;  %v782_v12 = vand.u32 2147483647, %v772_v61 }
 0x431   :  { %v785_v15 = vor.u32 1.1754944e-38, %v784_v8  ;;  %vm783_vm15 = vcmp.eq.f32.partialorder %v782_v12, 8.507059e+37 }
 0x432   :  { %v1217_v9 = vpop.eup %1216 }
 0x433   :  { %v752_v3 = vadd.f32 1.0, %v1217_v9 }
 0x435   :  { %1218 = vrcp.f32 %v752_v3  ;;  %v764_v30 = vand.u32 2147483648, %v752_v3  ;;  %v762_v39 = vand.u32 2147483647, %v752_v3  ;;  %vm758_vm9 = vweird.f32 %v752_v3 }
 0x436   :  { %1220 = vrcp.f32 %v772_v61 }
 0x437   :  { %v765_v57 = vor.u32 1.1754944e-38, %v764_v30  ;;  %vm763_vm11 = vcmp.eq.f32.partialorder %v762_v39, 8.507059e+37 }
 0x43b   :  { %v1219_v7 = vpop.eup %1218 }
 0x43c   :  { %v1221_v10 = vpop.eup %1220  ;;  %v754_v11 = vmul.f32 %v1219_v7, %v752_v3  ;;  %vm759_vm8 = vweird.f32 %v1219_v7 }
 0x43d   :  { %v774_v22 = vmul.f32 %v1221_v10, %v772_v61  ;;  %vm760_vm10 = vmor %vm758_vm9, %vm759_vm8  ;;  %vm779_vm12 = vweird.f32 %v1221_v10  ;;  %v805_v61 = vunpack.c.l.bf16 %v1125_v53 }
 0x43e   :  { %v755_v19 = vsub.f32 1.0, %v754_v11  ;;  %vm780_vm14 = vmor %vm778_vm13, %vm779_vm12 }
 0x43f   :  { %v775_v49 = vsub.f32 1.0, %v774_v22 }
 0x440   :  { %v756_v31 = vmul.f32 %v1219_v7, %v755_v19 }
 0x441   :  { %v776_v0 = vmul.f32 %v1221_v10, %v775_v49 }
 0x442   :  { %v757_v48 = vadd.f32 %v1219_v7, %v756_v31 }
 0x443   :  { %v777_v6 = vadd.f32 %v1221_v10, %v776_v0 }
 0x444   :  { %v761_v2 = vsel %vm760_vm10, %v1219_v7, %v757_v48 }
 0x445   :  { %v766_v47 = vsel %vm763_vm11, %v765_v57, %v761_v2  ;;  %v781_v13 = vsel %vm780_vm14, %v1221_v10, %v777_v6  ;;  %v1129_v2 = vld [vmem:[%s1684_s0 + $0x54] sm:$0xff] }
 0x446   :  { %v789_v63 = vmul.f32 %v788_v58, %v766_v47  ;;  %v786_v17 = vsel %vm783_vm15, %v785_v15, %v781_v13 }
 0x448   :  { %v790_v1 = vadd.f32 %v789_v63, %v707_v4  ;;  %v901_v4 = vunpack.c.l.bf16 %v1129_v2 }
 0x44a   :  { %1222 = vtanh.f32 %v790_v1  ;;  %v902_v1 = vunpack.c.h.bf16 %v1129_v2 }
 0x450   :  { %v1223_v14 = vpop.eup %1222 }
 0x451   :  { %v792_v16 = vsub.f32 %v1629_v50, %v1223_v14 }
 0x453   :  { %v793_v20 = vmul.f32 %v792_v16, %v786_v17 }
 0x455   :  { %v1652_v23 = vadd.f32 %v1223_v14, %v793_v20 }
 0x457   :  { %v796_v24 = vpack.c.bf16 %v1652_v23, %v1652_v23 }
 0x459   :  { %1123 = vst [vmem:[%s1687_s3 + $0x14] sm:$0xf] %v796_v24  ;;  %815 = vmatmul.bf16.vlgmr.msra.gmra.mxu2 %v796_v24  ;;  %828 = vmatmul.bf16.vlgmr.msra.gmra.mxu3 %v796_v24 }
 0x45a   :  { %841 = vmatmul.bf16.vlgmr.msrb.gmra.mxu0 %v796_v24 }
 0x4d7   :  { %v842_v27 = vpop.f32.mrf.mxu0 }
 0x4d8   :  { %v886_v60 = vadd.f32 %v1467_v43, %v842_v27 }
 0x4dc   :  { %v816_v32 = vpop.f32.mrf.mxu2  ;;  %v829_v33 = vpop.f32.mrf.mxu3 }
 0x4dd   :  { %v846_v36 = vadd.f32 %v816_v32, %v803_v28  ;;  %v866_v21 = vadd.f32 %v829_v33, %v804_v29  ;;  %v1130_v32 = vld [vmem:[%s1684_s0 + $0x5c] sm:$0xf] }
 0x4df   :  { %v1126_v38 = vmul.f32 -1.442695, %v846_v36  ;;  %v1127_v40 = vmul.f32 -1.442695, %v866_v21  ;;  %v844_v42 = vpop.f32.mrf.mxu0 }
 0x4e0   :  { %v903_v42 = vunpack.c.l.bf16 %v1130_v32 }
 0x4e1   :  { %1224 = vpow2.f32 %v1126_v38 }
 0x4e2   :  { %1226 = vpow2.f32 %v1127_v40 }
 0x4e4   :  { %v818_v37 = vpop.f32.mrf.mxu2  ;;  %v831_v45 = vpop.f32.mrf.mxu3 }
 0x4e7   :  { %v1225_v46 = vpop.eup %1224 }
 0x4e8   :  { %v1227_v50 = vpop.eup %1226  ;;  %v850_v34 = vadd.f32 1.0, %v1225_v46 }
 0x4e9   :  { %v870_v51 = vadd.f32 1.0, %v1227_v50  ;;  %v1244_v50 = vld [vmem:[#allocation5] ss:$0 sm:$0xff] }
 0x4ea   :  { %1228 = vrcp.f32 %v850_v34  ;;  %v862_v55 = vand.u32 2147483648, %v850_v34  ;;  %v860_v44 = vand.u32 2147483647, %v850_v34  ;;  %vm856_vm1 = vweird.f32 %v850_v34 }
 0x4eb   :  { %1230 = vrcp.f32 %v870_v51  ;;  %v882_v22 = vand.u32 2147483648, %v870_v51  ;;  %vm876_vm5 = vweird.f32 %v870_v51  ;;  %v880_v30 = vand.u32 2147483647, %v870_v51 }
 0x4ec   :  { %v863_v62 = vor.u32 1.1754944e-38, %v862_v55  ;;  %vm861_vm3 = vcmp.eq.f32.partialorder %v860_v44, 8.507059e+37 }
 0x4ed   :  { %v883_v41 = vor.u32 1.1754944e-38, %v882_v22  ;;  %vm881_vm7 = vcmp.eq.f32.partialorder %v880_v30, 8.507059e+37 }
 0x4f0   :  { %v1229_v52 = vpop.eup %1228 }
 0x4f1   :  { %v1231_v18 = vpop.eup %1230  ;;  %v852_v54 = vmul.f32 %v1229_v52, %v850_v34  ;;  %vm857_vm0 = vweird.f32 %v1229_v52 }
 0x4f2   :  { %v872_v35 = vmul.f32 %v1231_v18, %v870_v51  ;;  %vm858_vm2 = vmor %vm856_vm1, %vm857_vm0  ;;  %vm877_vm4 = vweird.f32 %v1231_v18 }
 0x4f3   :  { %v853_v26 = vsub.f32 1.0, %v852_v54  ;;  %vm878_vm6 = vmor %vm876_vm5, %vm877_vm4 }
 0x4f4   :  { %v873_v5 = vsub.f32 1.0, %v872_v35 }
 0x4f5   :  { %v854_v56 = vmul.f32 %v1229_v52, %v853_v26 }
 0x4f6   :  { %v874_v10 = vmul.f32 %v1231_v18, %v873_v5 }
 0x4f7   :  { %v855_v59 = vadd.f32 %v1229_v52, %v854_v56 }
 0x4f8   :  { %v875_v19 = vadd.f32 %v1231_v18, %v874_v10 }
 0x4f9   :  { %v859_v9 = vsel %vm858_vm2, %v1229_v52, %v855_v59 }
 0x4fa   :  { %v864_v3 = vsel %vm861_vm3, %v863_v62, %v859_v9  ;;  %v879_v31 = vsel %vm878_vm6, %v1231_v18, %v875_v19 }
 0x4fb   :  { %v887_v7 = vmul.f32 %v886_v60, %v864_v3  ;;  %v884_v48 = vsel %vm881_vm7, %v883_v41, %v879_v31 }
 0x4fd   :  { %v888_v11 = vadd.f32 %v887_v7, %v805_v61 }
 0x4ff   :  { %1232 = vtanh.f32 %v888_v11 }
 0x505   :  { %v1233_v39 = vpop.eup %1232 }
 0x506   :  { %v890_v43 = vsub.f32 %v1652_v23, %v1233_v39 }
 0x508   :  { %v891_v49 = vmul.f32 %v890_v43, %v884_v48 }
 0x50a   :  { %v1667_v57 = vadd.f32 %v1233_v39, %v891_v49 }
 0x50c   :  { %v894_v58 = vpack.c.bf16 %v1667_v57, %v1667_v57 }
 0x50e   :  { %1128 = vst [vmem:[%s1687_s3 + $0x18] sm:$0xf] %v894_v58  ;;  %913 = vmatmul.bf16.vlgmr.msrb.gmra.mxu1 %v894_v58  ;;  %926 = vmatmul.bf16.vlgmr.msrb.gmra.mxu2 %v894_v58 }
 0x50f   :  { %939 = vmatmul.bf16.vlgmr.msrb.gmra.mxu3 %v894_v58 }
 0x58b   :  { %v914_v47 = vpop.f32.mrf.mxu1 }
 0x58c   :  { %v944_v63 = vadd.f32 %v914_v47, %v901_v4 }
 0x58e   :  { %v1131_v0 = vmul.f32 -1.442695, %v944_v63 }
 0x590   :  { %1234 = vpow2.f32 %v1131_v0 }
 0x591   :  { %v927_v6 = vpop.f32.mrf.mxu2 }
 0x592   :  { %v964_v8 = vadd.f32 %v927_v6, %v902_v1  ;;  %v940_v12 = vpop.f32.mrf.mxu3 }
 0x593   :  { %v916_v13 = vpop.f32.mrf.mxu1  ;;  %v984_v34 = vadd.f32 %v1244_v50, %v940_v12 }
 0x594   :  { %v1132_v14 = vmul.f32 -1.442695, %v964_v8 }
 0x596   :  { %v1235_v15 = vpop.eup %1234  ;;  %1236 = vpow2.f32 %v1132_v14 }
 0x597   :  { %v948_v16 = vadd.f32 1.0, %v1235_v15 }
 0x599   :  { %1238 = vrcp.f32 %v948_v16  ;;  %v929_v17 = vpop.f32.mrf.mxu2  ;;  %v960_v29 = vand.u32 2147483648, %v948_v16  ;;  %v958_v36 = vand.u32 2147483647, %v948_v16  ;;  %vm954_vm9 = vweird.f32 %v948_v16 }
 0x59a   :  { %v942_v20 = vpop.f32.mrf.mxu3 }
 0x59b   :  { %v961_v37 = vor.u32 1.1754944e-38, %v960_v29  ;;  %vm959_vm11 = vcmp.eq.f32.partialorder %v958_v36, 8.507059e+37 }
 0x59c   :  { %v1237_v23 = vpop.eup %1236 }
 0x59d   :  { %v968_v24 = vadd.f32 1.0, %v1237_v23 }
 0x59f   :  { %v1239_v25 = vpop.eup %1238  ;;  %1240 = vrcp.f32 %v968_v24  ;;  %v980_v55 = vand.u32 2147483648, %v968_v24  ;;  %vm974_vm13 = vweird.f32 %v968_v24  ;;  %v978_v35 = vand.u32 2147483647, %v968_v24 }
 0x5a0   :  { %v950_v27 = vmul.f32 %v1239_v25, %v948_v16  ;;  %vm955_vm8 = vweird.f32 %v1239_v25 }
 0x5a1   :  { %vm956_vm10 = vmor %vm954_vm9, %vm955_vm8  ;;  %v981_v53 = vor.u32 1.1754944e-38, %v980_v55  ;;  %vm979_vm15 = vcmp.eq.f32.partialorder %v978_v35, 8.507059e+37 }
 0x5a2   :  { %v951_v28 = vsub.f32 1.0, %v950_v27 }
 0x5a4   :  { %v952_v33 = vmul.f32 %v1239_v25, %v951_v28 }
 0x5a5   :  { %v1241_v21 = vpop.eup %1240 }
 0x5a6   :  { %v970_v38 = vmul.f32 %v1241_v21, %v968_v24  ;;  %v953_v40 = vadd.f32 %v1239_v25, %v952_v33  ;;  %vm975_vm12 = vweird.f32 %v1241_v21 }
 0x5a7   :  { %vm976_vm14 = vmor %vm974_vm13, %vm975_vm12 }
 0x5a8   :  { %v971_v45 = vsub.f32 1.0, %v970_v38  ;;  %v957_v46 = vsel %vm956_vm10, %v1239_v25, %v953_v40 }
 0x5a9   :  { %v962_v51 = vsel %vm959_vm11, %v961_v37, %v957_v46 }
 0x5aa   :  { %v985_v52 = vmul.f32 %v984_v34, %v962_v51  ;;  %v972_v18 = vmul.f32 %v1241_v21, %v971_v45 }
 0x5ac   :  { %v986_v54 = vadd.f32 %v985_v52, %v903_v42  ;;  %v973_v26 = vadd.f32 %v1241_v21, %v972_v18 }
 0x5ae   :  { %1242 = vtanh.f32 %v986_v54  ;;  %v977_v56 = vsel %vm976_vm14, %v1241_v21, %v973_v26 }
 0x5af   :  { %v982_v62 = vsel %vm979_vm15, %v981_v53, %v977_v56 }
 0x5b4   :  { %v1243_v44 = vpop.eup %1242 }
 0x5b5   :  { %v988_v59 = vsub.f32 %v1667_v57, %v1243_v44 }
 0x5b7   :  { %v989_v5 = vmul.f32 %v988_v59, %v982_v62 }
 0x5b9   :  { %v990_v60 = vadd.f32 %v1243_v44, %v989_v5 }
 0x5bb   :  { %v992_v9 = vpack.c.bf16 %v990_v60, %v990_v60 }
 0x5bd   :  { %1133 = vst [vmem:[%s1687_s3 + $0x1c] sm:$0xf] %v992_v9 }
 0x5be   :  { %999 = vsyncpa [#allocation4], 1 }
 0x5bf   :  { %1000 = vsyncpa [#allocation6], 1 }

// kernel: _forward_impl.7
= control target key start
LH: loop header
LB: loop body
LE: loop exit
PB: predicated region body
PF: predicated region fallthrough
CT: control target
= control target key end

     0   :  { %10 = vsyncpa [#allocation4], 0  ;;  %s1807_s0 = inlined_call_operand.vmem [shape: bf16[8,8,384], index: 0, kind: input, shape index: {}]   ;;  %s1808_s1 = inlined_call_operand.hbm [shape: bf16[128,384], index: 1, kind: input, shape index: {}]   ;;  %s1809_s2 = inlined_call_operand.vmem [shape: f32[1,128], index: 2, kind: input, shape index: {}]   ;;  %s1810_s3 = inlined_call_operand.vmem [shape: bf16[128,128], index: 3, kind: input, shape index: {}]   ;;  %s1811_s4 = inlined_call_operand.hbm [shape: f32[1,128], index: 4, kind: input, shape index: {}]   ;;  %s1812_s5 = inlined_call_operand.vmem [shape: f32[8,128], index: 5, kind: output, shape index: {}]  }
   0x1   :  { %s18_s20 = sshll.u32 %s1808_s1, 4  ;;  %s19_s20 = int_to_ptr.hbm [resolvable:$true] %s18_s20 }
   0x2   :  { %11 = vsyncpa [#allocation6], 0  ;;  %s1401_s21 = smov [#allocation3]   ;;  %s36_s25 = sshll.u32 %s1811_s4, 4  ;;  %s37_s25 = int_to_ptr.hbm [resolvable:$true] %s36_s25 }
   0x3   :  { %s20_s22 = sshll.u32 %s1401_s21, 4  ;;  %s1402_s26 = smov 192   ;;  %s21_s22 = int_to_ptr.vmem [resolvable:$true] %s20_s22 }
   0x4   :  { %s1403_s27 = smov 12   ;;  %s1404_s28 = smov [#allocation5]  }
   0x5   :  { %26 = dma.hbm_to_vmem [thread:$0]  %s19_s20, 3072, %s21_s22, [#allocation4], %s1402_s26, %s1402_s26, %s1403_s27  }
   0x6   :  { %s38_s29 = sshll.u32 %s1404_s28, 4  ;;  %s39_s29 = int_to_ptr.vmem [resolvable:$true] %s38_s29 }
   0x7   :  { %41 = dma.hbm_to_vmem [thread:$0]  %s37_s25, 16, %s39_s29, [#allocation6]  }
   0x8   :  { %1397 = dma.done.wait [#allocation4], 3072  }
   0x9   :  { %1398 = vsyncadd [#allocation4], 4294964224 }
   0xa   :  { %1399 = dma.done.wait [#allocation6], 16  }
   0xb   :  { %1400 = vsyncadd [#allocation6], 4294967280  ;;  %v1157_v0 = vld [vmem:[#allocation3 + $0xa8] sm:$0xf]  ;;  %v1251_v1 = vld [vmem:[#allocation3 + $0xb0] sm:$0xf0] }
   0xc   :  { %v1250_v2 = vld [vmem:[#allocation3 + $0xac] sm:$0xf]  ;;  %v1442_v3 = vor.u32 %v1251_v1, %v1157_v0  ;;  %v1159_v4 = vld [vmem:[#allocation3 + $0xb4] sm:$0xf0]  ;;  %v1145_v5 = vld [vmem:[#allocation3 + $0x90] sm:$0xf] }
   0xd   :  { %v1248_v6 = vld [vmem:[#allocation3 + $0x98] sm:$0xf0]  ;;  %v1444_v7 = vor.u32 %v1250_v2, %v1159_v4  ;;  %v1247_v8 = vld [vmem:[#allocation3 + $0x94] sm:$0xf]  ;;  %v1147_v9 = vld [vmem:[#allocation3 + $0x9c] sm:$0xf0] }
   0xe   :  { %223 = vmatpush.bf16.msra.mxu0 %v1442_v3  ;;  %v1447_v10 = vor.u32 %v1248_v6, %v1145_v5  ;;  %321 = vmatpush.bf16.msra.mxu3 %v1442_v3  ;;  %v1451_v11 = vor.u32 %v1247_v8, %v1147_v9  ;;  %v1133_v12 = vld [vmem:[#allocation3 + $0x78] sm:$0xf]  ;;  %v1245_v13 = vld [vmem:[#allocation3 + $0x80] sm:$0xf0]  ;;  %v1244_v14 = vld [vmem:[#allocation3 + $0x7c] sm:$0xf] }
   0xf   :  { %236 = vmatpush.bf16.msra.mxu1 %v1444_v7  ;;  %v1135_v15 = vld [vmem:[#allocation3 + $0x84] sm:$0xf0]  ;;  %v1165_v16 = vld [vmem:[#allocation3 + $0xb0] sm:$0xf]  ;;  %v1252_v17 = vld [vmem:[#allocation3 + $0xb8] sm:$0xf0]  ;;  %v1456_v19 = vor.u32 %v1245_v13, %v1133_v12 }
  0x10   :  { %v1453_v18 = vor.u32 %v1252_v17, %v1165_v16  ;;  %v1153_v20 = vld [vmem:[#allocation3 + $0x98] sm:$0xf]  ;;  %v1249_v21 = vld [vmem:[#allocation3 + $0xa0] sm:$0xf0]  ;;  %v1460_v22 = vor.u32 %v1244_v14, %v1135_v15  ;;  %v1121_v23 = vld [vmem:[#allocation3 + $0x60] sm:$0xf] }
  0x11   :  { %v1242_v24 = vld [vmem:[#allocation3 + $0x68] sm:$0xf0]  ;;  %v1241_v25 = vld [vmem:[#allocation3 + $0x64] sm:$0xf]  ;;  %v1463_v26 = vor.u32 %v1249_v21, %v1153_v20  ;;  %v1123_v27 = vld [vmem:[#allocation3 + $0x6c] sm:$0xf0] }
  0x12   :  { %224 = vmatpush.bf16.msra.mxu0 %v1447_v10  ;;  %322 = vmatpush.bf16.msra.mxu3 %v1447_v10  ;;  %v1141_v28 = vld [vmem:[#allocation3 + $0x80] sm:$0xf]  ;;  %v1246_v29 = vld [vmem:[#allocation3 + $0x88] sm:$0xf0]  ;;  %v1466_v30 = vor.u32 %v1242_v24, %v1121_v23  ;;  %v1470_v31 = vor.u32 %v1241_v25, %v1123_v27  ;;  %v1109_v32 = vld [vmem:[#allocation3 + $0x48] sm:$0xf] }
  0x13   :  { %237 = vmatpush.bf16.msra.mxu1 %v1451_v11  ;;  %249 = vmatpush.bf16.msra.mxu2 %v1453_v18  ;;  %v1239_v33 = vld [vmem:[#allocation3 + $0x50] sm:$0xf0]  ;;  %v1238_v34 = vld [vmem:[#allocation3 + $0x4c] sm:$0xf]  ;;  %v1473_v35 = vor.u32 %v1246_v29, %v1141_v28  ;;  %v1111_v36 = vld [vmem:[#allocation3 + $0x54] sm:$0xf0] }
  0x14   :  { %v1129_v37 = vld [vmem:[#allocation3 + $0x68] sm:$0xf]  ;;  %v1243_v38 = vld [vmem:[#allocation3 + $0x70] sm:$0xf0]  ;;  %v1476_v39 = vor.u32 %v1239_v33, %v1109_v32  ;;  %v1097_v40 = vld [vmem:[#allocation3 + $0x30] sm:$0xf]  ;;  %v1480_v42 = vor.u32 %v1238_v34, %v1111_v36 }
  0x15   :  { %v1236_v41 = vld [vmem:[#allocation3 + $0x38] sm:$0xf0]  ;;  %v1235_v43 = vld [vmem:[#allocation3 + $0x34] sm:$0xf]  ;;  %v1483_v44 = vor.u32 %v1243_v38, %v1129_v37  ;;  %v1099_v45 = vld [vmem:[#allocation3 + $0x3c] sm:$0xf0] }
  0x16   :  { %225 = vmatpush.bf16.msra.mxu0 %v1456_v19  ;;  %323 = vmatpush.bf16.msra.mxu3 %v1456_v19  ;;  %v1117_v46 = vld [vmem:[#allocation3 + $0x50] sm:$0xf]  ;;  %v1240_v47 = vld [vmem:[#allocation3 + $0x58] sm:$0xf0]  ;;  %v1486_v48 = vor.u32 %v1236_v41, %v1097_v40  ;;  %v1490_v49 = vor.u32 %v1235_v43, %v1099_v45  ;;  %v1085_v50 = vld [vmem:[#allocation3 + $0x18] sm:$0xf] }
  0x17   :  { %238 = vmatpush.bf16.msra.mxu1 %v1460_v22  ;;  %250 = vmatpush.bf16.msra.mxu2 %v1463_v26  ;;  %v1233_v51 = vld [vmem:[#allocation3 + $0x20] sm:$0xf0]  ;;  %v1232_v52 = vld [vmem:[#allocation3 + $0x1c] sm:$0xf]  ;;  %v1493_v53 = vor.u32 %v1240_v47, %v1117_v46  ;;  %v1087_v54 = vld [vmem:[#allocation3 + $0x24] sm:$0xf0] }
  0x18   :  { %v1105_v55 = vld [vmem:[#allocation3 + $0x38] sm:$0xf]  ;;  %v1237_v56 = vld [vmem:[#allocation3 + $0x40] sm:$0xf0]  ;;  %v1496_v57 = vor.u32 %v1233_v51, %v1085_v50  ;;  %v1500_v58 = vor.u32 %v1232_v52, %v1087_v54  ;;  %v1073_v59 = vld [vmem:[#allocation3] sm:$0xf] }
  0x19   :  { %v1230_v60 = vld [vmem:[#allocation3 + $0x8] sm:$0xf0]  ;;  %v1229_v61 = vld [vmem:[#allocation3 + $0x4] sm:$0xf]  ;;  %v1503_v62 = vor.u32 %v1237_v56, %v1105_v55  ;;  %v1075_v63 = vld [vmem:[#allocation3 + $0xc] sm:$0xf0] }
  0x1a   :  { %226 = vmatpush.bf16.msra.mxu0 %v1466_v30  ;;  %324 = vmatpush.bf16.msra.mxu3 %v1466_v30  ;;  %v1093_v0 = vld [vmem:[#allocation3 + $0x20] sm:$0xf]  ;;  %v1234_v1 = vld [vmem:[#allocation3 + $0x28] sm:$0xf0]  ;;  %v1506_v2 = vor.u32 %v1230_v60, %v1073_v59  ;;  %v1510_v4 = vor.u32 %v1229_v61, %v1075_v63  ;;  %v1081_v6 = vld [vmem:[#allocation3 + $0x8] sm:$0xf] }
  0x1b   :  { %239 = vmatpush.bf16.msra.mxu1 %v1470_v31  ;;  %251 = vmatpush.bf16.msra.mxu2 %v1473_v35  ;;  %v1513_v5 = vor.u32 %v1234_v1, %v1093_v0  ;;  %v1231_v8 = vld [vmem:[#allocation3 + $0x10] sm:$0xf0]  ;;  %v1405_v12 = vmov 0.0|0.0   ;;  %v89_v13 = vld [vmem:[%s1807_s0] sm:$0xff]  ;;  %v90_v51 = vld [vmem:[%s1807_s0 + $0x8] sm:$0xf] }
  0x1c   :  { %v1519_v9 = vor.u32 %v1231_v8, %v1081_v6  ;;  %v91_v14 = vunpack.c.l.bf16 %v89_v13  ;;  %v92_v15 = vunpack.c.h.bf16 %v89_v13  ;;  %v1584_v43 = vld [vmem:[%s1809_s2] ss:$0 sm:$0xff]  ;;  %v93_v59 = vunpack.c.l.bf16 %v90_v51 }
  0x1e   :  { %227 = vmatpush.bf16.msra.mxu0 %v1476_v39  ;;  %325 = vmatpush.bf16.msra.mxu3 %v1476_v39 }
  0x1f   :  { %240 = vmatpush.bf16.msra.mxu1 %v1480_v42  ;;  %252 = vmatpush.bf16.msra.mxu2 %v1483_v44 }
  0x22   :  { %228 = vmatpush.bf16.msra.mxu0 %v1486_v48  ;;  %326 = vmatpush.bf16.msra.mxu3 %v1486_v48 }
  0x23   :  { %241 = vmatpush.bf16.msra.mxu1 %v1490_v49  ;;  %253 = vmatpush.bf16.msra.mxu2 %v1493_v53 }
  0x26   :  { %229 = vmatpush.bf16.msra.mxu0 %v1496_v57  ;;  %327 = vmatpush.bf16.msra.mxu3 %v1496_v57 }
  0x27   :  { %242 = vmatpush.bf16.msra.mxu1 %v1500_v58  ;;  %254 = vmatpush.bf16.msra.mxu2 %v1503_v62 }
  0x2a   :  { %230 = vmatpush.bf16.msra.mxu0 %v1506_v2  ;;  %328 = vmatpush.bf16.msra.mxu3 %v1506_v2 }
  0x2b   :  { %243 = vmatpush.bf16.msra.mxu1 %v1510_v4  ;;  %255 = vmatpush.bf16.msra.mxu2 %v1513_v5 }
  0x2d   :  { %231 = vmatmul.bf16.vlgmr.msra.gmra.mxu0 %v1405_v12 }
  0x2e   :  { %334 = vmatpush.bf16.msrb.mxu0 %v1444_v7  ;;  %429 = vmatpush.bf16.msrb.mxu3 %v1444_v7 }
  0x2f   :  { %347 = vmatpush.bf16.msrb.mxu1 %v1453_v18  ;;  %256 = vmatpush.bf16.msra.mxu2 %v1519_v9 }
  0x30   :  { %244 = vmatmul.bf16.vlgmr.msra.gmra.mxu1 %v1405_v12 }
  0x32   :  { %335 = vmatpush.bf16.msrb.mxu0 %v1451_v11  ;;  %430 = vmatpush.bf16.msrb.mxu3 %v1451_v11 }
  0x33   :  { %348 = vmatpush.bf16.msrb.mxu1 %v1463_v26  ;;  %416 = vmatpush.bf16.msrb.mxu2 %v1442_v3 }
  0x34   :  { %257 = vmatmul.bf16.vlgmr.msra.gmra.mxu2 %v1405_v12 }
  0x36   :  { %336 = vmatpush.bf16.msrb.mxu0 %v1460_v22  ;;  %431 = vmatpush.bf16.msrb.mxu3 %v1460_v22 }
  0x37   :  { %349 = vmatpush.bf16.msrb.mxu1 %v1473_v35  ;;  %417 = vmatpush.bf16.msrb.mxu2 %v1447_v10 }
  0x3a   :  { %337 = vmatpush.bf16.msrb.mxu0 %v1470_v31  ;;  %432 = vmatpush.bf16.msrb.mxu3 %v1470_v31 }
  0x3b   :  { %350 = vmatpush.bf16.msrb.mxu1 %v1483_v44  ;;  %418 = vmatpush.bf16.msrb.mxu2 %v1456_v19 }
  0x3e   :  { %338 = vmatpush.bf16.msrb.mxu0 %v1480_v42  ;;  %433 = vmatpush.bf16.msrb.mxu3 %v1480_v42 }
  0x3f   :  { %351 = vmatpush.bf16.msrb.mxu1 %v1493_v53  ;;  %419 = vmatpush.bf16.msrb.mxu2 %v1466_v30 }
  0x42   :  { %339 = vmatpush.bf16.msrb.mxu0 %v1490_v49  ;;  %434 = vmatpush.bf16.msrb.mxu3 %v1490_v49 }
  0x43   :  { %352 = vmatpush.bf16.msrb.mxu1 %v1503_v62  ;;  %420 = vmatpush.bf16.msrb.mxu2 %v1476_v39 }
  0x46   :  { %340 = vmatpush.bf16.msrb.mxu0 %v1500_v58  ;;  %435 = vmatpush.bf16.msrb.mxu3 %v1500_v58 }
  0x47   :  { %353 = vmatpush.bf16.msrb.mxu1 %v1513_v5  ;;  %421 = vmatpush.bf16.msrb.mxu2 %v1486_v48 }
  0x4a   :  { %341 = vmatpush.bf16.msrb.mxu0 %v1510_v4  ;;  %436 = vmatpush.bf16.msrb.mxu3 %v1510_v4 }
  0x4b   :  { %354 = vmatpush.bf16.msrb.mxu1 %v1519_v9  ;;  %422 = vmatpush.bf16.msrb.mxu2 %v1496_v57 }
  0x4e   :  { %442 = vmatpush.bf16.msra.mxu0 %v1453_v18 }
  0x4f   :  { %511 = vmatpush.bf16.msra.mxu1 %v1442_v3  ;;  %423 = vmatpush.bf16.msrb.mxu2 %v1506_v2 }
  0x52   :  { %443 = vmatpush.bf16.msra.mxu0 %v1463_v26 }
  0x53   :  { %524 = vmatpush.bf16.msra.mxu2 %v1444_v7  ;;  %512 = vmatpush.bf16.msra.mxu1 %v1447_v10 }
  0x56   :  { %444 = vmatpush.bf16.msra.mxu0 %v1473_v35 }
  0x57   :  { %525 = vmatpush.bf16.msra.mxu2 %v1451_v11  ;;  %513 = vmatpush.bf16.msra.mxu1 %v1456_v19 }
  0x5a   :  { %445 = vmatpush.bf16.msra.mxu0 %v1483_v44 }
  0x5b   :  { %526 = vmatpush.bf16.msra.mxu2 %v1460_v22  ;;  %514 = vmatpush.bf16.msra.mxu1 %v1466_v30 }
  0x5e   :  { %446 = vmatpush.bf16.msra.mxu0 %v1493_v53 }
  0x5f   :  { %527 = vmatpush.bf16.msra.mxu2 %v1470_v31  ;;  %515 = vmatpush.bf16.msra.mxu1 %v1476_v39 }
  0x62   :  { %447 = vmatpush.bf16.msra.mxu0 %v1503_v62 }
  0x63   :  { %528 = vmatpush.bf16.msra.mxu2 %v1480_v42  ;;  %516 = vmatpush.bf16.msra.mxu1 %v1486_v48 }
  0x66   :  { %448 = vmatpush.bf16.msra.mxu0 %v1513_v5 }
  0x67   :  { %529 = vmatpush.bf16.msra.mxu2 %v1490_v49  ;;  %517 = vmatpush.bf16.msra.mxu1 %v1496_v57 }
  0x6a   :  { %449 = vmatpush.bf16.msra.mxu0 %v1519_v9 }
  0x6b   :  { %530 = vmatpush.bf16.msra.mxu2 %v1500_v58  ;;  %518 = vmatpush.bf16.msra.mxu1 %v1506_v2 }
  0x6f   :  { %531 = vmatpush.bf16.msra.mxu2 %v1510_v4 }
  0xaa   :  { %v232_v16 = vpop.f32.mrf.mxu0 }
  0xab   :  { %v262_v17 = vadd.f32 %v232_v16, %v91_v14 }
  0xad   :  { %v245_v20 = vpop.f32.mrf.mxu1  ;;  %v1167_v23 = vmul.f32 -1.442695, %v262_v17 }
  0xae   :  { %v282_v21 = vadd.f32 %v245_v20, %v92_v15 }
  0xaf   :  { %1268 = vpow2.f32 %v1167_v23 }
  0xb0   :  { %v1168_v24 = vmul.f32 -1.442695, %v282_v21 }
  0xb2   :  { %1270 = vpow2.f32 %v1168_v24  ;;  %v234_v25 = vpop.f32.mrf.mxu0  ;;  %v1169_v24 = vld [vmem:[%s1807_s0 + $0xc] sm:$0xff] }
  0xb3   :  { %v318_v25 = vunpack.c.h.bf16 %v1169_v24 }
  0xb5   :  { %v247_v27 = vpop.f32.mrf.mxu1  ;;  %v1269_v28 = vpop.eup %1268 }
  0xb6   :  { %v266_v33 = vadd.f32 1.0, %v1269_v28 }
  0xb7   :  { %v258_v29 = vpop.f32.mrf.mxu2 }
  0xb8   :  { %v1271_v32 = vpop.eup %1270  ;;  %1272 = vrcp.f32 %v266_v33  ;;  %v278_v46 = vand.u32 2147483648, %v266_v33  ;;  %v276_v50 = vand.u32 2147483647, %v266_v33  ;;  %vm272_vm1 = vweird.f32 %v266_v33 }
  0xb9   :  { %v286_v34 = vadd.f32 1.0, %v1271_v32  ;;  %v305_v54 = vadd.f32 %v1584_v43, %v258_v29  ;;  %v317_v32 = vunpack.c.l.bf16 %v1169_v24 }
  0xba   :  { %v279_v56 = vor.u32 1.1754944e-38, %v278_v46  ;;  %vm277_vm3 = vcmp.eq.f32.partialorder %v276_v50, 8.507059e+37 }
  0xbb   :  { %1274 = vrcp.f32 %v286_v34  ;;  %vm292_vm4 = vweird.f32 %v286_v34  ;;  %v298_v6 = vand.u32 2147483648, %v286_v34  ;;  %v296_v12 = vand.u32 2147483647, %v286_v34 }
  0xbd   :  { %v299_v13 = vor.u32 1.1754944e-38, %v298_v6  ;;  %vm297_vm7 = vcmp.eq.f32.partialorder %v296_v12, 8.507059e+37 }
  0xbe   :  { %v1273_v37 = vpop.eup %1272 }
  0xbf   :  { %v260_v36 = vpop.f32.mrf.mxu2  ;;  %v268_v40 = vmul.f32 %v1273_v37, %v266_v33  ;;  %vm273_vm0 = vweird.f32 %v1273_v37 }
  0xc0   :  { %vm274_vm2 = vmor %vm272_vm1, %vm273_vm0 }
  0xc1   :  { %v1275_v38 = vpop.eup %1274  ;;  %v269_v41 = vsub.f32 1.0, %v268_v40 }
  0xc2   :  { %v288_v45 = vmul.f32 %v1275_v38, %v286_v34  ;;  %vm293_vm5 = vweird.f32 %v1275_v38 }
  0xc3   :  { %v270_v47 = vmul.f32 %v1273_v37, %v269_v41  ;;  %vm294_vm6 = vmor %vm292_vm4, %vm293_vm5 }
  0xc4   :  { %v289_v55 = vsub.f32 1.0, %v288_v45 }
  0xc5   :  { %v271_v52 = vadd.f32 %v1273_v37, %v270_v47 }
  0xc6   :  { %v290_v0 = vmul.f32 %v1275_v38, %v289_v55 }
  0xc7   :  { %v275_v60 = vsel %vm274_vm2, %v1273_v37, %v271_v52 }
  0xc8   :  { %v280_v61 = vsel %vm277_vm3, %v279_v56, %v275_v60  ;;  %v291_v8 = vadd.f32 %v1275_v38, %v290_v0 }
  0xc9   :  { %v306_v63 = vmul.f32 %v305_v54, %v280_v61 }
  0xca   :  { %v295_v14 = vsel %vm294_vm6, %v1275_v38, %v291_v8 }
  0xcb   :  { %v307_v1 = vadd.f32 %v306_v63, %v93_v59  ;;  %v300_v17 = vsel %vm297_vm7, %v299_v13, %v295_v14  ;;  %v1170_v63 = vld [vmem:[%s1807_s0 + $0x14] sm:$0xf] }
  0xcc   :  { %v319_v12 = vunpack.c.l.bf16 %v1170_v63 }
  0xcd   :  { %1276 = vtanh.f32 %v307_v1 }
  0xd3   :  { %v1277_v15 = vpop.eup %1276 }
  0xd4   :  { %v309_v16 = vsub.f32 0.0, %v1277_v15 }
  0xd6   :  { %v310_v20 = vmul.f32 %v309_v16, %v300_v17 }
  0xd8   :  { %v1590_v21 = vadd.f32 %v1277_v15, %v310_v20 }
  0xda   :  { %v320_v23 = vpack.c.bf16 %v1590_v21, %v1590_v21 }
  0xdc   :  { %329 = vmatmul.bf16.vlgmr.msra.gmra.mxu3 %v320_v23  ;;  %342 = vmatmul.bf16.vlgmr.msrb.gmra.mxu0 %v320_v23 }
  0xdd   :  { %355 = vmatmul.bf16.vlgmr.msrb.gmra.mxu1 %v320_v23  ;;  %537 = vmatpush.bf16.msra.mxu3 %v1453_v18 }
  0xde   :  { %606 = vmatpush.bf16.msrb.mxu0 %v1442_v3  ;;  %619 = vmatpush.bf16.msrb.mxu1 %v1444_v7 }
  0xe1   :  { %538 = vmatpush.bf16.msra.mxu3 %v1463_v26 }
  0xe2   :  { %607 = vmatpush.bf16.msrb.mxu0 %v1447_v10  ;;  %620 = vmatpush.bf16.msrb.mxu1 %v1451_v11 }
  0xe5   :  { %539 = vmatpush.bf16.msra.mxu3 %v1473_v35 }
  0xe6   :  { %608 = vmatpush.bf16.msrb.mxu0 %v1456_v19  ;;  %621 = vmatpush.bf16.msrb.mxu1 %v1460_v22 }
  0xe9   :  { %540 = vmatpush.bf16.msra.mxu3 %v1483_v44 }
  0xea   :  { %609 = vmatpush.bf16.msrb.mxu0 %v1466_v30  ;;  %622 = vmatpush.bf16.msrb.mxu1 %v1470_v31 }
  0xed   :  { %541 = vmatpush.bf16.msra.mxu3 %v1493_v53 }
  0xee   :  { %610 = vmatpush.bf16.msrb.mxu0 %v1476_v39  ;;  %623 = vmatpush.bf16.msrb.mxu1 %v1480_v42 }
  0xf1   :  { %542 = vmatpush.bf16.msra.mxu3 %v1503_v62 }
  0xf2   :  { %611 = vmatpush.bf16.msrb.mxu0 %v1486_v48  ;;  %624 = vmatpush.bf16.msrb.mxu1 %v1490_v49 }
  0xf5   :  { %543 = vmatpush.bf16.msra.mxu3 %v1513_v5 }
  0xf6   :  { %612 = vmatpush.bf16.msrb.mxu0 %v1496_v57  ;;  %625 = vmatpush.bf16.msrb.mxu1 %v1500_v58 }
  0xf9   :  { %544 = vmatpush.bf16.msra.mxu3 %v1519_v9 }
  0xfa   :  { %613 = vmatpush.bf16.msrb.mxu0 %v1506_v2  ;;  %626 = vmatpush.bf16.msrb.mxu1 %v1510_v4 }
 0x159   :  { %v343_v27 = vpop.f32.mrf.mxu0 }
 0x15a   :  { %v380_v28 = vadd.f32 %v343_v27, %v318_v25  ;;  %v356_v29 = vpop.f32.mrf.mxu1 }
 0x15b   :  { %v400_v8 = vadd.f32 %v1584_v43, %v356_v29 }
 0x15c   :  { %v1172_v33 = vmul.f32 -1.442695, %v380_v28 }
 0x15e   :  { %1278 = vpow2.f32 %v1172_v33 }
 0x15f   :  { %v330_v34 = vpop.f32.mrf.mxu3 }
 0x160   :  { %v360_v36 = vadd.f32 %v330_v34, %v317_v32 }
 0x161   :  { %v345_v37 = vpop.f32.mrf.mxu0 }
 0x162   :  { %v1171_v38 = vmul.f32 -1.442695, %v360_v36  ;;  %v358_v40 = vpop.f32.mrf.mxu1 }
 0x164   :  { %1280 = vpow2.f32 %v1171_v38  ;;  %v1279_v41 = vpop.eup %1278 }
 0x165   :  { %v384_v47 = vadd.f32 1.0, %v1279_v41 }
 0x167   :  { %v332_v45 = vpop.f32.mrf.mxu3  ;;  %v396_v23 = vand.u32 2147483648, %v384_v47  ;;  %vm390_vm13 = vweird.f32 %v384_v47  ;;  %v394_v24 = vand.u32 2147483647, %v384_v47 }
 0x169   :  { %v397_v28 = vor.u32 1.1754944e-38, %v396_v23  ;;  %vm395_vm15 = vcmp.eq.f32.partialorder %v394_v24, 8.507059e+37 }
 0x16a   :  { %v1281_v46 = vpop.eup %1280 }
 0x16b   :  { %v364_v50 = vadd.f32 1.0, %v1281_v46 }
 0x16d   :  { %1282 = vrcp.f32 %v364_v50  ;;  %v376_v59 = vand.u32 2147483648, %v364_v50  ;;  %v374_v61 = vand.u32 2147483647, %v364_v50  ;;  %vm370_vm9 = vweird.f32 %v364_v50 }
 0x16e   :  { %1284 = vrcp.f32 %v384_v47 }
 0x16f   :  { %v377_v6 = vor.u32 1.1754944e-38, %v376_v59  ;;  %vm375_vm11 = vcmp.eq.f32.partialorder %v374_v61, 8.507059e+37 }
 0x173   :  { %v1283_v51 = vpop.eup %1282 }
 0x174   :  { %v1285_v52 = vpop.eup %1284  ;;  %v366_v54 = vmul.f32 %v1283_v51, %v364_v50  ;;  %vm371_vm8 = vweird.f32 %v1283_v51 }
 0x175   :  { %v386_v56 = vmul.f32 %v1285_v52, %v384_v47  ;;  %vm372_vm10 = vmor %vm370_vm9, %vm371_vm8  ;;  %vm391_vm12 = vweird.f32 %v1285_v52 }
 0x176   :  { %v367_v55 = vsub.f32 1.0, %v366_v54  ;;  %vm392_vm14 = vmor %vm390_vm13, %vm391_vm12 }
 0x177   :  { %v387_v1 = vsub.f32 1.0, %v386_v56 }
 0x178   :  { %v368_v60 = vmul.f32 %v1283_v51, %v367_v55 }
 0x179   :  { %v388_v16 = vmul.f32 %v1285_v52, %v387_v1 }
 0x17a   :  { %v369_v0 = vadd.f32 %v1283_v51, %v368_v60 }
 0x17b   :  { %v389_v20 = vadd.f32 %v1285_v52, %v388_v16 }
 0x17c   :  { %v373_v13 = vsel %vm372_vm10, %v1283_v51, %v369_v0 }
 0x17d   :  { %v378_v14 = vsel %vm375_vm11, %v377_v6, %v373_v13  ;;  %v393_v25 = vsel %vm392_vm14, %v1285_v52, %v389_v20 }
 0x17e   :  { %v401_v15 = vmul.f32 %v400_v8, %v378_v14  ;;  %v398_v32 = vsel %vm395_vm15, %v397_v28, %v393_v25 }
 0x180   :  { %v402_v17 = vadd.f32 %v401_v15, %v319_v12  ;;  %v1174_v15 = vld [vmem:[%s1807_s0 + $0x20] sm:$0xf] }
 0x181   :  { %v414_v25 = vunpack.c.l.bf16 %v1174_v15 }
 0x182   :  { %1286 = vtanh.f32 %v402_v17 }
 0x188   :  { %v1287_v27 = vpop.eup %1286 }
 0x189   :  { %v404_v29 = vsub.f32 %v1590_v21, %v1287_v27  ;;  %v1173_v21 = vld [vmem:[%s1807_s0 + $0x18] sm:$0xff] }
 0x18a   :  { %v412_v38 = vunpack.c.l.bf16 %v1173_v21  ;;  %v413_v40 = vunpack.c.h.bf16 %v1173_v21 }
 0x18b   :  { %v405_v33 = vmul.f32 %v404_v29, %v398_v32 }
 0x18d   :  { %v1626_v34 = vadd.f32 %v1287_v27, %v405_v33 }
 0x18f   :  { %v415_v36 = vpack.c.bf16 %v1626_v34, %v1626_v34 }
 0x191   :  { %424 = vmatmul.bf16.vlgmr.msrb.gmra.mxu2 %v415_v36  ;;  %437 = vmatmul.bf16.vlgmr.msrb.gmra.mxu3 %v415_v36 }
 0x192   :  { %450 = vmatmul.bf16.vlgmr.msra.gmra.mxu0 %v415_v36  ;;  %632 = vmatpush.bf16.msrb.mxu2 %v1453_v18 }
 0x193   :  { %701 = vmatpush.bf16.msrb.mxu3 %v1442_v3  ;;  %714 = vmatpush.bf16.msra.mxu0 %v1444_v7 }
 0x196   :  { %633 = vmatpush.bf16.msrb.mxu2 %v1463_v26 }
 0x197   :  { %702 = vmatpush.bf16.msrb.mxu3 %v1447_v10  ;;  %715 = vmatpush.bf16.msra.mxu0 %v1451_v11 }
 0x19a   :  { %634 = vmatpush.bf16.msrb.mxu2 %v1473_v35 }
 0x19b   :  { %703 = vmatpush.bf16.msrb.mxu3 %v1456_v19  ;;  %716 = vmatpush.bf16.msra.mxu0 %v1460_v22 }
 0x19e   :  { %635 = vmatpush.bf16.msrb.mxu2 %v1483_v44 }
 0x19f   :  { %704 = vmatpush.bf16.msrb.mxu3 %v1466_v30  ;;  %717 = vmatpush.bf16.msra.mxu0 %v1470_v31 }
 0x1a2   :  { %636 = vmatpush.bf16.msrb.mxu2 %v1493_v53 }
 0x1a3   :  { %705 = vmatpush.bf16.msrb.mxu3 %v1476_v39  ;;  %718 = vmatpush.bf16.msra.mxu0 %v1480_v42 }
 0x1a6   :  { %637 = vmatpush.bf16.msrb.mxu2 %v1503_v62 }
 0x1a7   :  { %706 = vmatpush.bf16.msrb.mxu3 %v1486_v48  ;;  %719 = vmatpush.bf16.msra.mxu0 %v1490_v49 }
 0x1aa   :  { %638 = vmatpush.bf16.msrb.mxu2 %v1513_v5 }
 0x1ab   :  { %707 = vmatpush.bf16.msrb.mxu3 %v1496_v57  ;;  %720 = vmatpush.bf16.msra.mxu0 %v1500_v58 }
 0x1ae   :  { %639 = vmatpush.bf16.msrb.mxu2 %v1519_v9 }
 0x1af   :  { %708 = vmatpush.bf16.msrb.mxu3 %v1506_v2  ;;  %721 = vmatpush.bf16.msra.mxu0 %v1510_v4 }
 0x20f   :  { %v451_v37 = vpop.f32.mrf.mxu0 }
 0x210   :  { %v495_v23 = vadd.f32 %v1584_v43, %v451_v37 }
 0x214   :  { %v425_v41 = vpop.f32.mrf.mxu2  ;;  %v438_v45 = vpop.f32.mrf.mxu3 }
 0x215   :  { %v455_v46 = vadd.f32 %v425_v41, %v412_v38  ;;  %v475_v47 = vadd.f32 %v438_v45, %v413_v40 }
 0x217   :  { %v1175_v50 = vmul.f32 -1.442695, %v455_v46  ;;  %v1176_v51 = vmul.f32 -1.442695, %v475_v47  ;;  %v453_v52 = vpop.f32.mrf.mxu0 }
 0x219   :  { %1288 = vpow2.f32 %v1175_v50 }
 0x21a   :  { %1290 = vpow2.f32 %v1176_v51 }
 0x21c   :  { %v427_v54 = vpop.f32.mrf.mxu2  ;;  %v440_v55 = vpop.f32.mrf.mxu3 }
 0x21f   :  { %v1289_v56 = vpop.eup %1288 }
 0x220   :  { %v1291_v59 = vpop.eup %1290  ;;  %v459_v60 = vadd.f32 1.0, %v1289_v56 }
 0x221   :  { %v479_v61 = vadd.f32 1.0, %v1291_v59 }
 0x222   :  { %1292 = vrcp.f32 %v459_v60  ;;  %v471_v8 = vand.u32 2147483648, %v459_v60  ;;  %v469_v14 = vand.u32 2147483647, %v459_v60  ;;  %vm465_vm1 = vweird.f32 %v459_v60 }
 0x223   :  { %1294 = vrcp.f32 %v479_v61  ;;  %v491_v36 = vand.u32 2147483648, %v479_v61  ;;  %vm485_vm5 = vweird.f32 %v479_v61  ;;  %v489_v21 = vand.u32 2147483647, %v479_v61 }
 0x224   :  { %v472_v17 = vor.u32 1.1754944e-38, %v471_v8  ;;  %vm470_vm3 = vcmp.eq.f32.partialorder %v469_v14, 8.507059e+37 }
 0x225   :  { %v492_v41 = vor.u32 1.1754944e-38, %v491_v36  ;;  %vm490_vm7 = vcmp.eq.f32.partialorder %v489_v21, 8.507059e+37 }
 0x228   :  { %v1293_v63 = vpop.eup %1292 }
 0x229   :  { %v1295_v0 = vpop.eup %1294  ;;  %v461_v1 = vmul.f32 %v1293_v63, %v459_v60  ;;  %vm466_vm0 = vweird.f32 %v1293_v63 }
 0x22a   :  { %v481_v12 = vmul.f32 %v1295_v0, %v479_v61  ;;  %vm467_vm2 = vmor %vm465_vm1, %vm466_vm0  ;;  %vm486_vm4 = vweird.f32 %v1295_v0 }
 0x22b   :  { %v462_v6 = vsub.f32 1.0, %v461_v1  ;;  %vm487_vm6 = vmor %vm485_vm5, %vm486_vm4 }
 0x22c   :  { %v482_v20 = vsub.f32 1.0, %v481_v12 }
 0x22d   :  { %v463_v13 = vmul.f32 %v1293_v63, %v462_v6 }
 0x22e   :  { %v483_v29 = vmul.f32 %v1295_v0, %v482_v20 }
 0x22f   :  { %v464_v16 = vadd.f32 %v1293_v63, %v463_v13 }
 0x230   :  { %v484_v33 = vadd.f32 %v1295_v0, %v483_v29 }
 0x231   :  { %v468_v24 = vsel %vm467_vm2, %v1293_v63, %v464_v16 }
 0x232   :  { %v473_v27 = vsel %vm470_vm3, %v472_v17, %v468_v24  ;;  %v488_v38 = vsel %vm487_vm6, %v1295_v0, %v484_v33 }
 0x233   :  { %v496_v28 = vmul.f32 %v495_v23, %v473_v27  ;;  %v493_v45 = vsel %vm490_vm7, %v492_v41, %v488_v38  ;;  %v1178_v23 = vld [vmem:[%s1807_s0 + $0x2c] sm:$0xf] }
 0x235   :  { %v497_v32 = vadd.f32 %v496_v28, %v414_v25 }
 0x237   :  { %1296 = vtanh.f32 %v497_v32  ;;  %v509_v32 = vunpack.c.l.bf16 %v1178_v23 }
 0x23d   :  { %v1297_v40 = vpop.eup %1296 }
 0x23e   :  { %v499_v37 = vsub.f32 %v1626_v34, %v1297_v40  ;;  %v1177_v34 = vld [vmem:[%s1807_s0 + $0x24] sm:$0xff] }
 0x23f   :  { %v507_v51 = vunpack.c.l.bf16 %v1177_v34  ;;  %v508_v56 = vunpack.c.h.bf16 %v1177_v34 }
 0x240   :  { %v500_v46 = vmul.f32 %v499_v37, %v493_v45 }
 0x242   :  { %v1662_v47 = vadd.f32 %v1297_v40, %v500_v46 }
 0x244   :  { %v510_v50 = vpack.c.bf16 %v1662_v47, %v1662_v47 }
 0x246   :  { %519 = vmatmul.bf16.vlgmr.msra.gmra.mxu1 %v510_v50  ;;  %532 = vmatmul.bf16.vlgmr.msra.gmra.mxu2 %v510_v50 }
 0x247   :  { %545 = vmatmul.bf16.vlgmr.msra.gmra.mxu3 %v510_v50  ;;  %727 = vmatpush.bf16.msra.mxu1 %v1453_v18 }
 0x248   :  { %796 = vmatpush.bf16.msra.mxu2 %v1442_v3  ;;  %809 = vmatpush.bf16.msra.mxu3 %v1444_v7 }
 0x24b   :  { %728 = vmatpush.bf16.msra.mxu1 %v1463_v26 }
 0x24c   :  { %797 = vmatpush.bf16.msra.mxu2 %v1447_v10  ;;  %810 = vmatpush.bf16.msra.mxu3 %v1451_v11 }
 0x24f   :  { %729 = vmatpush.bf16.msra.mxu1 %v1473_v35 }
 0x250   :  { %798 = vmatpush.bf16.msra.mxu2 %v1456_v19  ;;  %811 = vmatpush.bf16.msra.mxu3 %v1460_v22 }
 0x253   :  { %730 = vmatpush.bf16.msra.mxu1 %v1483_v44 }
 0x254   :  { %799 = vmatpush.bf16.msra.mxu2 %v1466_v30  ;;  %812 = vmatpush.bf16.msra.mxu3 %v1470_v31 }
 0x257   :  { %731 = vmatpush.bf16.msra.mxu1 %v1493_v53 }
 0x258   :  { %800 = vmatpush.bf16.msra.mxu2 %v1476_v39  ;;  %813 = vmatpush.bf16.msra.mxu3 %v1480_v42 }
 0x25b   :  { %732 = vmatpush.bf16.msra.mxu1 %v1503_v62 }
 0x25c   :  { %801 = vmatpush.bf16.msra.mxu2 %v1486_v48  ;;  %814 = vmatpush.bf16.msra.mxu3 %v1490_v49 }
 0x25f   :  { %733 = vmatpush.bf16.msra.mxu1 %v1513_v5 }
 0x260   :  { %802 = vmatpush.bf16.msra.mxu2 %v1496_v57  ;;  %815 = vmatpush.bf16.msra.mxu3 %v1500_v58 }
 0x263   :  { %734 = vmatpush.bf16.msra.mxu1 %v1519_v9 }
 0x264   :  { %803 = vmatpush.bf16.msra.mxu2 %v1506_v2  ;;  %816 = vmatpush.bf16.msra.mxu3 %v1510_v4 }
 0x2c3   :  { %v520_v52 = vpop.f32.mrf.mxu1 }
 0x2c4   :  { %v550_v54 = vadd.f32 %v520_v52, %v507_v51 }
 0x2c6   :  { %v1179_v55 = vmul.f32 -1.442695, %v550_v54 }
 0x2c8   :  { %1298 = vpow2.f32 %v1179_v55 }
 0x2c9   :  { %v533_v59 = vpop.f32.mrf.mxu2 }
 0x2ca   :  { %v570_v60 = vadd.f32 %v533_v59, %v508_v56  ;;  %v546_v61 = vpop.f32.mrf.mxu3 }
 0x2cb   :  { %v522_v63 = vpop.f32.mrf.mxu1  ;;  %v590_v38 = vadd.f32 %v1584_v43, %v546_v61 }
 0x2cc   :  { %v1180_v0 = vmul.f32 -1.442695, %v570_v60 }
 0x2ce   :  { %v1299_v1 = vpop.eup %1298  ;;  %1300 = vpow2.f32 %v1180_v0 }
 0x2cf   :  { %v554_v6 = vadd.f32 1.0, %v1299_v1 }
 0x2d1   :  { %1302 = vrcp.f32 %v554_v6  ;;  %v535_v8 = vpop.f32.mrf.mxu2  ;;  %v566_v20 = vand.u32 2147483648, %v554_v6  ;;  %v564_v25 = vand.u32 2147483647, %v554_v6  ;;  %vm560_vm9 = vweird.f32 %v554_v6 }
 0x2d2   :  { %v548_v12 = vpop.f32.mrf.mxu3 }
 0x2d3   :  { %v567_v33 = vor.u32 1.1754944e-38, %v566_v20  ;;  %vm565_vm11 = vcmp.eq.f32.partialorder %v564_v25, 8.507059e+37 }
 0x2d4   :  { %v1301_v13 = vpop.eup %1300 }
 0x2d5   :  { %v574_v14 = vadd.f32 1.0, %v1301_v13 }
 0x2d7   :  { %v1303_v15 = vpop.eup %1302  ;;  %1304 = vrcp.f32 %v574_v14  ;;  %v586_v50 = vand.u32 2147483648, %v574_v14  ;;  %vm580_vm13 = vweird.f32 %v574_v14  ;;  %v584_v34 = vand.u32 2147483647, %v574_v14 }
 0x2d8   :  { %v556_v16 = vmul.f32 %v1303_v15, %v554_v6  ;;  %vm561_vm8 = vweird.f32 %v1303_v15 }
 0x2d9   :  { %vm562_vm10 = vmor %vm560_vm9, %vm561_vm8  ;;  %v587_v54 = vor.u32 1.1754944e-38, %v586_v50  ;;  %vm585_vm15 = vcmp.eq.f32.partialorder %v584_v34, 8.507059e+37 }
 0x2da   :  { %v557_v17 = vsub.f32 1.0, %v556_v16 }
 0x2dc   :  { %v558_v24 = vmul.f32 %v1303_v15, %v557_v17 }
 0x2dd   :  { %v1305_v27 = vpop.eup %1304 }
 0x2de   :  { %v576_v28 = vmul.f32 %v1305_v27, %v574_v14  ;;  %v559_v29 = vadd.f32 %v1303_v15, %v558_v24  ;;  %vm581_vm12 = vweird.f32 %v1305_v27 }
 0x2df   :  { %vm582_vm14 = vmor %vm580_vm13, %vm581_vm12 }
 0x2e0   :  { %v577_v36 = vsub.f32 1.0, %v576_v28  ;;  %v563_v21 = vsel %vm562_vm10, %v1303_v15, %v559_v29  ;;  %v1182_v15 = vld [vmem:[%s1807_s0 + $0x38] sm:$0xf] }
 0x2e1   :  { %v568_v40 = vsel %vm565_vm11, %v567_v33, %v563_v21  ;;  %v604_v23 = vunpack.c.l.bf16 %v1182_v15 }
 0x2e2   :  { %v591_v41 = vmul.f32 %v590_v38, %v568_v40  ;;  %v578_v37 = vmul.f32 %v1305_v27, %v577_v36 }
 0x2e4   :  { %v592_v45 = vadd.f32 %v591_v41, %v509_v32  ;;  %v579_v46 = vadd.f32 %v1305_v27, %v578_v37 }
 0x2e6   :  { %1306 = vtanh.f32 %v592_v45  ;;  %v583_v51 = vsel %vm582_vm14, %v1305_v27, %v579_v46 }
 0x2e7   :  { %v588_v56 = vsel %vm585_vm15, %v587_v54, %v583_v51  ;;  %v1185_v51 = vld [vmem:[%s1807_s0 + $0x3c] sm:$0xff] }
 0x2ec   :  { %v1307_v52 = vpop.eup %1306 }
 0x2ed   :  { %v594_v55 = vsub.f32 %v1662_v47, %v1307_v52 }
 0x2ef   :  { %v595_v59 = vmul.f32 %v594_v55, %v588_v56  ;;  %v697_v55 = vunpack.c.l.bf16 %v1185_v51 }
 0x2f1   :  { %v1698_v60 = vadd.f32 %v1307_v52, %v595_v59  ;;  %v698_v52 = vunpack.c.h.bf16 %v1185_v51 }
 0x2f3   :  { %v605_v61 = vpack.c.bf16 %v1698_v60, %v1698_v60 }
 0x2f5   :  { %614 = vmatmul.bf16.vlgmr.msrb.gmra.mxu0 %v605_v61  ;;  %627 = vmatmul.bf16.vlgmr.msrb.gmra.mxu1 %v605_v61 }
 0x2f6   :  { %640 = vmatmul.bf16.vlgmr.msrb.gmra.mxu2 %v605_v61  ;;  %822 = vmatpush.bf16.msrb.mxu0 %v1453_v18 }
 0x2f7   :  { %891 = vmatpush.bf16.msrb.mxu1 %v1442_v3  ;;  %904 = vmatpush.bf16.msrb.mxu2 %v1444_v7  ;;  %v1181_v3 = vld [vmem:[%s1807_s0 + $0x30] sm:$0xff] }
 0x2f8   :  { %v602_v7 = vunpack.c.l.bf16 %v1181_v3 }
 0x2fa   :  { %823 = vmatpush.bf16.msrb.mxu0 %v1463_v26 }
 0x2fb   :  { %892 = vmatpush.bf16.msrb.mxu1 %v1447_v10  ;;  %905 = vmatpush.bf16.msrb.mxu2 %v1451_v11  ;;  %v603_v10 = vunpack.c.h.bf16 %v1181_v3 }
 0x2fe   :  { %824 = vmatpush.bf16.msrb.mxu0 %v1473_v35 }
 0x2ff   :  { %893 = vmatpush.bf16.msrb.mxu1 %v1456_v19  ;;  %906 = vmatpush.bf16.msrb.mxu2 %v1460_v22 }
 0x302   :  { %825 = vmatpush.bf16.msrb.mxu0 %v1483_v44 }
 0x303   :  { %894 = vmatpush.bf16.msrb.mxu1 %v1466_v30  ;;  %907 = vmatpush.bf16.msrb.mxu2 %v1470_v31 }
 0x306   :  { %826 = vmatpush.bf16.msrb.mxu0 %v1493_v53 }
 0x307   :  { %895 = vmatpush.bf16.msrb.mxu1 %v1476_v39  ;;  %908 = vmatpush.bf16.msrb.mxu2 %v1480_v42 }
 0x30a   :  { %827 = vmatpush.bf16.msrb.mxu0 %v1503_v62 }
 0x30b   :  { %896 = vmatpush.bf16.msrb.mxu1 %v1486_v48  ;;  %909 = vmatpush.bf16.msrb.mxu2 %v1490_v49 }
 0x30e   :  { %828 = vmatpush.bf16.msrb.mxu0 %v1513_v5 }
 0x30f   :  { %897 = vmatpush.bf16.msrb.mxu1 %v1496_v57  ;;  %910 = vmatpush.bf16.msrb.mxu2 %v1500_v58 }
 0x312   :  { %829 = vmatpush.bf16.msrb.mxu0 %v1519_v9 }
 0x313   :  { %898 = vmatpush.bf16.msrb.mxu1 %v1506_v2  ;;  %911 = vmatpush.bf16.msrb.mxu2 %v1510_v4 }
 0x372   :  { %v615_v11 = vpop.f32.mrf.mxu0  ;;  %v628_v19 = vpop.f32.mrf.mxu1 }
 0x373   :  { %v645_v22 = vadd.f32 %v615_v11, %v602_v7  ;;  %v665_v30 = vadd.f32 %v628_v19, %v603_v10 }
 0x375   :  { %v1183_v31 = vmul.f32 -1.442695, %v645_v22  ;;  %v1184_v39 = vmul.f32 -1.442695, %v665_v30 }
 0x377   :  { %1308 = vpow2.f32 %v1183_v31 }
 0x378   :  { %1310 = vpow2.f32 %v1184_v39 }
 0x379   :  { %v641_v42 = vpop.f32.mrf.mxu2 }
 0x37a   :  { %v617_v48 = vpop.f32.mrf.mxu0  ;;  %v630_v49 = vpop.f32.mrf.mxu1  ;;  %v685_v25 = vadd.f32 %v1584_v43, %v641_v42  ;;  %v1186_v42 = vld [vmem:[%s1807_s0 + $0x44] sm:$0xf] }
 0x37d   :  { %v1309_v57 = vpop.eup %1308 }
 0x37e   :  { %v1311_v58 = vpop.eup %1310  ;;  %v649_v2 = vadd.f32 1.0, %v1309_v57 }
 0x37f   :  { %v669_v4 = vadd.f32 1.0, %v1311_v58 }
 0x380   :  { %1312 = vrcp.f32 %v649_v2  ;;  %v661_v12 = vand.u32 2147483648, %v649_v2  ;;  %v659_v14 = vand.u32 2147483647, %v649_v2  ;;  %vm655_vm1 = vweird.f32 %v649_v2 }
 0x381   :  { %1314 = vrcp.f32 %v669_v4  ;;  %v643_v47 = vpop.f32.mrf.mxu2  ;;  %v681_v36 = vand.u32 2147483648, %v669_v4  ;;  %vm675_vm5 = vweird.f32 %v669_v4  ;;  %v679_v21 = vand.u32 2147483647, %v669_v4 }
 0x382   :  { %v662_v20 = vor.u32 1.1754944e-38, %v661_v12  ;;  %vm660_vm3 = vcmp.eq.f32.partialorder %v659_v14, 8.507059e+37 }
 0x383   :  { %v682_v41 = vor.u32 1.1754944e-38, %v681_v36  ;;  %vm680_vm7 = vcmp.eq.f32.partialorder %v679_v21, 8.507059e+37 }
 0x386   :  { %v1313_v63 = vpop.eup %1312 }
 0x387   :  { %v1315_v0 = vpop.eup %1314  ;;  %v651_v1 = vmul.f32 %v1313_v63, %v649_v2  ;;  %vm656_vm0 = vweird.f32 %v1313_v63 }
 0x388   :  { %v671_v8 = vmul.f32 %v1315_v0, %v669_v4  ;;  %vm657_vm2 = vmor %vm655_vm1, %vm656_vm0  ;;  %vm676_vm4 = vweird.f32 %v1315_v0  ;;  %v699_v4 = vunpack.c.l.bf16 %v1186_v42 }
 0x389   :  { %v652_v6 = vsub.f32 1.0, %v651_v1  ;;  %vm677_vm6 = vmor %vm675_vm5, %vm676_vm4 }
 0x38a   :  { %v672_v17 = vsub.f32 1.0, %v671_v8 }
 0x38b   :  { %v653_v13 = vmul.f32 %v1313_v63, %v652_v6 }
 0x38c   :  { %v673_v29 = vmul.f32 %v1315_v0, %v672_v17 }
 0x38d   :  { %v654_v16 = vadd.f32 %v1313_v63, %v653_v13 }
 0x38e   :  { %v674_v33 = vadd.f32 %v1315_v0, %v673_v29 }
 0x38f   :  { %v658_v24 = vsel %vm657_vm2, %v1313_v63, %v654_v16 }
 0x390   :  { %v663_v27 = vsel %vm660_vm3, %v662_v20, %v658_v24  ;;  %v678_v38 = vsel %vm677_vm6, %v1315_v0, %v674_v33 }
 0x391   :  { %v686_v28 = vmul.f32 %v685_v25, %v663_v27  ;;  %v683_v45 = vsel %vm680_vm7, %v682_v41, %v678_v38  ;;  %v1189_v25 = vld [vmem:[%s1807_s0 + $0x48] sm:$0xff] }
 0x392   :  { %v793_v29 = vunpack.c.h.bf16 %v1189_v25 }
 0x393   :  { %v687_v32 = vadd.f32 %v686_v28, %v604_v23  ;;  %v792_v28 = vunpack.c.l.bf16 %v1189_v25 }
 0x395   :  { %1316 = vtanh.f32 %v687_v32 }
 0x39b   :  { %v1317_v40 = vpop.eup %1316 }
 0x39c   :  { %v689_v37 = vsub.f32 %v1698_v60, %v1317_v40 }
 0x39e   :  { %v690_v46 = vmul.f32 %v689_v37, %v683_v45 }
 0x3a0   :  { %v1734_v50 = vadd.f32 %v1317_v40, %v690_v46 }
 0x3a2   :  { %v700_v34 = vpack.c.bf16 %v1734_v50, %v1734_v50 }
 0x3a4   :  { %709 = vmatmul.bf16.vlgmr.msrb.gmra.mxu3 %v700_v34  ;;  %722 = vmatmul.bf16.vlgmr.msra.gmra.mxu0 %v700_v34 }
 0x3a5   :  { %735 = vmatmul.bf16.vlgmr.msra.gmra.mxu1 %v700_v34  ;;  %917 = vmatpush.bf16.msrb.mxu3 %v1453_v18 }
 0x3a9   :  { %918 = vmatpush.bf16.msrb.mxu3 %v1463_v26 }
 0x3ad   :  { %919 = vmatpush.bf16.msrb.mxu3 %v1473_v35 }
 0x3b1   :  { %920 = vmatpush.bf16.msrb.mxu3 %v1483_v44 }
 0x3b5   :  { %921 = vmatpush.bf16.msrb.mxu3 %v1493_v53 }
 0x3b9   :  { %922 = vmatpush.bf16.msrb.mxu3 %v1503_v62 }
 0x3bd   :  { %923 = vmatpush.bf16.msrb.mxu3 %v1513_v5 }
 0x3c1   :  { %924 = vmatpush.bf16.msrb.mxu3 %v1519_v9 }
 0x421   :  { %v723_v18 = vpop.f32.mrf.mxu0 }
 0x422   :  { %v760_v54 = vadd.f32 %v723_v18, %v698_v52  ;;  %v736_v26 = vpop.f32.mrf.mxu1 }
 0x423   :  { %v780_v58 = vadd.f32 %v1584_v43, %v736_v26 }
 0x424   :  { %v1188_v35 = vmul.f32 -1.442695, %v760_v54 }
 0x426   :  { %1318 = vpow2.f32 %v1188_v35 }
 0x427   :  { %v710_v56 = vpop.f32.mrf.mxu3 }
 0x428   :  { %v740_v44 = vadd.f32 %v710_v56, %v697_v55 }
 0x429   :  { %v725_v53 = vpop.f32.mrf.mxu0 }
 0x42a   :  { %v1187_v59 = vmul.f32 -1.442695, %v740_v44  ;;  %v738_v62 = vpop.f32.mrf.mxu1  ;;  %v1190_v53 = vld [vmem:[%s1807_s0 + $0x50] sm:$0xf] }
 0x42c   :  { %1320 = vpow2.f32 %v1187_v59  ;;  %v1319_v5 = vpop.eup %1318 }
 0x42d   :  { %v764_v61 = vadd.f32 1.0, %v1319_v5 }
 0x42f   :  { %v712_v60 = vpop.f32.mrf.mxu3  ;;  %v776_v8 = vand.u32 2147483648, %v764_v61  ;;  %vm770_vm13 = vweird.f32 %v764_v61  ;;  %v774_v12 = vand.u32 2147483647, %v764_v61 }
 0x431   :  { %v777_v15 = vor.u32 1.1754944e-38, %v776_v8  ;;  %vm775_vm15 = vcmp.eq.f32.partialorder %v774_v12, 8.507059e+37  ;;  %v1256_v12 = vld [vmem:[%s1810_s3 + $0x18] sm:$0xff] }
 0x432   :  { %v1321_v9 = vpop.eup %1320 }
 0x433   :  { %v744_v3 = vadd.f32 1.0, %v1321_v9 }
 0x435   :  { %1322 = vrcp.f32 %v744_v3  ;;  %v756_v30 = vand.u32 2147483648, %v744_v3  ;;  %v754_v39 = vand.u32 2147483647, %v744_v3  ;;  %vm750_vm9 = vweird.f32 %v744_v3 }
 0x436   :  { %1324 = vrcp.f32 %v764_v61 }
 0x437   :  { %v757_v57 = vor.u32 1.1754944e-38, %v756_v30  ;;  %vm755_vm11 = vcmp.eq.f32.partialorder %v754_v39, 8.507059e+37 }
 0x43b   :  { %v1323_v7 = vpop.eup %1322 }
 0x43c   :  { %v1325_v10 = vpop.eup %1324  ;;  %v746_v11 = vmul.f32 %v1323_v7, %v744_v3  ;;  %vm751_vm8 = vweird.f32 %v1323_v7 }
 0x43d   :  { %v766_v22 = vmul.f32 %v1325_v10, %v764_v61  ;;  %vm752_vm10 = vmor %vm750_vm9, %vm751_vm8  ;;  %vm771_vm12 = vweird.f32 %v1325_v10  ;;  %v794_v61 = vunpack.c.l.bf16 %v1190_v53 }
 0x43e   :  { %v747_v19 = vsub.f32 1.0, %v746_v11  ;;  %vm772_vm14 = vmor %vm770_vm13, %vm771_vm12 }
 0x43f   :  { %v767_v49 = vsub.f32 1.0, %v766_v22 }
 0x440   :  { %v748_v31 = vmul.f32 %v1323_v7, %v747_v19 }
 0x441   :  { %v768_v0 = vmul.f32 %v1325_v10, %v767_v49 }
 0x442   :  { %v749_v48 = vadd.f32 %v1323_v7, %v748_v31 }
 0x443   :  { %v769_v6 = vadd.f32 %v1325_v10, %v768_v0 }
 0x444   :  { %v753_v2 = vsel %vm752_vm10, %v1323_v7, %v749_v48 }
 0x445   :  { %v758_v47 = vsel %vm755_vm11, %v757_v57, %v753_v2  ;;  %v773_v13 = vsel %vm772_vm14, %v1325_v10, %v769_v6  ;;  %v1260_v2 = vld [vmem:[%s1810_s3 + $0x38] sm:$0xff] }
 0x446   :  { %v781_v63 = vmul.f32 %v780_v58, %v758_v47  ;;  %v778_v17 = vsel %vm775_vm15, %v777_v15, %v773_v13  ;;  %1051 = vmatpush.bf16.msra.mxu0 %v1260_v2  ;;  %v1193_v47 = vld [vmem:[%s1807_s0 + $0x54] sm:$0xff] }
 0x447   :  { %v887_v0 = vunpack.c.l.bf16 %v1193_v47  ;;  %v1255_v15 = vld [vmem:[%s1810_s3 + $0x10] sm:$0xff] }
 0x448   :  { %v782_v1 = vadd.f32 %v781_v63, %v699_v4  ;;  %v1259_v4 = vld [vmem:[%s1810_s3 + $0x30] sm:$0xff]  ;;  %v1258_v63 = vld [vmem:[%s1810_s3 + $0x28] sm:$0xff] }
 0x44a   :  { %1326 = vtanh.f32 %v782_v1  ;;  %1052 = vmatpush.bf16.msra.mxu0 %v1259_v4  ;;  %v1257_v1 = vld [vmem:[%s1810_s3 + $0x20] sm:$0xff] }
 0x44e   :  { %1053 = vmatpush.bf16.msra.mxu0 %v1258_v63 }
 0x450   :  { %v1327_v14 = vpop.eup %1326 }
 0x451   :  { %v784_v16 = vsub.f32 %v1734_v50, %v1327_v14 }
 0x452   :  { %1054 = vmatpush.bf16.msra.mxu0 %v1257_v1 }
 0x453   :  { %v785_v20 = vmul.f32 %v784_v16, %v778_v17 }
 0x455   :  { %v1754_v23 = vadd.f32 %v1327_v14, %v785_v20  ;;  %v888_v14 = vunpack.c.h.bf16 %v1193_v47 }
 0x456   :  { %1055 = vmatpush.bf16.msra.mxu0 %v1256_v12 }
 0x457   :  { %v795_v24 = vpack.c.bf16 %v1754_v23, %v1754_v23 }
 0x459   :  { %804 = vmatmul.bf16.vlgmr.msra.gmra.mxu2 %v795_v24  ;;  %817 = vmatmul.bf16.vlgmr.msra.gmra.mxu3 %v795_v24 }
 0x45a   :  { %830 = vmatmul.bf16.vlgmr.msrb.gmra.mxu0 %v795_v24  ;;  %v1254_v24 = vld [vmem:[%s1810_s3 + $0x8] sm:$0xff] }
 0x45b   :  { %1056 = vmatpush.bf16.msra.mxu0 %v1255_v15 }
 0x45f   :  { %1057 = vmatpush.bf16.msra.mxu0 %v1254_v24 }
 0x4d7   :  { %v831_v27 = vpop.f32.mrf.mxu0 }
 0x4d8   :  { %v875_v60 = vadd.f32 %v1584_v43, %v831_v27 }
 0x4dc   :  { %v805_v32 = vpop.f32.mrf.mxu2  ;;  %v818_v33 = vpop.f32.mrf.mxu3 }
 0x4dd   :  { %v835_v36 = vadd.f32 %v805_v32, %v792_v28  ;;  %v855_v21 = vadd.f32 %v818_v33, %v793_v29  ;;  %v1253_v29 = vld [vmem:[%s1810_s3] sm:$0xff] }
 0x4de   :  { %1058 = vmatpush.bf16.msra.mxu0 %v1253_v29 }
 0x4df   :  { %v1191_v38 = vmul.f32 -1.442695, %v835_v36  ;;  %v1192_v40 = vmul.f32 -1.442695, %v855_v21  ;;  %v833_v41 = vpop.f32.mrf.mxu0 }
 0x4e1   :  { %1328 = vpow2.f32 %v1191_v38 }
 0x4e2   :  { %1330 = vpow2.f32 %v1192_v40 }
 0x4e4   :  { %v807_v37 = vpop.f32.mrf.mxu2  ;;  %v820_v45 = vpop.f32.mrf.mxu3 }
 0x4e5   :  { %v1194_v45 = vld [vmem:[%s1807_s0 + $0x5c] sm:$0xf] }
 0x4e7   :  { %v1329_v46 = vpop.eup %1328 }
 0x4e8   :  { %v1331_v50 = vpop.eup %1330  ;;  %v839_v34 = vadd.f32 1.0, %v1329_v46 }
 0x4e9   :  { %v859_v51 = vadd.f32 1.0, %v1331_v50 }
 0x4ea   :  { %1332 = vrcp.f32 %v839_v34  ;;  %v851_v55 = vand.u32 2147483648, %v839_v34  ;;  %v849_v44 = vand.u32 2147483647, %v839_v34  ;;  %vm845_vm1 = vweird.f32 %v839_v34 }
 0x4eb   :  { %1334 = vrcp.f32 %v859_v51  ;;  %v871_v22 = vand.u32 2147483648, %v859_v51  ;;  %vm865_vm5 = vweird.f32 %v859_v51  ;;  %v869_v30 = vand.u32 2147483647, %v859_v51 }
 0x4ec   :  { %v852_v62 = vor.u32 1.1754944e-38, %v851_v55  ;;  %vm850_vm3 = vcmp.eq.f32.partialorder %v849_v44, 8.507059e+37 }
 0x4ed   :  { %v872_v42 = vor.u32 1.1754944e-38, %v871_v22  ;;  %vm870_vm7 = vcmp.eq.f32.partialorder %v869_v30, 8.507059e+37 }
 0x4f0   :  { %v1333_v52 = vpop.eup %1332 }
 0x4f1   :  { %v1335_v18 = vpop.eup %1334  ;;  %v841_v54 = vmul.f32 %v1333_v52, %v839_v34  ;;  %vm846_vm0 = vweird.f32 %v1333_v52 }
 0x4f2   :  { %v861_v35 = vmul.f32 %v1335_v18, %v859_v51  ;;  %vm847_vm2 = vmor %vm845_vm1, %vm846_vm0  ;;  %vm866_vm4 = vweird.f32 %v1335_v18 }
 0x4f3   :  { %v842_v26 = vsub.f32 1.0, %v841_v54  ;;  %vm867_vm6 = vmor %vm865_vm5, %vm866_vm4 }
 0x4f4   :  { %v862_v5 = vsub.f32 1.0, %v861_v35  ;;  %v1348_v35 = vld [vmem:[%s1809_s2] ss:$0 sm:$0xff] }
 0x4f5   :  { %v843_v56 = vmul.f32 %v1333_v52, %v842_v26 }
 0x4f6   :  { %v863_v10 = vmul.f32 %v1335_v18, %v862_v5 }
 0x4f7   :  { %v844_v59 = vadd.f32 %v1333_v52, %v843_v56 }
 0x4f8   :  { %v864_v19 = vadd.f32 %v1335_v18, %v863_v10 }
 0x4f9   :  { %v848_v9 = vsel %vm847_vm2, %v1333_v52, %v844_v59 }
 0x4fa   :  { %v853_v3 = vsel %vm850_vm3, %v852_v62, %v848_v9  ;;  %v868_v31 = vsel %vm867_vm6, %v1335_v18, %v864_v19  ;;  %v889_v18 = vunpack.c.l.bf16 %v1194_v45 }
 0x4fb   :  { %v876_v7 = vmul.f32 %v875_v60, %v853_v3  ;;  %v873_v48 = vsel %vm870_vm7, %v872_v42, %v868_v31  ;;  %v1267_v31 = vld [vmem:[#allocation5] ss:$0 sm:$0xff] }
 0x4fd   :  { %v877_v11 = vadd.f32 %v876_v7, %v794_v61 }
 0x4ff   :  { %1336 = vtanh.f32 %v877_v11 }
 0x505   :  { %v1337_v39 = vpop.eup %1336 }
 0x506   :  { %v879_v43 = vsub.f32 %v1754_v23, %v1337_v39 }
 0x508   :  { %v880_v49 = vmul.f32 %v879_v43, %v873_v48 }
 0x50a   :  { %v1766_v57 = vadd.f32 %v1337_v39, %v880_v49 }
 0x50c   :  { %v890_v58 = vpack.c.bf16 %v1766_v57, %v1766_v57 }
 0x50e   :  { %899 = vmatmul.bf16.vlgmr.msrb.gmra.mxu1 %v890_v58  ;;  %912 = vmatmul.bf16.vlgmr.msrb.gmra.mxu2 %v890_v58 }
 0x50f   :  { %925 = vmatmul.bf16.vlgmr.msrb.gmra.mxu3 %v890_v58 }
 0x58b   :  { %v900_v6 = vpop.f32.mrf.mxu1 }
 0x58c   :  { %v930_v8 = vadd.f32 %v900_v6, %v887_v0 }
 0x58e   :  { %v1195_v13 = vmul.f32 -1.442695, %v930_v8 }
 0x590   :  { %1338 = vpow2.f32 %v1195_v13 }
 0x591   :  { %v913_v16 = vpop.f32.mrf.mxu2 }
 0x592   :  { %v950_v17 = vadd.f32 %v913_v16, %v888_v14  ;;  %v926_v20 = vpop.f32.mrf.mxu3 }
 0x593   :  { %v902_v23 = vpop.f32.mrf.mxu1  ;;  %v970_v56 = vadd.f32 %v1348_v35, %v926_v20 }
 0x594   :  { %v1196_v25 = vmul.f32 -1.442695, %v950_v17 }
 0x596   :  { %v1339_v27 = vpop.eup %1338  ;;  %1340 = vpow2.f32 %v1196_v25 }
 0x597   :  { %v934_v28 = vadd.f32 1.0, %v1339_v27 }
 0x599   :  { %1342 = vrcp.f32 %v934_v28  ;;  %v915_v32 = vpop.f32.mrf.mxu2  ;;  %v946_v37 = vand.u32 2147483648, %v934_v28  ;;  %v944_v50 = vand.u32 2147483647, %v934_v28  ;;  %vm940_vm9 = vweird.f32 %v934_v28 }
 0x59a   :  { %v928_v33 = vpop.f32.mrf.mxu3 }
 0x59b   :  { %v947_v54 = vor.u32 1.1754944e-38, %v946_v37  ;;  %vm945_vm11 = vcmp.eq.f32.partialorder %v944_v50, 8.507059e+37 }
 0x59c   :  { %v1341_v36 = vpop.eup %1340 }
 0x59d   :  { %v954_v21 = vadd.f32 1.0, %v1341_v36 }
 0x59f   :  { %v1343_v38 = vpop.eup %1342  ;;  %1344 = vrcp.f32 %v954_v21  ;;  %v966_v60 = vand.u32 2147483648, %v954_v21  ;;  %vm960_vm13 = vweird.f32 %v954_v21  ;;  %v964_v9 = vand.u32 2147483647, %v954_v21 }
 0x5a0   :  { %v936_v40 = vmul.f32 %v1343_v38, %v934_v28  ;;  %vm941_vm8 = vweird.f32 %v1343_v38 }
 0x5a1   :  { %vm942_vm10 = vmor %vm940_vm9, %vm941_vm8  ;;  %v967_v7 = vor.u32 1.1754944e-38, %v966_v60  ;;  %vm965_vm15 = vcmp.eq.f32.partialorder %v964_v9, 8.507059e+37 }
 0x5a2   :  { %v937_v41 = vsub.f32 1.0, %v936_v40 }
 0x5a4   :  { %v938_v46 = vmul.f32 %v1343_v38, %v937_v41 }
 0x5a5   :  { %v1345_v34 = vpop.eup %1344 }
 0x5a6   :  { %v956_v51 = vmul.f32 %v1345_v34, %v954_v21  ;;  %v939_v52 = vadd.f32 %v1343_v38, %v938_v46  ;;  %vm961_vm12 = vweird.f32 %v1345_v34 }
 0x5a7   :  { %vm962_vm14 = vmor %vm960_vm13, %vm961_vm12 }
 0x5a8   :  { %v957_v26 = vsub.f32 1.0, %v956_v51  ;;  %v943_v55 = vsel %vm942_vm10, %v1343_v38, %v939_v52 }
 0x5a9   :  { %v948_v44 = vsel %vm945_vm11, %v947_v54, %v943_v55 }
 0x5aa   :  { %v971_v53 = vmul.f32 %v970_v56, %v948_v44  ;;  %v958_v59 = vmul.f32 %v1345_v34, %v957_v26 }
 0x5ac   :  { %v972_v62 = vadd.f32 %v971_v53, %v889_v18  ;;  %v959_v5 = vadd.f32 %v1345_v34, %v958_v59 }
 0x5ae   :  { %1346 = vtanh.f32 %v972_v62  ;;  %v963_v61 = vsel %vm962_vm14, %v1345_v34, %v959_v5 }
 0x5af   :  { %v968_v11 = vsel %vm965_vm15, %v967_v7, %v963_v61 }
 0x5b4   :  { %v1347_v3 = vpop.eup %1346 }
 0x5b5   :  { %v974_v10 = vsub.f32 %v1766_v57, %v1347_v3 }
 0x5b7   :  { %v975_v19 = vmul.f32 %v974_v10, %v968_v11 }
 0x5b9   :  { %v976_v22 = vadd.f32 %v1347_v3, %v975_v19 }
 0x5bb   :  { %v982_v30 = vpack.c.bf16 %v976_v22, %v976_v22 }
 0x5bd   :  { %1059 = vmatmul.bf16.vlgmr.msra.gmra.mxu0 %v982_v30 }
 0x63a   :  { %v1060_v39 = vpop.f32.mrf.mxu0 }
 0x63b   :  { %v1061_v42 = vadd.f32 %v1267_v31, %v1060_v39 }
 0x63d   :  { %1064 = vst [vmem:[%s1812_s5] sm:$0xff] %v1061_v42 }
 0x642   :  { %v1062_v43 = vpop.f32.mrf.mxu0 }
 0x643   :  { %1069 = vsyncpa [#allocation4], 1 }
 0x644   :  { %1070 = vsyncpa [#allocation6], 1 }

</bundles_post_ra>
